<compile_context>
chip_gen: v6e
topology: v6e:2x2x1
jax: 0.10.0
libtpu: 0.0.40
codegen_flags: <defaults>
</compile_context>

<pallas_src>
import jax
import jax.numpy as jnp
from jax.experimental import pallas as pl
from jax.experimental.pallas import tpu as pltpu

# PredictorEncoder(input_dims=4, hidden_dims=32):
#   TSEncoder: input_fc = Linear(4, 64); DilatedConvEncoder(64, [64]*10 + [32], k=3)
#   pred_layer: Linear(32, 4)
D_IN = 4       # input_dims
D_MODEL = 64   # TSEncoder internal hidden_dims (fixed default)
D_OUT = 32     # PredictorEncoder hidden_dims == TSEncoder output_dims
DEPTH = 10     # number of 64->64 conv blocks (plus one final 64->32 block)
B = 2
T = 8


def _gelu_tanh(x):
    # tanh-approx GELU (|err vs erf GELU| < 4e-4); tanh executes on the EUP slot.
    c = 0.7978845608028654  # sqrt(2/pi)
    return 0.5 * x * (1.0 + jnp.tanh(c * (x + 0.044715 * x * x * x)))


def _make_kernel(b, t_len, depth, n_fused):
    bt = b * t_len

    def kernel(x_ref, fc_w, fc_b, wf, wc, bb, l1w, l1b, l2w, l2b,
               pjw, pjb, prw, prb, out_ref):
        x = x_ref[...]                                    # (B*T, D_in) f32

        # Per-row time index within its batch slab, hoisted once (no int div/rem needed).
        row = jax.lax.broadcasted_iota(jnp.int32, (bt, 1), 0)
        tmod = row
        for _ in range(b - 1):
            tmod = jnp.where(tmod >= t_len, tmod - t_len, tmod)

        # nan_mask: rows containing any NaN are zeroed (NaN != NaN trick).
        nan_any = jnp.max(jnp.where(x != x, 1.0, 0.0), axis=-1, keepdims=True)
        valid = nan_any < 0.5                             # (B*T, 1) bool
        xc = jnp.where(valid, x, 0.0)

        # input_fc (bf16 matmul, f32 accumulate + bias)
        h = jnp.dot(xc.astype(jnp.bfloat16), fc_w[...],
                    preferred_element_type=jnp.float32) + fc_b[...]
        # eval-mode mask == 'all_true'; mask &= nan_mask -> zero NaN rows again
        h = jnp.where(valid, h, 0.0)                      # (B*T, D_model) f32

        # Hoisted "tap stays inside its own slab" masks for every offset actually used.
        offs = sorted({s * 2 ** i for i in range(n_fused) for s in (1, -1)})
        keep = {o: jnp.logical_and(tmod + o >= 0, tmod + o < t_len) for o in offs}

        def shift(a, off):
            # out[r] = a[r + off] if r and r+off lie in the same length-T slab, else 0.
            c = a.shape[-1]
            z = jnp.zeros((abs(off), c), a.dtype)
            if off > 0:
                s = jnp.concatenate([a[off:], z], axis=0)
            else:
                s = jnp.concatenate([z, a[:bt + off]], axis=0)
            return jnp.where(keep[off], s, 0.0)

        def conv_fused(a, w, bias, d):
            # SamePadConv(k=3, dilation=d): all three taps fused into one K=3*Cin matmul.
            cat = jnp.concatenate([shift(a, -d), a, shift(a, d)], axis=-1)
            return jnp.dot(cat.astype(jnp.bfloat16), w,
                           preferred_element_type=jnp.float32) + bias

        def conv_center(a, w, bias):
            # dilation >= T: side taps fall entirely in zero padding -> centre tap only.
            return jnp.dot(a.astype(jnp.bfloat16), w,
                           preferred_element_type=jnp.float32) + bias

        # ConvBlocks with dilation < T (fused 3-tap convs), identity residual.
        for i in range(n_fused):
            d = 2 ** i
            res = h
            u = conv_fused(_gelu_tanh(h), wf[2 * i], bb[2 * i], d)
            u = conv_fused(_gelu_tanh(u), wf[2 * i + 1], bb[2 * i + 1], d)
            h = u + res

        # ConvBlocks with dilation >= T (centre tap only), identity residual.
        for i in range(n_fused, depth):
            j = i - n_fused
            res = h
            u = conv_center(_gelu_tanh(h), wc[2 * j], bb[2 * i])
            u = conv_center(_gelu_tanh(u), wc[2 * j + 1], bb[2 * i + 1])
            h = u + res

        # Final ConvBlock: D_model -> D_out, dilation 2**depth >= T, 1x1-conv projector residual.
        res = jnp.dot(h.astype(jnp.bfloat16), pjw[...],
                      preferred_element_type=jnp.float32) + pjb[...]
        u = conv_center(_gelu_tanh(h), l1w[...], l1b[...])
        u = conv_center(_gelu_tanh(u), l2w[...], l2b[...])
        h = u + res                                       # (B*T, D_out) f32

        # Center(): subtract per-timestep channel mean (dim=1 of PyTorch (B,C,T)).
        h = h - jnp.mean(h, axis=-1, keepdims=True)
        # TODO(synk): repr_dropout(p=0.1) and the 'binomial'/'continuous' training-time
        # masks are stochastic training-only ops; eval semantics (identity / all_true) used.

        out_ref[...] = (jnp.dot(h.astype(jnp.bfloat16), prw[...],
                                preferred_element_type=jnp.float32)
                        + prb[...]).astype(out_ref.dtype)

    return kernel


@jax.jit
def predictor_encoder_pallas(x, params):
    b, t_len, d_in = x.shape
    depth = params['blk_b'].shape[0] // 2
    d_model = params['fc_w'].shape[1]
    bt = b * t_len

    # Blocks whose side taps can land inside the sequence (dilation < T).
    n_fused = sum(1 for i in range(depth) if 2 ** i < t_len)
    # (final block has dilation 2**depth >= t_len here, so only its centre tap matters)

    # ---- host-side weight prep: tap-fusion reshape + bf16 cast (outside the kernel) ----
    bw = params['blk_w'].reshape(2 * depth, 3, d_model, d_model)
    w_fused = bw[:2 * n_fused].reshape(2 * n_fused, 3 * d_model, d_model).astype(jnp.bfloat16)
    w_center = bw[2 * n_fused:, 1].astype(jnp.bfloat16)          # (2*(depth-n_fused), Dm, Dm)
    fc_w = params['fc_w'].astype(jnp.bfloat16)
    l1_wc = params['l1_w'][1].astype(jnp.bfloat16)               # (Dm, Do)
    l2_wc = params['l2_w'][1].astype(jnp.bfloat16)               # (Do, Do)
    pj_w = params['lproj_w'].astype(jnp.bfloat16)
    pr_w = params['pred_w'].astype(jnp.bfloat16)

    x2 = x.reshape(bt, d_in)   # fold batch into the sublane axis

    def full(shape):
        nd = len(shape)
        return pl.BlockSpec(shape, lambda i, _n=nd: (0,) * _n)

    args = (x2, fc_w, params['fc_b'], w_fused, w_center, params['blk_b'],
            l1_wc, params['l1_b'], l2_wc, params['l2_b'],
            pj_w, params['lproj_b'], pr_w, params['pred_b'])

    out2 = pl.pallas_call(
        _make_kernel(b, t_len, depth, n_fused),
        out_shape=jax.ShapeDtypeStruct((bt, d_in), jnp.float32),
        grid=(1,),
        in_specs=[full(a.shape) for a in args],
        out_specs=full((bt, d_in)),
        # Single program: folded batch + ~0.3 MiB of bf16 weights fit one VMEM tile.
        # (On v7x one could instead keep grid=(B,) with ("parallel",) to use both TCs,
        #  but at B=2, T=8 the batch fold wins on every generation.)
        compiler_params=pltpu.CompilerParams(dimension_semantics=("arbitrary",)),
    )(*args)
    return out2.reshape(b, t_len, d_in)


# ----------------------------- pure-JAX reference ---------------------------------
def _erf(x):
    # Abramowitz & Stegun 7.1.26 rational approximation (|err| < 1.5e-7).
    p = 0.3275911
    a1, a2, a3, a4, a5 = (0.254829592, -0.284496736, 1.421413741,
                          -1.453152027, 1.061405429)
    ax = jnp.abs(x)
    t = 1.0 / (1.0 + p * ax)
    poly = ((((a5 * t + a4) * t + a3) * t + a2) * t + a1) * t
    y = 1.0 - poly * jnp.exp(-ax * ax)
    return jnp.where(x >= 0.0, y, -y)


def _gelu_erf(x):
    # exact (erf-based) GELU, matching torch.nn.functional.gelu default
    return 0.5 * x * (1.0 + _erf(x * 0.7071067811865476))


def reference_forward(x, params):
    # Same math as the PyTorch module (eval mode), f32, no Pallas.
    b, t_len, _ = x.shape
    depth = params['blk_b'].shape[0] // 2
    valid = ~jnp.any(jnp.isnan(x), axis=-1, keepdims=True)
    xc = jnp.where(valid, x, 0.0)
    h = xc @ params['fc_w'] + params['fc_b']
    h = jnp.where(valid, h, 0.0)

    def shifted(a, off):
        if off == 0:
            return a
        if abs(off) >= t_len:
            return jnp.zeros_like(a)
        z = jnp.zeros((b, abs(off), a.shape[-1]), a.dtype)
        if off > 0:
            return jnp.concatenate([a[:, off:], z], axis=1)
        return jnp.concatenate([z, a[:, :off]], axis=1)

    def dconv(a, w3, bias, dil):
        out = a @ w3[1] + bias
        for k, off in ((0, -dil), (2, dil)):
            out = out + shifted(a, off) @ w3[k]
        return out

    for i in range(depth):
        dil = 2 ** i
        res = h
        u = _gelu_erf(h)
        u = dconv(u, params['blk_w'][(2 * i + 0) * 3:(2 * i + 0) * 3 + 3],
                  params['blk_b'][2 * i + 0], dil)
        u = _gelu_erf(u)
        u = dconv(u, params['blk_w'][(2 * i + 1) * 3:(2 * i + 1) * 3 + 3],
                  params['blk_b'][2 * i + 1], dil)
        h = u + res
    dil = 2 ** depth
    res = h @ params['lproj_w'] + params['lproj_b']
    u = _gelu_erf(h)
    u = dconv(u, params['l1_w'], params['l1_b'], dil)
    u = _gelu_erf(u)
    u = dconv(u, params['l2_w'], params['l2_b'], dil)
    h = u + res
    h = h - jnp.mean(h, axis=-1, keepdims=True)
    return h @ params['pred_w'] + params['pred_b']


def init_params(key):
    # Deterministic synthetic weights; conv weights stored as (k, Cin, Cout)
    # so out = x_shift @ W[k]  (== PyTorch Conv1d weight[:, :, k].T).
    ks = jax.random.split(key, 12)
    n = jax.random.normal
    return {
        'fc_w':    n(ks[0], (D_IN, D_MODEL), jnp.float32) * D_IN ** -0.5,
        'fc_b':    0.1 * n(ks[1], (1, D_MODEL), jnp.float32),
        'blk_w':   n(ks[2], (DEPTH * 2 * 3, D_MODEL, D_MODEL), jnp.float32)
                   * (3 * D_MODEL) ** -0.5,
        'blk_b':   0.1 * n(ks[3], (DEPTH * 2, 1, D_MODEL), jnp.float32),
        'l1_w':    n(ks[4], (3, D_MODEL, D_OUT), jnp.float32) * (3 * D_MODEL) ** -0.5,
        'l1_b':    0.1 * n(ks[5], (1, D_OUT), jnp.float32),
        'l2_w':    n(ks[6], (3, D_OUT, D_OUT), jnp.float32) * (3 * D_OUT) ** -0.5,
        'l2_b':    0.1 * n(ks[7], (1, D_OUT), jnp.float32),
        'lproj_w': n(ks[8], (D_MODEL, D_OUT), jnp.float32) * D_MODEL ** -0.5,
        'lproj_b': 0.1 * n(ks[9], (1, D_OUT), jnp.float32),
        'pred_w':  n(ks[10], (D_OUT, D_IN), jnp.float32) * D_OUT ** -0.5,
        'pred_b':  0.1 * n(ks[11], (1, D_IN), jnp.float32),
    }


if __name__ == "__main__":
    key = jax.random.PRNGKey(0)
    kx, kp = jax.random.split(key)
    x = jax.random.normal(kx, (B, T, D_IN), jnp.float32)
    x = x.at[0, 3, 1].set(jnp.nan)   # exercise the nan_mask row-zeroing path
    params = init_params(kp)

    out = jax.block_until_ready(predictor_encoder_pallas(x, params))
    ref = jax.block_until_ready(reference_forward(x, params))

    assert out.shape == (B, T, D_IN)
    assert not bool(jnp.any(jnp.isnan(out)))
    max_err = float(jnp.max(jnp.abs(out - ref)))
    scale = float(jnp.max(jnp.abs(ref)))
    # bf16 MXU matmuls + tanh-GELU in the kernel vs the f32 erf reference:
    # allow ~3% relative error across the 24-matmul residual stack.
    assert max_err < 3e-2 * (1.0 + scale), \
        f"mismatch vs reference: {max_err} (ref scale {scale})"
    print("KERNEL_OK")
</pallas_src>

<mosaic_0001>
module attributes {stable_mosaic.version = 11 : i64} {
  func.func @kernel(%arg0: i32, %arg1: memref<16x4xf32, #tpu.memory_space<vmem>>, %arg2: memref<4x64xbf16, #tpu.memory_space<vmem>>, %arg3: memref<1x64xf32, #tpu.memory_space<vmem>>, %arg4: memref<6x192x64xbf16, #tpu.memory_space<vmem>>, %arg5: memref<14x64x64xbf16, #tpu.memory_space<vmem>>, %arg6: memref<20x1x64xf32, #tpu.memory_space<vmem>>, %arg7: memref<64x32xbf16, #tpu.memory_space<vmem>>, %arg8: memref<1x32xf32, #tpu.memory_space<vmem>>, %arg9: memref<32x32xbf16, #tpu.memory_space<vmem>>, %arg10: memref<1x32xf32, #tpu.memory_space<vmem>>, %arg11: memref<64x32xbf16, #tpu.memory_space<vmem>>, %arg12: memref<1x32xf32, #tpu.memory_space<vmem>>, %arg13: memref<32x4xbf16, #tpu.memory_space<vmem>>, %arg14: memref<1x4xf32, #tpu.memory_space<vmem>>, %arg15: memref<16x4xf32, #tpu.memory_space<vmem>>) attributes {dimension_semantics = [#tpu.dimension_semantics<arbitrary>], iteration_bounds = array<i64: 1>, scalar_prefetch = 0 : i64, scratch_operands = 0 : i64, tpu.core_type = #tpu.core_type<tc>, window_params = [{pipeline_mode = #tpu.pipeline_mode<synchronous>, transform_indices = @transform_0, window_bounds = array<i64: 16, 4>}, {pipeline_mode = #tpu.pipeline_mode<synchronous>, transform_indices = @transform_1, window_bounds = array<i64: 4, 64>}, {pipeline_mode = #tpu.pipeline_mode<synchronous>, transform_indices = @transform_2, window_bounds = array<i64: 1, 64>}, {pipeline_mode = #tpu.pipeline_mode<synchronous>, transform_indices = @transform_3, window_bounds = array<i64: 6, 192, 64>}, {pipeline_mode = #tpu.pipeline_mode<synchronous>, transform_indices = @transform_4, window_bounds = array<i64: 14, 64, 64>}, {pipeline_mode = #tpu.pipeline_mode<synchronous>, transform_indices = @transform_5, window_bounds = array<i64: 20, 1, 64>}, {pipeline_mode = #tpu.pipeline_mode<synchronous>, transform_indices = @transform_6, window_bounds = array<i64: 64, 32>}, {pipeline_mode = #tpu.pipeline_mode<synchronous>, transform_indices = @transform_7, window_bounds = array<i64: 1, 32>}, {pipeline_mode = #tpu.pipeline_mode<synchronous>, transform_indices = @transform_8, window_bounds = array<i64: 32, 32>}, {pipeline_mode = #tpu.pipeline_mode<synchronous>, transform_indices = @transform_9, window_bounds = array<i64: 1, 32>}, {pipeline_mode = #tpu.pipeline_mode<synchronous>, transform_indices = @transform_10, window_bounds = array<i64: 64, 32>}, {pipeline_mode = #tpu.pipeline_mode<synchronous>, transform_indices = @transform_11, window_bounds = array<i64: 1, 32>}, {pipeline_mode = #tpu.pipeline_mode<synchronous>, transform_indices = @transform_12, window_bounds = array<i64: 32, 4>}, {pipeline_mode = #tpu.pipeline_mode<synchronous>, transform_indices = @transform_13, window_bounds = array<i64: 1, 4>}, {pipeline_mode = #tpu.pipeline_mode<synchronous>, transform_indices = @transform_14, window_bounds = array<i64: 16, 4>}]} {
    %c0 = arith.constant 0 : index
    %c0_0 = arith.constant 0 : index
    %0 = vector.load %arg1[%c0, %c0_0] : memref<16x4xf32, #tpu.memory_space<vmem>>, vector<16x4xf32>
    %1 = tpu.iota {dimensions = array<i32: 0>} : vector<16x1xi32>
    %c8_i32 = arith.constant 8 : i32
    %2 = vector.broadcast %c8_i32 : i32 to vector<16x1xi32>
    %3 = arith.cmpi sge, %1, %2 : vector<16x1xi32>
    %c8_i32_1 = arith.constant 8 : i32
    %4 = vector.broadcast %c8_i32_1 : i32 to vector<16x1xi32>
    %5 = arith.subi %1, %4 : vector<16x1xi32>
    %6 = arith.select %3, %5, %1 : vector<16x1xi1>, vector<16x1xi32>
    %7 = arith.cmpf one, %0, %0 : vector<16x4xf32>
    %cst = arith.constant 1.000000e+00 : f32
    %cst_2 = arith.constant 0.000000e+00 : f32
    %8 = vector.broadcast %cst : f32 to vector<16x4xf32>
    %9 = vector.broadcast %cst_2 : f32 to vector<16x4xf32>
    %10 = arith.select %7, %8, %9 : vector<16x4xi1>, vector<16x4xf32>
    %cst_3 = arith.constant dense<0xFF800000> : vector<16xf32>
    %11 = vector.multi_reduction <maximumf>, %10, %cst_3 [1] : vector<16x4xf32> to vector<16xf32>
    %12 = vector.shape_cast %11 : vector<16xf32> to vector<16x1xf32>
    %cst_4 = arith.constant 5.000000e-01 : f32
    %13 = vector.broadcast %cst_4 : f32 to vector<16x1xf32>
    %14 = arith.cmpf olt, %12, %13 : vector<16x1xf32>
    %cst_5 = arith.constant 0.000000e+00 : f32
    %15 = vector.shape_cast %14 : vector<16x1xi1> to vector<16x1xi1>
    %16 = vector.broadcast %15 : vector<16x1xi1> to vector<16x4xi1>
    %17 = vector.broadcast %cst_5 : f32 to vector<16x4xf32>
    %18 = arith.select %16, %0, %17 : vector<16x4xi1>, vector<16x4xf32>
    %19 = arith.truncf %18 : vector<16x4xf32> to vector<16x4xbf16>
    %c0_6 = arith.constant 0 : index
    %c0_7 = arith.constant 0 : index
    %20 = vector.load %arg2[%c0_6, %c0_7] : memref<4x64xbf16, #tpu.memory_space<vmem>>, vector<4x64xbf16>
    %cst_8 = arith.constant dense<0.000000e+00> : vector<16x64xf32>
    %21 = tpu.matmul %19, %20, %cst_8 {dimension_numbers = #tpu.dot_dimension_numbers<[1], [0], [0], [1], [0, 0, 1, 1], [], []>} : vector<16x4xbf16>, vector<4x64xbf16>, vector<16x64xf32> -> vector<16x64xf32>
    %c0_9 = arith.constant 0 : index
    %c0_10 = arith.constant 0 : index
    %22 = vector.load %arg3[%c0_9, %c0_10] : memref<1x64xf32, #tpu.memory_space<vmem>>, vector<1x64xf32>
    %23 = vector.broadcast %22 : vector<1x64xf32> to vector<16x64xf32>
    %24 = arith.addf %21, %23 : vector<16x64xf32>
    %cst_11 = arith.constant 0.000000e+00 : f32
    %25 = vector.shape_cast %14 : vector<16x1xi1> to vector<16x1xi1>
    %26 = vector.broadcast %25 : vector<16x1xi1> to vector<16x64xi1>
    %27 = vector.broadcast %cst_11 : f32 to vector<16x64xf32>
    %28 = arith.select %26, %24, %27 : vector<16x64xi1>, vector<16x64xf32>
    %c-4_i32 = arith.constant -4 : i32
    %29 = vector.broadcast %c-4_i32 : i32 to vector<16x1xi32>
    %30 = arith.addi %6, %29 : vector<16x1xi32>
    %c0_i32 = arith.constant 0 : i32
    %31 = vector.broadcast %c0_i32 : i32 to vector<16x1xi32>
    %32 = arith.cmpi sge, %30, %31 : vector<16x1xi32>
    %c-4_i32_12 = arith.constant -4 : i32
    %33 = vector.broadcast %c-4_i32_12 : i32 to vector<16x1xi32>
    %34 = arith.addi %6, %33 : vector<16x1xi32>
    %c8_i32_13 = arith.constant 8 : i32
    %35 = vector.broadcast %c8_i32_13 : i32 to vector<16x1xi32>
    %36 = arith.cmpi slt, %34, %35 : vector<16x1xi32>
    %37 = arith.andi %32, %36 : vector<16x1xi1>
    %c-2_i32 = arith.constant -2 : i32
    %38 = vector.broadcast %c-2_i32 : i32 to vector<16x1xi32>
    %39 = arith.addi %6, %38 : vector<16x1xi32>
    %c0_i32_14 = arith.constant 0 : i32
    %40 = vector.broadcast %c0_i32_14 : i32 to vector<16x1xi32>
    %41 = arith.cmpi sge, %39, %40 : vector<16x1xi32>
    %c-2_i32_15 = arith.constant -2 : i32
    %42 = vector.broadcast %c-2_i32_15 : i32 to vector<16x1xi32>
    %43 = arith.addi %6, %42 : vector<16x1xi32>
    %c8_i32_16 = arith.constant 8 : i32
    %44 = vector.broadcast %c8_i32_16 : i32 to vector<16x1xi32>
    %45 = arith.cmpi slt, %43, %44 : vector<16x1xi32>
    %46 = arith.andi %41, %45 : vector<16x1xi1>
    %c-1_i32 = arith.constant -1 : i32
    %47 = vector.broadcast %c-1_i32 : i32 to vector<16x1xi32>
    %48 = arith.addi %6, %47 : vector<16x1xi32>
    %c0_i32_17 = arith.constant 0 : i32
    %49 = vector.broadcast %c0_i32_17 : i32 to vector<16x1xi32>
    %50 = arith.cmpi sge, %48, %49 : vector<16x1xi32>
    %c-1_i32_18 = arith.constant -1 : i32
    %51 = vector.broadcast %c-1_i32_18 : i32 to vector<16x1xi32>
    %52 = arith.addi %6, %51 : vector<16x1xi32>
    %c8_i32_19 = arith.constant 8 : i32
    %53 = vector.broadcast %c8_i32_19 : i32 to vector<16x1xi32>
    %54 = arith.cmpi slt, %52, %53 : vector<16x1xi32>
    %55 = arith.andi %50, %54 : vector<16x1xi1>
    %c1_i32 = arith.constant 1 : i32
    %56 = vector.broadcast %c1_i32 : i32 to vector<16x1xi32>
    %57 = arith.addi %6, %56 : vector<16x1xi32>
    %c0_i32_20 = arith.constant 0 : i32
    %58 = vector.broadcast %c0_i32_20 : i32 to vector<16x1xi32>
    %59 = arith.cmpi sge, %57, %58 : vector<16x1xi32>
    %c1_i32_21 = arith.constant 1 : i32
    %60 = vector.broadcast %c1_i32_21 : i32 to vector<16x1xi32>
    %61 = arith.addi %6, %60 : vector<16x1xi32>
    %c8_i32_22 = arith.constant 8 : i32
    %62 = vector.broadcast %c8_i32_22 : i32 to vector<16x1xi32>
    %63 = arith.cmpi slt, %61, %62 : vector<16x1xi32>
    %64 = arith.andi %59, %63 : vector<16x1xi1>
    %c2_i32 = arith.constant 2 : i32
    %65 = vector.broadcast %c2_i32 : i32 to vector<16x1xi32>
    %66 = arith.addi %6, %65 : vector<16x1xi32>
    %c0_i32_23 = arith.constant 0 : i32
    %67 = vector.broadcast %c0_i32_23 : i32 to vector<16x1xi32>
    %68 = arith.cmpi sge, %66, %67 : vector<16x1xi32>
    %c2_i32_24 = arith.constant 2 : i32
    %69 = vector.broadcast %c2_i32_24 : i32 to vector<16x1xi32>
    %70 = arith.addi %6, %69 : vector<16x1xi32>
    %c8_i32_25 = arith.constant 8 : i32
    %71 = vector.broadcast %c8_i32_25 : i32 to vector<16x1xi32>
    %72 = arith.cmpi slt, %70, %71 : vector<16x1xi32>
    %73 = arith.andi %68, %72 : vector<16x1xi1>
    %c4_i32 = arith.constant 4 : i32
    %74 = vector.broadcast %c4_i32 : i32 to vector<16x1xi32>
    %75 = arith.addi %6, %74 : vector<16x1xi32>
    %c0_i32_26 = arith.constant 0 : i32
    %76 = vector.broadcast %c0_i32_26 : i32 to vector<16x1xi32>
    %77 = arith.cmpi sge, %75, %76 : vector<16x1xi32>
    %c4_i32_27 = arith.constant 4 : i32
    %78 = vector.broadcast %c4_i32_27 : i32 to vector<16x1xi32>
    %79 = arith.addi %6, %78 : vector<16x1xi32>
    %c8_i32_28 = arith.constant 8 : i32
    %80 = vector.broadcast %c8_i32_28 : i32 to vector<16x1xi32>
    %81 = arith.cmpi slt, %79, %80 : vector<16x1xi32>
    %82 = arith.andi %77, %81 : vector<16x1xi1>
    %cst_29 = arith.constant 5.000000e-01 : f32
    %83 = vector.broadcast %cst_29 : f32 to vector<16x64xf32>
    %84 = arith.mulf %83, %28 : vector<16x64xf32>
    %cst_30 = arith.constant 4.471500e-02 : f32
    %85 = vector.broadcast %cst_30 : f32 to vector<16x64xf32>
    %86 = arith.mulf %85, %28 : vector<16x64xf32>
    %87 = arith.mulf %86, %28 : vector<16x64xf32>
    %88 = arith.mulf %87, %28 : vector<16x64xf32>
    %89 = arith.addf %28, %88 : vector<16x64xf32>
    %cst_31 = arith.constant 0.797884583 : f32
    %90 = vector.broadcast %cst_31 : f32 to vector<16x64xf32>
    %91 = arith.mulf %90, %89 : vector<16x64xf32>
    %92 = math.tanh %91 : vector<16x64xf32>
    %cst_32 = arith.constant 1.000000e+00 : f32
    %93 = vector.broadcast %cst_32 : f32 to vector<16x64xf32>
    %94 = arith.addf %93, %92 : vector<16x64xf32>
    %95 = arith.mulf %84, %94 : vector<16x64xf32>
    %c0_33 = arith.constant 0 : index
    %c0_34 = arith.constant 0 : index
    %c0_35 = arith.constant 0 : index
    %96 = vector.load %arg4[%c0_33, %c0_34, %c0_35] : memref<6x192x64xbf16, #tpu.memory_space<vmem>>, vector<1x192x64xbf16>
    %97 = vector.shape_cast %96 : vector<1x192x64xbf16> to vector<192x64xbf16>
    %c0_36 = arith.constant 0 : index
    %c0_37 = arith.constant 0 : index
    %c0_38 = arith.constant 0 : index
    %98 = vector.load %arg6[%c0_36, %c0_37, %c0_38] : memref<20x1x64xf32, #tpu.memory_space<vmem>>, vector<1x1x64xf32>
    %99 = vector.shape_cast %98 : vector<1x1x64xf32> to vector<1x64xf32>
    %cst_39 = arith.constant 0.000000e+00 : f32
    %100 = vector.broadcast %cst_39 : f32 to vector<1x64xf32>
    %101 = vector.extract_strided_slice %95 {offsets = [0, 0], sizes = [15, 64], strides = [1, 1]} : vector<16x64xf32> to vector<15x64xf32>
    %102 = tpu.concatenate %100, %101 in 0 : vector<1x64xf32>, vector<15x64xf32> -> vector<16x64xf32>
    %cst_40 = arith.constant 0.000000e+00 : f32
    %103 = vector.shape_cast %55 : vector<16x1xi1> to vector<16x1xi1>
    %104 = vector.broadcast %103 : vector<16x1xi1> to vector<16x64xi1>
    %105 = vector.broadcast %cst_40 : f32 to vector<16x64xf32>
    %106 = arith.select %104, %102, %105 : vector<16x64xi1>, vector<16x64xf32>
    %cst_41 = arith.constant 0.000000e+00 : f32
    %107 = vector.broadcast %cst_41 : f32 to vector<1x64xf32>
    %108 = vector.extract_strided_slice %95 {offsets = [1, 0], sizes = [15, 64], strides = [1, 1]} : vector<16x64xf32> to vector<15x64xf32>
    %109 = tpu.concatenate %108, %107 in 0 : vector<15x64xf32>, vector<1x64xf32> -> vector<16x64xf32>
    %cst_42 = arith.constant 0.000000e+00 : f32
    %110 = vector.shape_cast %64 : vector<16x1xi1> to vector<16x1xi1>
    %111 = vector.broadcast %110 : vector<16x1xi1> to vector<16x64xi1>
    %112 = vector.broadcast %cst_42 : f32 to vector<16x64xf32>
    %113 = arith.select %111, %109, %112 : vector<16x64xi1>, vector<16x64xf32>
    %114 = tpu.concatenate %106, %95, %113 in 1 : vector<16x64xf32>, vector<16x64xf32>, vector<16x64xf32> -> vector<16x192xf32>
    %115 = arith.truncf %114 : vector<16x192xf32> to vector<16x192xbf16>
    %cst_43 = arith.constant dense<0.000000e+00> : vector<16x64xf32>
    %116 = tpu.matmul %115, %97, %cst_43 {dimension_numbers = #tpu.dot_dimension_numbers<[1], [0], [0], [1], [0, 0, 1, 1], [], []>} : vector<16x192xbf16>, vector<192x64xbf16>, vector<16x64xf32> -> vector<16x64xf32>
    %117 = vector.broadcast %99 : vector<1x64xf32> to vector<16x64xf32>
    %118 = arith.addf %116, %117 : vector<16x64xf32>
    %cst_44 = arith.constant 5.000000e-01 : f32
    %119 = vector.broadcast %cst_44 : f32 to vector<16x64xf32>
    %120 = arith.mulf %119, %118 : vector<16x64xf32>
    %cst_45 = arith.constant 4.471500e-02 : f32
    %121 = vector.broadcast %cst_45 : f32 to vector<16x64xf32>
    %122 = arith.mulf %121, %118 : vector<16x64xf32>
    %123 = arith.mulf %122, %118 : vector<16x64xf32>
    %124 = arith.mulf %123, %118 : vector<16x64xf32>
    %125 = arith.addf %118, %124 : vector<16x64xf32>
    %cst_46 = arith.constant 0.797884583 : f32
    %126 = vector.broadcast %cst_46 : f32 to vector<16x64xf32>
    %127 = arith.mulf %126, %125 : vector<16x64xf32>
    %128 = math.tanh %127 : vector<16x64xf32>
    %cst_47 = arith.constant 1.000000e+00 : f32
    %129 = vector.broadcast %cst_47 : f32 to vector<16x64xf32>
    %130 = arith.addf %129, %128 : vector<16x64xf32>
    %131 = arith.mulf %120, %130 : vector<16x64xf32>
    %c1 = arith.constant 1 : index
    %c0_48 = arith.constant 0 : index
    %c0_49 = arith.constant 0 : index
    %132 = vector.load %arg4[%c1, %c0_48, %c0_49] : memref<6x192x64xbf16, #tpu.memory_space<vmem>>, vector<1x192x64xbf16>
    %133 = vector.shape_cast %132 : vector<1x192x64xbf16> to vector<192x64xbf16>
    %c1_50 = arith.constant 1 : index
    %c0_51 = arith.constant 0 : index
    %c0_52 = arith.constant 0 : index
    %134 = vector.load %arg6[%c1_50, %c0_51, %c0_52] : memref<20x1x64xf32, #tpu.memory_space<vmem>>, vector<1x1x64xf32>
    %135 = vector.shape_cast %134 : vector<1x1x64xf32> to vector<1x64xf32>
    %cst_53 = arith.constant 0.000000e+00 : f32
    %136 = vector.broadcast %cst_53 : f32 to vector<1x64xf32>
    %137 = vector.extract_strided_slice %131 {offsets = [0, 0], sizes = [15, 64], strides = [1, 1]} : vector<16x64xf32> to vector<15x64xf32>
    %138 = tpu.concatenate %136, %137 in 0 : vector<1x64xf32>, vector<15x64xf32> -> vector<16x64xf32>
    %cst_54 = arith.constant 0.000000e+00 : f32
    %139 = vector.shape_cast %55 : vector<16x1xi1> to vector<16x1xi1>
    %140 = vector.broadcast %139 : vector<16x1xi1> to vector<16x64xi1>
    %141 = vector.broadcast %cst_54 : f32 to vector<16x64xf32>
    %142 = arith.select %140, %138, %141 : vector<16x64xi1>, vector<16x64xf32>
    %cst_55 = arith.constant 0.000000e+00 : f32
    %143 = vector.broadcast %cst_55 : f32 to vector<1x64xf32>
    %144 = vector.extract_strided_slice %131 {offsets = [1, 0], sizes = [15, 64], strides = [1, 1]} : vector<16x64xf32> to vector<15x64xf32>
    %145 = tpu.concatenate %144, %143 in 0 : vector<15x64xf32>, vector<1x64xf32> -> vector<16x64xf32>
    %cst_56 = arith.constant 0.000000e+00 : f32
    %146 = vector.shape_cast %64 : vector<16x1xi1> to vector<16x1xi1>
    %147 = vector.broadcast %146 : vector<16x1xi1> to vector<16x64xi1>
    %148 = vector.broadcast %cst_56 : f32 to vector<16x64xf32>
    %149 = arith.select %147, %145, %148 : vector<16x64xi1>, vector<16x64xf32>
    %150 = tpu.concatenate %142, %131, %149 in 1 : vector<16x64xf32>, vector<16x64xf32>, vector<16x64xf32> -> vector<16x192xf32>
    %151 = arith.truncf %150 : vector<16x192xf32> to vector<16x192xbf16>
    %cst_57 = arith.constant dense<0.000000e+00> : vector<16x64xf32>
    %152 = tpu.matmul %151, %133, %cst_57 {dimension_numbers = #tpu.dot_dimension_numbers<[1], [0], [0], [1], [0, 0, 1, 1], [], []>} : vector<16x192xbf16>, vector<192x64xbf16>, vector<16x64xf32> -> vector<16x64xf32>
    %153 = vector.broadcast %135 : vector<1x64xf32> to vector<16x64xf32>
    %154 = arith.addf %152, %153 : vector<16x64xf32>
    %155 = arith.addf %154, %28 : vector<16x64xf32>
    %cst_58 = arith.constant 5.000000e-01 : f32
    %156 = vector.broadcast %cst_58 : f32 to vector<16x64xf32>
    %157 = arith.mulf %156, %155 : vector<16x64xf32>
    %cst_59 = arith.constant 4.471500e-02 : f32
    %158 = vector.broadcast %cst_59 : f32 to vector<16x64xf32>
    %159 = arith.mulf %158, %155 : vector<16x64xf32>
    %160 = arith.mulf %159, %155 : vector<16x64xf32>
    %161 = arith.mulf %160, %155 : vector<16x64xf32>
    %162 = arith.addf %155, %161 : vector<16x64xf32>
    %cst_60 = arith.constant 0.797884583 : f32
    %163 = vector.broadcast %cst_60 : f32 to vector<16x64xf32>
    %164 = arith.mulf %163, %162 : vector<16x64xf32>
    %165 = math.tanh %164 : vector<16x64xf32>
    %cst_61 = arith.constant 1.000000e+00 : f32
    %166 = vector.broadcast %cst_61 : f32 to vector<16x64xf32>
    %167 = arith.addf %166, %165 : vector<16x64xf32>
    %168 = arith.mulf %157, %167 : vector<16x64xf32>
    %c2 = arith.constant 2 : index
    %c0_62 = arith.constant 0 : index
    %c0_63 = arith.constant 0 : index
    %169 = vector.load %arg4[%c2, %c0_62, %c0_63] : memref<6x192x64xbf16, #tpu.memory_space<vmem>>, vector<1x192x64xbf16>
    %170 = vector.shape_cast %169 : vector<1x192x64xbf16> to vector<192x64xbf16>
    %c2_64 = arith.constant 2 : index
    %c0_65 = arith.constant 0 : index
    %c0_66 = arith.constant 0 : index
    %171 = vector.load %arg6[%c2_64, %c0_65, %c0_66] : memref<20x1x64xf32, #tpu.memory_space<vmem>>, vector<1x1x64xf32>
    %172 = vector.shape_cast %171 : vector<1x1x64xf32> to vector<1x64xf32>
    %cst_67 = arith.constant 0.000000e+00 : f32
    %173 = vector.broadcast %cst_67 : f32 to vector<2x64xf32>
    %174 = vector.extract_strided_slice %168 {offsets = [0, 0], sizes = [14, 64], strides = [1, 1]} : vector<16x64xf32> to vector<14x64xf32>
    %175 = tpu.concatenate %173, %174 in 0 : vector<2x64xf32>, vector<14x64xf32> -> vector<16x64xf32>
    %cst_68 = arith.constant 0.000000e+00 : f32
    %176 = vector.shape_cast %46 : vector<16x1xi1> to vector<16x1xi1>
    %177 = vector.broadcast %176 : vector<16x1xi1> to vector<16x64xi1>
    %178 = vector.broadcast %cst_68 : f32 to vector<16x64xf32>
    %179 = arith.select %177, %175, %178 : vector<16x64xi1>, vector<16x64xf32>
    %cst_69 = arith.constant 0.000000e+00 : f32
    %180 = vector.broadcast %cst_69 : f32 to vector<2x64xf32>
    %181 = vector.extract_strided_slice %168 {offsets = [2, 0], sizes = [14, 64], strides = [1, 1]} : vector<16x64xf32> to vector<14x64xf32>
    %182 = tpu.concatenate %181, %180 in 0 : vector<14x64xf32>, vector<2x64xf32> -> vector<16x64xf32>
    %cst_70 = arith.constant 0.000000e+00 : f32
    %183 = vector.shape_cast %73 : vector<16x1xi1> to vector<16x1xi1>
    %184 = vector.broadcast %183 : vector<16x1xi1> to vector<16x64xi1>
    %185 = vector.broadcast %cst_70 : f32 to vector<16x64xf32>
    %186 = arith.select %184, %182, %185 : vector<16x64xi1>, vector<16x64xf32>
    %187 = tpu.concatenate %179, %168, %186 in 1 : vector<16x64xf32>, vector<16x64xf32>, vector<16x64xf32> -> vector<16x192xf32>
    %188 = arith.truncf %187 : vector<16x192xf32> to vector<16x192xbf16>
    %cst_71 = arith.constant dense<0.000000e+00> : vector<16x64xf32>
    %189 = tpu.matmul %188, %170, %cst_71 {dimension_numbers = #tpu.dot_dimension_numbers<[1], [0], [0], [1], [0, 0, 1, 1], [], []>} : vector<16x192xbf16>, vector<192x64xbf16>, vector<16x64xf32> -> vector<16x64xf32>
    %190 = vector.broadcast %172 : vector<1x64xf32> to vector<16x64xf32>
    %191 = arith.addf %189, %190 : vector<16x64xf32>
    %cst_72 = arith.constant 5.000000e-01 : f32
    %192 = vector.broadcast %cst_72 : f32 to vector<16x64xf32>
    %193 = arith.mulf %192, %191 : vector<16x64xf32>
    %cst_73 = arith.constant 4.471500e-02 : f32
    %194 = vector.broadcast %cst_73 : f32 to vector<16x64xf32>
    %195 = arith.mulf %194, %191 : vector<16x64xf32>
    %196 = arith.mulf %195, %191 : vector<16x64xf32>
    %197 = arith.mulf %196, %191 : vector<16x64xf32>
    %198 = arith.addf %191, %197 : vector<16x64xf32>
    %cst_74 = arith.constant 0.797884583 : f32
    %199 = vector.broadcast %cst_74 : f32 to vector<16x64xf32>
    %200 = arith.mulf %199, %198 : vector<16x64xf32>
    %201 = math.tanh %200 : vector<16x64xf32>
    %cst_75 = arith.constant 1.000000e+00 : f32
    %202 = vector.broadcast %cst_75 : f32 to vector<16x64xf32>
    %203 = arith.addf %202, %201 : vector<16x64xf32>
    %204 = arith.mulf %193, %203 : vector<16x64xf32>
    %c3 = arith.constant 3 : index
    %c0_76 = arith.constant 0 : index
    %c0_77 = arith.constant 0 : index
    %205 = vector.load %arg4[%c3, %c0_76, %c0_77] : memref<6x192x64xbf16, #tpu.memory_space<vmem>>, vector<1x192x64xbf16>
    %206 = vector.shape_cast %205 : vector<1x192x64xbf16> to vector<192x64xbf16>
    %c3_78 = arith.constant 3 : index
    %c0_79 = arith.constant 0 : index
    %c0_80 = arith.constant 0 : index
    %207 = vector.load %arg6[%c3_78, %c0_79, %c0_80] : memref<20x1x64xf32, #tpu.memory_space<vmem>>, vector<1x1x64xf32>
    %208 = vector.shape_cast %207 : vector<1x1x64xf32> to vector<1x64xf32>
    %cst_81 = arith.constant 0.000000e+00 : f32
    %209 = vector.broadcast %cst_81 : f32 to vector<2x64xf32>
    %210 = vector.extract_strided_slice %204 {offsets = [0, 0], sizes = [14, 64], strides = [1, 1]} : vector<16x64xf32> to vector<14x64xf32>
    %211 = tpu.concatenate %209, %210 in 0 : vector<2x64xf32>, vector<14x64xf32> -> vector<16x64xf32>
    %cst_82 = arith.constant 0.000000e+00 : f32
    %212 = vector.shape_cast %46 : vector<16x1xi1> to vector<16x1xi1>
    %213 = vector.broadcast %212 : vector<16x1xi1> to vector<16x64xi1>
    %214 = vector.broadcast %cst_82 : f32 to vector<16x64xf32>
    %215 = arith.select %213, %211, %214 : vector<16x64xi1>, vector<16x64xf32>
    %cst_83 = arith.constant 0.000000e+00 : f32
    %216 = vector.broadcast %cst_83 : f32 to vector<2x64xf32>
    %217 = vector.extract_strided_slice %204 {offsets = [2, 0], sizes = [14, 64], strides = [1, 1]} : vector<16x64xf32> to vector<14x64xf32>
    %218 = tpu.concatenate %217, %216 in 0 : vector<14x64xf32>, vector<2x64xf32> -> vector<16x64xf32>
    %cst_84 = arith.constant 0.000000e+00 : f32
    %219 = vector.shape_cast %73 : vector<16x1xi1> to vector<16x1xi1>
    %220 = vector.broadcast %219 : vector<16x1xi1> to vector<16x64xi1>
    %221 = vector.broadcast %cst_84 : f32 to vector<16x64xf32>
    %222 = arith.select %220, %218, %221 : vector<16x64xi1>, vector<16x64xf32>
    %223 = tpu.concatenate %215, %204, %222 in 1 : vector<16x64xf32>, vector<16x64xf32>, vector<16x64xf32> -> vector<16x192xf32>
    %224 = arith.truncf %223 : vector<16x192xf32> to vector<16x192xbf16>
    %cst_85 = arith.constant dense<0.000000e+00> : vector<16x64xf32>
    %225 = tpu.matmul %224, %206, %cst_85 {dimension_numbers = #tpu.dot_dimension_numbers<[1], [0], [0], [1], [0, 0, 1, 1], [], []>} : vector<16x192xbf16>, vector<192x64xbf16>, vector<16x64xf32> -> vector<16x64xf32>
    %226 = vector.broadcast %208 : vector<1x64xf32> to vector<16x64xf32>
    %227 = arith.addf %225, %226 : vector<16x64xf32>
    %228 = arith.addf %227, %155 : vector<16x64xf32>
    %cst_86 = arith.constant 5.000000e-01 : f32
    %229 = vector.broadcast %cst_86 : f32 to vector<16x64xf32>
    %230 = arith.mulf %229, %228 : vector<16x64xf32>
    %cst_87 = arith.constant 4.471500e-02 : f32
    %231 = vector.broadcast %cst_87 : f32 to vector<16x64xf32>
    %232 = arith.mulf %231, %228 : vector<16x64xf32>
    %233 = arith.mulf %232, %228 : vector<16x64xf32>
    %234 = arith.mulf %233, %228 : vector<16x64xf32>
    %235 = arith.addf %228, %234 : vector<16x64xf32>
    %cst_88 = arith.constant 0.797884583 : f32
    %236 = vector.broadcast %cst_88 : f32 to vector<16x64xf32>
    %237 = arith.mulf %236, %235 : vector<16x64xf32>
    %238 = math.tanh %237 : vector<16x64xf32>
    %cst_89 = arith.constant 1.000000e+00 : f32
    %239 = vector.broadcast %cst_89 : f32 to vector<16x64xf32>
    %240 = arith.addf %239, %238 : vector<16x64xf32>
    %241 = arith.mulf %230, %240 : vector<16x64xf32>
    %c4 = arith.constant 4 : index
    %c0_90 = arith.constant 0 : index
    %c0_91 = arith.constant 0 : index
    %242 = vector.load %arg4[%c4, %c0_90, %c0_91] : memref<6x192x64xbf16, #tpu.memory_space<vmem>>, vector<1x192x64xbf16>
    %243 = vector.shape_cast %242 : vector<1x192x64xbf16> to vector<192x64xbf16>
    %c4_92 = arith.constant 4 : index
    %c0_93 = arith.constant 0 : index
    %c0_94 = arith.constant 0 : index
    %244 = vector.load %arg6[%c4_92, %c0_93, %c0_94] : memref<20x1x64xf32, #tpu.memory_space<vmem>>, vector<1x1x64xf32>
    %245 = vector.shape_cast %244 : vector<1x1x64xf32> to vector<1x64xf32>
    %cst_95 = arith.constant 0.000000e+00 : f32
    %246 = vector.broadcast %cst_95 : f32 to vector<4x64xf32>
    %247 = vector.extract_strided_slice %241 {offsets = [0, 0], sizes = [12, 64], strides = [1, 1]} : vector<16x64xf32> to vector<12x64xf32>
    %248 = tpu.concatenate %246, %247 in 0 : vector<4x64xf32>, vector<12x64xf32> -> vector<16x64xf32>
    %cst_96 = arith.constant 0.000000e+00 : f32
    %249 = vector.shape_cast %37 : vector<16x1xi1> to vector<16x1xi1>
    %250 = vector.broadcast %249 : vector<16x1xi1> to vector<16x64xi1>
    %251 = vector.broadcast %cst_96 : f32 to vector<16x64xf32>
    %252 = arith.select %250, %248, %251 : vector<16x64xi1>, vector<16x64xf32>
    %cst_97 = arith.constant 0.000000e+00 : f32
    %253 = vector.broadcast %cst_97 : f32 to vector<4x64xf32>
    %254 = vector.extract_strided_slice %241 {offsets = [4, 0], sizes = [12, 64], strides = [1, 1]} : vector<16x64xf32> to vector<12x64xf32>
    %255 = tpu.concatenate %254, %253 in 0 : vector<12x64xf32>, vector<4x64xf32> -> vector<16x64xf32>
    %cst_98 = arith.constant 0.000000e+00 : f32
    %256 = vector.shape_cast %82 : vector<16x1xi1> to vector<16x1xi1>
    %257 = vector.broadcast %256 : vector<16x1xi1> to vector<16x64xi1>
    %258 = vector.broadcast %cst_98 : f32 to vector<16x64xf32>
    %259 = arith.select %257, %255, %258 : vector<16x64xi1>, vector<16x64xf32>
    %260 = tpu.concatenate %252, %241, %259 in 1 : vector<16x64xf32>, vector<16x64xf32>, vector<16x64xf32> -> vector<16x192xf32>
    %261 = arith.truncf %260 : vector<16x192xf32> to vector<16x192xbf16>
    %cst_99 = arith.constant dense<0.000000e+00> : vector<16x64xf32>
    %262 = tpu.matmul %261, %243, %cst_99 {dimension_numbers = #tpu.dot_dimension_numbers<[1], [0], [0], [1], [0, 0, 1, 1], [], []>} : vector<16x192xbf16>, vector<192x64xbf16>, vector<16x64xf32> -> vector<16x64xf32>
    %263 = vector.broadcast %245 : vector<1x64xf32> to vector<16x64xf32>
    %264 = arith.addf %262, %263 : vector<16x64xf32>
    %cst_100 = arith.constant 5.000000e-01 : f32
    %265 = vector.broadcast %cst_100 : f32 to vector<16x64xf32>
    %266 = arith.mulf %265, %264 : vector<16x64xf32>
    %cst_101 = arith.constant 4.471500e-02 : f32
    %267 = vector.broadcast %cst_101 : f32 to vector<16x64xf32>
    %268 = arith.mulf %267, %264 : vector<16x64xf32>
    %269 = arith.mulf %268, %264 : vector<16x64xf32>
    %270 = arith.mulf %269, %264 : vector<16x64xf32>
    %271 = arith.addf %264, %270 : vector<16x64xf32>
    %cst_102 = arith.constant 0.797884583 : f32
    %272 = vector.broadcast %cst_102 : f32 to vector<16x64xf32>
    %273 = arith.mulf %272, %271 : vector<16x64xf32>
    %274 = math.tanh %273 : vector<16x64xf32>
    %cst_103 = arith.constant 1.000000e+00 : f32
    %275 = vector.broadcast %cst_103 : f32 to vector<16x64xf32>
    %276 = arith.addf %275, %274 : vector<16x64xf32>
    %277 = arith.mulf %266, %276 : vector<16x64xf32>
    %c5 = arith.constant 5 : index
    %c0_104 = arith.constant 0 : index
    %c0_105 = arith.constant 0 : index
    %278 = vector.load %arg4[%c5, %c0_104, %c0_105] : memref<6x192x64xbf16, #tpu.memory_space<vmem>>, vector<1x192x64xbf16>
    %279 = vector.shape_cast %278 : vector<1x192x64xbf16> to vector<192x64xbf16>
    %c5_106 = arith.constant 5 : index
    %c0_107 = arith.constant 0 : index
    %c0_108 = arith.constant 0 : index
    %280 = vector.load %arg6[%c5_106, %c0_107, %c0_108] : memref<20x1x64xf32, #tpu.memory_space<vmem>>, vector<1x1x64xf32>
    %281 = vector.shape_cast %280 : vector<1x1x64xf32> to vector<1x64xf32>
    %cst_109 = arith.constant 0.000000e+00 : f32
    %282 = vector.broadcast %cst_109 : f32 to vector<4x64xf32>
    %283 = vector.extract_strided_slice %277 {offsets = [0, 0], sizes = [12, 64], strides = [1, 1]} : vector<16x64xf32> to vector<12x64xf32>
    %284 = tpu.concatenate %282, %283 in 0 : vector<4x64xf32>, vector<12x64xf32> -> vector<16x64xf32>
    %cst_110 = arith.constant 0.000000e+00 : f32
    %285 = vector.shape_cast %37 : vector<16x1xi1> to vector<16x1xi1>
    %286 = vector.broadcast %285 : vector<16x1xi1> to vector<16x64xi1>
    %287 = vector.broadcast %cst_110 : f32 to vector<16x64xf32>
    %288 = arith.select %286, %284, %287 : vector<16x64xi1>, vector<16x64xf32>
    %cst_111 = arith.constant 0.000000e+00 : f32
    %289 = vector.broadcast %cst_111 : f32 to vector<4x64xf32>
    %290 = vector.extract_strided_slice %277 {offsets = [4, 0], sizes = [12, 64], strides = [1, 1]} : vector<16x64xf32> to vector<12x64xf32>
    %291 = tpu.concatenate %290, %289 in 0 : vector<12x64xf32>, vector<4x64xf32> -> vector<16x64xf32>
    %cst_112 = arith.constant 0.000000e+00 : f32
    %292 = vector.shape_cast %82 : vector<16x1xi1> to vector<16x1xi1>
    %293 = vector.broadcast %292 : vector<16x1xi1> to vector<16x64xi1>
    %294 = vector.broadcast %cst_112 : f32 to vector<16x64xf32>
    %295 = arith.select %293, %291, %294 : vector<16x64xi1>, vector<16x64xf32>
    %296 = tpu.concatenate %288, %277, %295 in 1 : vector<16x64xf32>, vector<16x64xf32>, vector<16x64xf32> -> vector<16x192xf32>
    %297 = arith.truncf %296 : vector<16x192xf32> to vector<16x192xbf16>
    %cst_113 = arith.constant dense<0.000000e+00> : vector<16x64xf32>
    %298 = tpu.matmul %297, %279, %cst_113 {dimension_numbers = #tpu.dot_dimension_numbers<[1], [0], [0], [1], [0, 0, 1, 1], [], []>} : vector<16x192xbf16>, vector<192x64xbf16>, vector<16x64xf32> -> vector<16x64xf32>
    %299 = vector.broadcast %281 : vector<1x64xf32> to vector<16x64xf32>
    %300 = arith.addf %298, %299 : vector<16x64xf32>
    %301 = arith.addf %300, %228 : vector<16x64xf32>
    %cst_114 = arith.constant 5.000000e-01 : f32
    %302 = vector.broadcast %cst_114 : f32 to vector<16x64xf32>
    %303 = arith.mulf %302, %301 : vector<16x64xf32>
    %cst_115 = arith.constant 4.471500e-02 : f32
    %304 = vector.broadcast %cst_115 : f32 to vector<16x64xf32>
    %305 = arith.mulf %304, %301 : vector<16x64xf32>
    %306 = arith.mulf %305, %301 : vector<16x64xf32>
    %307 = arith.mulf %306, %301 : vector<16x64xf32>
    %308 = arith.addf %301, %307 : vector<16x64xf32>
    %cst_116 = arith.constant 0.797884583 : f32
    %309 = vector.broadcast %cst_116 : f32 to vector<16x64xf32>
    %310 = arith.mulf %309, %308 : vector<16x64xf32>
    %311 = math.tanh %310 : vector<16x64xf32>
    %cst_117 = arith.constant 1.000000e+00 : f32
    %312 = vector.broadcast %cst_117 : f32 to vector<16x64xf32>
    %313 = arith.addf %312, %311 : vector<16x64xf32>
    %314 = arith.mulf %303, %313 : vector<16x64xf32>
    %c0_118 = arith.constant 0 : index
    %c0_119 = arith.constant 0 : index
    %c0_120 = arith.constant 0 : index
    %315 = vector.load %arg5[%c0_118, %c0_119, %c0_120] : memref<14x64x64xbf16, #tpu.memory_space<vmem>>, vector<1x64x64xbf16>
    %316 = vector.shape_cast %315 : vector<1x64x64xbf16> to vector<64x64xbf16>
    %c6 = arith.constant 6 : index
    %c0_121 = arith.constant 0 : index
    %c0_122 = arith.constant 0 : index
    %317 = vector.load %arg6[%c6, %c0_121, %c0_122] : memref<20x1x64xf32, #tpu.memory_space<vmem>>, vector<1x1x64xf32>
    %318 = vector.shape_cast %317 : vector<1x1x64xf32> to vector<1x64xf32>
    %319 = arith.truncf %314 : vector<16x64xf32> to vector<16x64xbf16>
    %cst_123 = arith.constant dense<0.000000e+00> : vector<16x64xf32>
    %320 = tpu.matmul %319, %316, %cst_123 {dimension_numbers = #tpu.dot_dimension_numbers<[1], [0], [0], [1], [0, 0, 1, 1], [], []>} : vector<16x64xbf16>, vector<64x64xbf16>, vector<16x64xf32> -> vector<16x64xf32>
    %321 = vector.broadcast %318 : vector<1x64xf32> to vector<16x64xf32>
    %322 = arith.addf %320, %321 : vector<16x64xf32>
    %cst_124 = arith.constant 5.000000e-01 : f32
    %323 = vector.broadcast %cst_124 : f32 to vector<16x64xf32>
    %324 = arith.mulf %323, %322 : vector<16x64xf32>
    %cst_125 = arith.constant 4.471500e-02 : f32
    %325 = vector.broadcast %cst_125 : f32 to vector<16x64xf32>
    %326 = arith.mulf %325, %322 : vector<16x64xf32>
    %327 = arith.mulf %326, %322 : vector<16x64xf32>
    %328 = arith.mulf %327, %322 : vector<16x64xf32>
    %329 = arith.addf %322, %328 : vector<16x64xf32>
    %cst_126 = arith.constant 0.797884583 : f32
    %330 = vector.broadcast %cst_126 : f32 to vector<16x64xf32>
    %331 = arith.mulf %330, %329 : vector<16x64xf32>
    %332 = math.tanh %331 : vector<16x64xf32>
    %cst_127 = arith.constant 1.000000e+00 : f32
    %333 = vector.broadcast %cst_127 : f32 to vector<16x64xf32>
    %334 = arith.addf %333, %332 : vector<16x64xf32>
    %335 = arith.mulf %324, %334 : vector<16x64xf32>
    %c1_128 = arith.constant 1 : index
    %c0_129 = arith.constant 0 : index
    %c0_130 = arith.constant 0 : index
    %336 = vector.load %arg5[%c1_128, %c0_129, %c0_130] : memref<14x64x64xbf16, #tpu.memory_space<vmem>>, vector<1x64x64xbf16>
    %337 = vector.shape_cast %336 : vector<1x64x64xbf16> to vector<64x64xbf16>
    %c7 = arith.constant 7 : index
    %c0_131 = arith.constant 0 : index
    %c0_132 = arith.constant 0 : index
    %338 = vector.load %arg6[%c7, %c0_131, %c0_132] : memref<20x1x64xf32, #tpu.memory_space<vmem>>, vector<1x1x64xf32>
    %339 = vector.shape_cast %338 : vector<1x1x64xf32> to vector<1x64xf32>
    %340 = arith.truncf %335 : vector<16x64xf32> to vector<16x64xbf16>
    %cst_133 = arith.constant dense<0.000000e+00> : vector<16x64xf32>
    %341 = tpu.matmul %340, %337, %cst_133 {dimension_numbers = #tpu.dot_dimension_numbers<[1], [0], [0], [1], [0, 0, 1, 1], [], []>} : vector<16x64xbf16>, vector<64x64xbf16>, vector<16x64xf32> -> vector<16x64xf32>
    %342 = vector.broadcast %339 : vector<1x64xf32> to vector<16x64xf32>
    %343 = arith.addf %341, %342 : vector<16x64xf32>
    %344 = arith.addf %343, %301 : vector<16x64xf32>
    %cst_134 = arith.constant 5.000000e-01 : f32
    %345 = vector.broadcast %cst_134 : f32 to vector<16x64xf32>
    %346 = arith.mulf %345, %344 : vector<16x64xf32>
    %cst_135 = arith.constant 4.471500e-02 : f32
    %347 = vector.broadcast %cst_135 : f32 to vector<16x64xf32>
    %348 = arith.mulf %347, %344 : vector<16x64xf32>
    %349 = arith.mulf %348, %344 : vector<16x64xf32>
    %350 = arith.mulf %349, %344 : vector<16x64xf32>
    %351 = arith.addf %344, %350 : vector<16x64xf32>
    %cst_136 = arith.constant 0.797884583 : f32
    %352 = vector.broadcast %cst_136 : f32 to vector<16x64xf32>
    %353 = arith.mulf %352, %351 : vector<16x64xf32>
    %354 = math.tanh %353 : vector<16x64xf32>
    %cst_137 = arith.constant 1.000000e+00 : f32
    %355 = vector.broadcast %cst_137 : f32 to vector<16x64xf32>
    %356 = arith.addf %355, %354 : vector<16x64xf32>
    %357 = arith.mulf %346, %356 : vector<16x64xf32>
    %c2_138 = arith.constant 2 : index
    %c0_139 = arith.constant 0 : index
    %c0_140 = arith.constant 0 : index
    %358 = vector.load %arg5[%c2_138, %c0_139, %c0_140] : memref<14x64x64xbf16, #tpu.memory_space<vmem>>, vector<1x64x64xbf16>
    %359 = vector.shape_cast %358 : vector<1x64x64xbf16> to vector<64x64xbf16>
    %c8 = arith.constant 8 : index
    %c0_141 = arith.constant 0 : index
    %c0_142 = arith.constant 0 : index
    %360 = vector.load %arg6[%c8, %c0_141, %c0_142] : memref<20x1x64xf32, #tpu.memory_space<vmem>>, vector<1x1x64xf32>
    %361 = vector.shape_cast %360 : vector<1x1x64xf32> to vector<1x64xf32>
    %362 = arith.truncf %357 : vector<16x64xf32> to vector<16x64xbf16>
    %cst_143 = arith.constant dense<0.000000e+00> : vector<16x64xf32>
    %363 = tpu.matmul %362, %359, %cst_143 {dimension_numbers = #tpu.dot_dimension_numbers<[1], [0], [0], [1], [0, 0, 1, 1], [], []>} : vector<16x64xbf16>, vector<64x64xbf16>, vector<16x64xf32> -> vector<16x64xf32>
    %364 = vector.broadcast %361 : vector<1x64xf32> to vector<16x64xf32>
    %365 = arith.addf %363, %364 : vector<16x64xf32>
    %cst_144 = arith.constant 5.000000e-01 : f32
    %366 = vector.broadcast %cst_144 : f32 to vector<16x64xf32>
    %367 = arith.mulf %366, %365 : vector<16x64xf32>
    %cst_145 = arith.constant 4.471500e-02 : f32
    %368 = vector.broadcast %cst_145 : f32 to vector<16x64xf32>
    %369 = arith.mulf %368, %365 : vector<16x64xf32>
    %370 = arith.mulf %369, %365 : vector<16x64xf32>
    %371 = arith.mulf %370, %365 : vector<16x64xf32>
    %372 = arith.addf %365, %371 : vector<16x64xf32>
    %cst_146 = arith.constant 0.797884583 : f32
    %373 = vector.broadcast %cst_146 : f32 to vector<16x64xf32>
    %374 = arith.mulf %373, %372 : vector<16x64xf32>
    %375 = math.tanh %374 : vector<16x64xf32>
    %cst_147 = arith.constant 1.000000e+00 : f32
    %376 = vector.broadcast %cst_147 : f32 to vector<16x64xf32>
    %377 = arith.addf %376, %375 : vector<16x64xf32>
    %378 = arith.mulf %367, %377 : vector<16x64xf32>
    %c3_148 = arith.constant 3 : index
    %c0_149 = arith.constant 0 : index
    %c0_150 = arith.constant 0 : index
    %379 = vector.load %arg5[%c3_148, %c0_149, %c0_150] : memref<14x64x64xbf16, #tpu.memory_space<vmem>>, vector<1x64x64xbf16>
    %380 = vector.shape_cast %379 : vector<1x64x64xbf16> to vector<64x64xbf16>
    %c9 = arith.constant 9 : index
    %c0_151 = arith.constant 0 : index
    %c0_152 = arith.constant 0 : index
    %381 = vector.load %arg6[%c9, %c0_151, %c0_152] : memref<20x1x64xf32, #tpu.memory_space<vmem>>, vector<1x1x64xf32>
    %382 = vector.shape_cast %381 : vector<1x1x64xf32> to vector<1x64xf32>
    %383 = arith.truncf %378 : vector<16x64xf32> to vector<16x64xbf16>
    %cst_153 = arith.constant dense<0.000000e+00> : vector<16x64xf32>
    %384 = tpu.matmul %383, %380, %cst_153 {dimension_numbers = #tpu.dot_dimension_numbers<[1], [0], [0], [1], [0, 0, 1, 1], [], []>} : vector<16x64xbf16>, vector<64x64xbf16>, vector<16x64xf32> -> vector<16x64xf32>
    %385 = vector.broadcast %382 : vector<1x64xf32> to vector<16x64xf32>
    %386 = arith.addf %384, %385 : vector<16x64xf32>
    %387 = arith.addf %386, %344 : vector<16x64xf32>
    %cst_154 = arith.constant 5.000000e-01 : f32
    %388 = vector.broadcast %cst_154 : f32 to vector<16x64xf32>
    %389 = arith.mulf %388, %387 : vector<16x64xf32>
    %cst_155 = arith.constant 4.471500e-02 : f32
    %390 = vector.broadcast %cst_155 : f32 to vector<16x64xf32>
    %391 = arith.mulf %390, %387 : vector<16x64xf32>
    %392 = arith.mulf %391, %387 : vector<16x64xf32>
    %393 = arith.mulf %392, %387 : vector<16x64xf32>
    %394 = arith.addf %387, %393 : vector<16x64xf32>
    %cst_156 = arith.constant 0.797884583 : f32
    %395 = vector.broadcast %cst_156 : f32 to vector<16x64xf32>
    %396 = arith.mulf %395, %394 : vector<16x64xf32>
    %397 = math.tanh %396 : vector<16x64xf32>
    %cst_157 = arith.constant 1.000000e+00 : f32
    %398 = vector.broadcast %cst_157 : f32 to vector<16x64xf32>
    %399 = arith.addf %398, %397 : vector<16x64xf32>
    %400 = arith.mulf %389, %399 : vector<16x64xf32>
    %c4_158 = arith.constant 4 : index
    %c0_159 = arith.constant 0 : index
    %c0_160 = arith.constant 0 : index
    %401 = vector.load %arg5[%c4_158, %c0_159, %c0_160] : memref<14x64x64xbf16, #tpu.memory_space<vmem>>, vector<1x64x64xbf16>
    %402 = vector.shape_cast %401 : vector<1x64x64xbf16> to vector<64x64xbf16>
    %c10 = arith.constant 10 : index
    %c0_161 = arith.constant 0 : index
    %c0_162 = arith.constant 0 : index
    %403 = vector.load %arg6[%c10, %c0_161, %c0_162] : memref<20x1x64xf32, #tpu.memory_space<vmem>>, vector<1x1x64xf32>
    %404 = vector.shape_cast %403 : vector<1x1x64xf32> to vector<1x64xf32>
    %405 = arith.truncf %400 : vector<16x64xf32> to vector<16x64xbf16>
    %cst_163 = arith.constant dense<0.000000e+00> : vector<16x64xf32>
    %406 = tpu.matmul %405, %402, %cst_163 {dimension_numbers = #tpu.dot_dimension_numbers<[1], [0], [0], [1], [0, 0, 1, 1], [], []>} : vector<16x64xbf16>, vector<64x64xbf16>, vector<16x64xf32> -> vector<16x64xf32>
    %407 = vector.broadcast %404 : vector<1x64xf32> to vector<16x64xf32>
    %408 = arith.addf %406, %407 : vector<16x64xf32>
    %cst_164 = arith.constant 5.000000e-01 : f32
    %409 = vector.broadcast %cst_164 : f32 to vector<16x64xf32>
    %410 = arith.mulf %409, %408 : vector<16x64xf32>
    %cst_165 = arith.constant 4.471500e-02 : f32
    %411 = vector.broadcast %cst_165 : f32 to vector<16x64xf32>
    %412 = arith.mulf %411, %408 : vector<16x64xf32>
    %413 = arith.mulf %412, %408 : vector<16x64xf32>
    %414 = arith.mulf %413, %408 : vector<16x64xf32>
    %415 = arith.addf %408, %414 : vector<16x64xf32>
    %cst_166 = arith.constant 0.797884583 : f32
    %416 = vector.broadcast %cst_166 : f32 to vector<16x64xf32>
    %417 = arith.mulf %416, %415 : vector<16x64xf32>
    %418 = math.tanh %417 : vector<16x64xf32>
    %cst_167 = arith.constant 1.000000e+00 : f32
    %419 = vector.broadcast %cst_167 : f32 to vector<16x64xf32>
    %420 = arith.addf %419, %418 : vector<16x64xf32>
    %421 = arith.mulf %410, %420 : vector<16x64xf32>
    %c5_168 = arith.constant 5 : index
    %c0_169 = arith.constant 0 : index
    %c0_170 = arith.constant 0 : index
    %422 = vector.load %arg5[%c5_168, %c0_169, %c0_170] : memref<14x64x64xbf16, #tpu.memory_space<vmem>>, vector<1x64x64xbf16>
    %423 = vector.shape_cast %422 : vector<1x64x64xbf16> to vector<64x64xbf16>
    %c11 = arith.constant 11 : index
    %c0_171 = arith.constant 0 : index
    %c0_172 = arith.constant 0 : index
    %424 = vector.load %arg6[%c11, %c0_171, %c0_172] : memref<20x1x64xf32, #tpu.memory_space<vmem>>, vector<1x1x64xf32>
    %425 = vector.shape_cast %424 : vector<1x1x64xf32> to vector<1x64xf32>
    %426 = arith.truncf %421 : vector<16x64xf32> to vector<16x64xbf16>
    %cst_173 = arith.constant dense<0.000000e+00> : vector<16x64xf32>
    %427 = tpu.matmul %426, %423, %cst_173 {dimension_numbers = #tpu.dot_dimension_numbers<[1], [0], [0], [1], [0, 0, 1, 1], [], []>} : vector<16x64xbf16>, vector<64x64xbf16>, vector<16x64xf32> -> vector<16x64xf32>
    %428 = vector.broadcast %425 : vector<1x64xf32> to vector<16x64xf32>
    %429 = arith.addf %427, %428 : vector<16x64xf32>
    %430 = arith.addf %429, %387 : vector<16x64xf32>
    %cst_174 = arith.constant 5.000000e-01 : f32
    %431 = vector.broadcast %cst_174 : f32 to vector<16x64xf32>
    %432 = arith.mulf %431, %430 : vector<16x64xf32>
    %cst_175 = arith.constant 4.471500e-02 : f32
    %433 = vector.broadcast %cst_175 : f32 to vector<16x64xf32>
    %434 = arith.mulf %433, %430 : vector<16x64xf32>
    %435 = arith.mulf %434, %430 : vector<16x64xf32>
    %436 = arith.mulf %435, %430 : vector<16x64xf32>
    %437 = arith.addf %430, %436 : vector<16x64xf32>
    %cst_176 = arith.constant 0.797884583 : f32
    %438 = vector.broadcast %cst_176 : f32 to vector<16x64xf32>
    %439 = arith.mulf %438, %437 : vector<16x64xf32>
    %440 = math.tanh %439 : vector<16x64xf32>
    %cst_177 = arith.constant 1.000000e+00 : f32
    %441 = vector.broadcast %cst_177 : f32 to vector<16x64xf32>
    %442 = arith.addf %441, %440 : vector<16x64xf32>
    %443 = arith.mulf %432, %442 : vector<16x64xf32>
    %c6_178 = arith.constant 6 : index
    %c0_179 = arith.constant 0 : index
    %c0_180 = arith.constant 0 : index
    %444 = vector.load %arg5[%c6_178, %c0_179, %c0_180] : memref<14x64x64xbf16, #tpu.memory_space<vmem>>, vector<1x64x64xbf16>
    %445 = vector.shape_cast %444 : vector<1x64x64xbf16> to vector<64x64xbf16>
    %c12 = arith.constant 12 : index
    %c0_181 = arith.constant 0 : index
    %c0_182 = arith.constant 0 : index
    %446 = vector.load %arg6[%c12, %c0_181, %c0_182] : memref<20x1x64xf32, #tpu.memory_space<vmem>>, vector<1x1x64xf32>
    %447 = vector.shape_cast %446 : vector<1x1x64xf32> to vector<1x64xf32>
    %448 = arith.truncf %443 : vector<16x64xf32> to vector<16x64xbf16>
    %cst_183 = arith.constant dense<0.000000e+00> : vector<16x64xf32>
    %449 = tpu.matmul %448, %445, %cst_183 {dimension_numbers = #tpu.dot_dimension_numbers<[1], [0], [0], [1], [0, 0, 1, 1], [], []>} : vector<16x64xbf16>, vector<64x64xbf16>, vector<16x64xf32> -> vector<16x64xf32>
    %450 = vector.broadcast %447 : vector<1x64xf32> to vector<16x64xf32>
    %451 = arith.addf %449, %450 : vector<16x64xf32>
    %cst_184 = arith.constant 5.000000e-01 : f32
    %452 = vector.broadcast %cst_184 : f32 to vector<16x64xf32>
    %453 = arith.mulf %452, %451 : vector<16x64xf32>
    %cst_185 = arith.constant 4.471500e-02 : f32
    %454 = vector.broadcast %cst_185 : f32 to vector<16x64xf32>
    %455 = arith.mulf %454, %451 : vector<16x64xf32>
    %456 = arith.mulf %455, %451 : vector<16x64xf32>
    %457 = arith.mulf %456, %451 : vector<16x64xf32>
    %458 = arith.addf %451, %457 : vector<16x64xf32>
    %cst_186 = arith.constant 0.797884583 : f32
    %459 = vector.broadcast %cst_186 : f32 to vector<16x64xf32>
    %460 = arith.mulf %459, %458 : vector<16x64xf32>
    %461 = math.tanh %460 : vector<16x64xf32>
    %cst_187 = arith.constant 1.000000e+00 : f32
    %462 = vector.broadcast %cst_187 : f32 to vector<16x64xf32>
    %463 = arith.addf %462, %461 : vector<16x64xf32>
    %464 = arith.mulf %453, %463 : vector<16x64xf32>
    %c7_188 = arith.constant 7 : index
    %c0_189 = arith.constant 0 : index
    %c0_190 = arith.constant 0 : index
    %465 = vector.load %arg5[%c7_188, %c0_189, %c0_190] : memref<14x64x64xbf16, #tpu.memory_space<vmem>>, vector<1x64x64xbf16>
    %466 = vector.shape_cast %465 : vector<1x64x64xbf16> to vector<64x64xbf16>
    %c13 = arith.constant 13 : index
    %c0_191 = arith.constant 0 : index
    %c0_192 = arith.constant 0 : index
    %467 = vector.load %arg6[%c13, %c0_191, %c0_192] : memref<20x1x64xf32, #tpu.memory_space<vmem>>, vector<1x1x64xf32>
    %468 = vector.shape_cast %467 : vector<1x1x64xf32> to vector<1x64xf32>
    %469 = arith.truncf %464 : vector<16x64xf32> to vector<16x64xbf16>
    %cst_193 = arith.constant dense<0.000000e+00> : vector<16x64xf32>
    %470 = tpu.matmul %469, %466, %cst_193 {dimension_numbers = #tpu.dot_dimension_numbers<[1], [0], [0], [1], [0, 0, 1, 1], [], []>} : vector<16x64xbf16>, vector<64x64xbf16>, vector<16x64xf32> -> vector<16x64xf32>
    %471 = vector.broadcast %468 : vector<1x64xf32> to vector<16x64xf32>
    %472 = arith.addf %470, %471 : vector<16x64xf32>
    %473 = arith.addf %472, %430 : vector<16x64xf32>
    %cst_194 = arith.constant 5.000000e-01 : f32
    %474 = vector.broadcast %cst_194 : f32 to vector<16x64xf32>
    %475 = arith.mulf %474, %473 : vector<16x64xf32>
    %cst_195 = arith.constant 4.471500e-02 : f32
    %476 = vector.broadcast %cst_195 : f32 to vector<16x64xf32>
    %477 = arith.mulf %476, %473 : vector<16x64xf32>
    %478 = arith.mulf %477, %473 : vector<16x64xf32>
    %479 = arith.mulf %478, %473 : vector<16x64xf32>
    %480 = arith.addf %473, %479 : vector<16x64xf32>
    %cst_196 = arith.constant 0.797884583 : f32
    %481 = vector.broadcast %cst_196 : f32 to vector<16x64xf32>
    %482 = arith.mulf %481, %480 : vector<16x64xf32>
    %483 = math.tanh %482 : vector<16x64xf32>
    %cst_197 = arith.constant 1.000000e+00 : f32
    %484 = vector.broadcast %cst_197 : f32 to vector<16x64xf32>
    %485 = arith.addf %484, %483 : vector<16x64xf32>
    %486 = arith.mulf %475, %485 : vector<16x64xf32>
    %c8_198 = arith.constant 8 : index
    %c0_199 = arith.constant 0 : index
    %c0_200 = arith.constant 0 : index
    %487 = vector.load %arg5[%c8_198, %c0_199, %c0_200] : memref<14x64x64xbf16, #tpu.memory_space<vmem>>, vector<1x64x64xbf16>
    %488 = vector.shape_cast %487 : vector<1x64x64xbf16> to vector<64x64xbf16>
    %c14 = arith.constant 14 : index
    %c0_201 = arith.constant 0 : index
    %c0_202 = arith.constant 0 : index
    %489 = vector.load %arg6[%c14, %c0_201, %c0_202] : memref<20x1x64xf32, #tpu.memory_space<vmem>>, vector<1x1x64xf32>
    %490 = vector.shape_cast %489 : vector<1x1x64xf32> to vector<1x64xf32>
    %491 = arith.truncf %486 : vector<16x64xf32> to vector<16x64xbf16>
    %cst_203 = arith.constant dense<0.000000e+00> : vector<16x64xf32>
    %492 = tpu.matmul %491, %488, %cst_203 {dimension_numbers = #tpu.dot_dimension_numbers<[1], [0], [0], [1], [0, 0, 1, 1], [], []>} : vector<16x64xbf16>, vector<64x64xbf16>, vector<16x64xf32> -> vector<16x64xf32>
    %493 = vector.broadcast %490 : vector<1x64xf32> to vector<16x64xf32>
    %494 = arith.addf %492, %493 : vector<16x64xf32>
    %cst_204 = arith.constant 5.000000e-01 : f32
    %495 = vector.broadcast %cst_204 : f32 to vector<16x64xf32>
    %496 = arith.mulf %495, %494 : vector<16x64xf32>
    %cst_205 = arith.constant 4.471500e-02 : f32
    %497 = vector.broadcast %cst_205 : f32 to vector<16x64xf32>
    %498 = arith.mulf %497, %494 : vector<16x64xf32>
    %499 = arith.mulf %498, %494 : vector<16x64xf32>
    %500 = arith.mulf %499, %494 : vector<16x64xf32>
    %501 = arith.addf %494, %500 : vector<16x64xf32>
    %cst_206 = arith.constant 0.797884583 : f32
    %502 = vector.broadcast %cst_206 : f32 to vector<16x64xf32>
    %503 = arith.mulf %502, %501 : vector<16x64xf32>
    %504 = math.tanh %503 : vector<16x64xf32>
    %cst_207 = arith.constant 1.000000e+00 : f32
    %505 = vector.broadcast %cst_207 : f32 to vector<16x64xf32>
    %506 = arith.addf %505, %504 : vector<16x64xf32>
    %507 = arith.mulf %496, %506 : vector<16x64xf32>
    %c9_208 = arith.constant 9 : index
    %c0_209 = arith.constant 0 : index
    %c0_210 = arith.constant 0 : index
    %508 = vector.load %arg5[%c9_208, %c0_209, %c0_210] : memref<14x64x64xbf16, #tpu.memory_space<vmem>>, vector<1x64x64xbf16>
    %509 = vector.shape_cast %508 : vector<1x64x64xbf16> to vector<64x64xbf16>
    %c15 = arith.constant 15 : index
    %c0_211 = arith.constant 0 : index
    %c0_212 = arith.constant 0 : index
    %510 = vector.load %arg6[%c15, %c0_211, %c0_212] : memref<20x1x64xf32, #tpu.memory_space<vmem>>, vector<1x1x64xf32>
    %511 = vector.shape_cast %510 : vector<1x1x64xf32> to vector<1x64xf32>
    %512 = arith.truncf %507 : vector<16x64xf32> to vector<16x64xbf16>
    %cst_213 = arith.constant dense<0.000000e+00> : vector<16x64xf32>
    %513 = tpu.matmul %512, %509, %cst_213 {dimension_numbers = #tpu.dot_dimension_numbers<[1], [0], [0], [1], [0, 0, 1, 1], [], []>} : vector<16x64xbf16>, vector<64x64xbf16>, vector<16x64xf32> -> vector<16x64xf32>
    %514 = vector.broadcast %511 : vector<1x64xf32> to vector<16x64xf32>
    %515 = arith.addf %513, %514 : vector<16x64xf32>
    %516 = arith.addf %515, %473 : vector<16x64xf32>
    %cst_214 = arith.constant 5.000000e-01 : f32
    %517 = vector.broadcast %cst_214 : f32 to vector<16x64xf32>
    %518 = arith.mulf %517, %516 : vector<16x64xf32>
    %cst_215 = arith.constant 4.471500e-02 : f32
    %519 = vector.broadcast %cst_215 : f32 to vector<16x64xf32>
    %520 = arith.mulf %519, %516 : vector<16x64xf32>
    %521 = arith.mulf %520, %516 : vector<16x64xf32>
    %522 = arith.mulf %521, %516 : vector<16x64xf32>
    %523 = arith.addf %516, %522 : vector<16x64xf32>
    %cst_216 = arith.constant 0.797884583 : f32
    %524 = vector.broadcast %cst_216 : f32 to vector<16x64xf32>
    %525 = arith.mulf %524, %523 : vector<16x64xf32>
    %526 = math.tanh %525 : vector<16x64xf32>
    %cst_217 = arith.constant 1.000000e+00 : f32
    %527 = vector.broadcast %cst_217 : f32 to vector<16x64xf32>
    %528 = arith.addf %527, %526 : vector<16x64xf32>
    %529 = arith.mulf %518, %528 : vector<16x64xf32>
    %c10_218 = arith.constant 10 : index
    %c0_219 = arith.constant 0 : index
    %c0_220 = arith.constant 0 : index
    %530 = vector.load %arg5[%c10_218, %c0_219, %c0_220] : memref<14x64x64xbf16, #tpu.memory_space<vmem>>, vector<1x64x64xbf16>
    %531 = vector.shape_cast %530 : vector<1x64x64xbf16> to vector<64x64xbf16>
    %c16 = arith.constant 16 : index
    %c0_221 = arith.constant 0 : index
    %c0_222 = arith.constant 0 : index
    %532 = vector.load %arg6[%c16, %c0_221, %c0_222] : memref<20x1x64xf32, #tpu.memory_space<vmem>>, vector<1x1x64xf32>
    %533 = vector.shape_cast %532 : vector<1x1x64xf32> to vector<1x64xf32>
    %534 = arith.truncf %529 : vector<16x64xf32> to vector<16x64xbf16>
    %cst_223 = arith.constant dense<0.000000e+00> : vector<16x64xf32>
    %535 = tpu.matmul %534, %531, %cst_223 {dimension_numbers = #tpu.dot_dimension_numbers<[1], [0], [0], [1], [0, 0, 1, 1], [], []>} : vector<16x64xbf16>, vector<64x64xbf16>, vector<16x64xf32> -> vector<16x64xf32>
    %536 = vector.broadcast %533 : vector<1x64xf32> to vector<16x64xf32>
    %537 = arith.addf %535, %536 : vector<16x64xf32>
    %cst_224 = arith.constant 5.000000e-01 : f32
    %538 = vector.broadcast %cst_224 : f32 to vector<16x64xf32>
    %539 = arith.mulf %538, %537 : vector<16x64xf32>
    %cst_225 = arith.constant 4.471500e-02 : f32
    %540 = vector.broadcast %cst_225 : f32 to vector<16x64xf32>
    %541 = arith.mulf %540, %537 : vector<16x64xf32>
    %542 = arith.mulf %541, %537 : vector<16x64xf32>
    %543 = arith.mulf %542, %537 : vector<16x64xf32>
    %544 = arith.addf %537, %543 : vector<16x64xf32>
    %cst_226 = arith.constant 0.797884583 : f32
    %545 = vector.broadcast %cst_226 : f32 to vector<16x64xf32>
    %546 = arith.mulf %545, %544 : vector<16x64xf32>
    %547 = math.tanh %546 : vector<16x64xf32>
    %cst_227 = arith.constant 1.000000e+00 : f32
    %548 = vector.broadcast %cst_227 : f32 to vector<16x64xf32>
    %549 = arith.addf %548, %547 : vector<16x64xf32>
    %550 = arith.mulf %539, %549 : vector<16x64xf32>
    %c11_228 = arith.constant 11 : index
    %c0_229 = arith.constant 0 : index
    %c0_230 = arith.constant 0 : index
    %551 = vector.load %arg5[%c11_228, %c0_229, %c0_230] : memref<14x64x64xbf16, #tpu.memory_space<vmem>>, vector<1x64x64xbf16>
    %552 = vector.shape_cast %551 : vector<1x64x64xbf16> to vector<64x64xbf16>
    %c17 = arith.constant 17 : index
    %c0_231 = arith.constant 0 : index
    %c0_232 = arith.constant 0 : index
    %553 = vector.load %arg6[%c17, %c0_231, %c0_232] : memref<20x1x64xf32, #tpu.memory_space<vmem>>, vector<1x1x64xf32>
    %554 = vector.shape_cast %553 : vector<1x1x64xf32> to vector<1x64xf32>
    %555 = arith.truncf %550 : vector<16x64xf32> to vector<16x64xbf16>
    %cst_233 = arith.constant dense<0.000000e+00> : vector<16x64xf32>
    %556 = tpu.matmul %555, %552, %cst_233 {dimension_numbers = #tpu.dot_dimension_numbers<[1], [0], [0], [1], [0, 0, 1, 1], [], []>} : vector<16x64xbf16>, vector<64x64xbf16>, vector<16x64xf32> -> vector<16x64xf32>
    %557 = vector.broadcast %554 : vector<1x64xf32> to vector<16x64xf32>
    %558 = arith.addf %556, %557 : vector<16x64xf32>
    %559 = arith.addf %558, %516 : vector<16x64xf32>
    %cst_234 = arith.constant 5.000000e-01 : f32
    %560 = vector.broadcast %cst_234 : f32 to vector<16x64xf32>
    %561 = arith.mulf %560, %559 : vector<16x64xf32>
    %cst_235 = arith.constant 4.471500e-02 : f32
    %562 = vector.broadcast %cst_235 : f32 to vector<16x64xf32>
    %563 = arith.mulf %562, %559 : vector<16x64xf32>
    %564 = arith.mulf %563, %559 : vector<16x64xf32>
    %565 = arith.mulf %564, %559 : vector<16x64xf32>
    %566 = arith.addf %559, %565 : vector<16x64xf32>
    %cst_236 = arith.constant 0.797884583 : f32
    %567 = vector.broadcast %cst_236 : f32 to vector<16x64xf32>
    %568 = arith.mulf %567, %566 : vector<16x64xf32>
    %569 = math.tanh %568 : vector<16x64xf32>
    %cst_237 = arith.constant 1.000000e+00 : f32
    %570 = vector.broadcast %cst_237 : f32 to vector<16x64xf32>
    %571 = arith.addf %570, %569 : vector<16x64xf32>
    %572 = arith.mulf %561, %571 : vector<16x64xf32>
    %c12_238 = arith.constant 12 : index
    %c0_239 = arith.constant 0 : index
    %c0_240 = arith.constant 0 : index
    %573 = vector.load %arg5[%c12_238, %c0_239, %c0_240] : memref<14x64x64xbf16, #tpu.memory_space<vmem>>, vector<1x64x64xbf16>
    %574 = vector.shape_cast %573 : vector<1x64x64xbf16> to vector<64x64xbf16>
    %c18 = arith.constant 18 : index
    %c0_241 = arith.constant 0 : index
    %c0_242 = arith.constant 0 : index
    %575 = vector.load %arg6[%c18, %c0_241, %c0_242] : memref<20x1x64xf32, #tpu.memory_space<vmem>>, vector<1x1x64xf32>
    %576 = vector.shape_cast %575 : vector<1x1x64xf32> to vector<1x64xf32>
    %577 = arith.truncf %572 : vector<16x64xf32> to vector<16x64xbf16>
    %cst_243 = arith.constant dense<0.000000e+00> : vector<16x64xf32>
    %578 = tpu.matmul %577, %574, %cst_243 {dimension_numbers = #tpu.dot_dimension_numbers<[1], [0], [0], [1], [0, 0, 1, 1], [], []>} : vector<16x64xbf16>, vector<64x64xbf16>, vector<16x64xf32> -> vector<16x64xf32>
    %579 = vector.broadcast %576 : vector<1x64xf32> to vector<16x64xf32>
    %580 = arith.addf %578, %579 : vector<16x64xf32>
    %cst_244 = arith.constant 5.000000e-01 : f32
    %581 = vector.broadcast %cst_244 : f32 to vector<16x64xf32>
    %582 = arith.mulf %581, %580 : vector<16x64xf32>
    %cst_245 = arith.constant 4.471500e-02 : f32
    %583 = vector.broadcast %cst_245 : f32 to vector<16x64xf32>
    %584 = arith.mulf %583, %580 : vector<16x64xf32>
    %585 = arith.mulf %584, %580 : vector<16x64xf32>
    %586 = arith.mulf %585, %580 : vector<16x64xf32>
    %587 = arith.addf %580, %586 : vector<16x64xf32>
    %cst_246 = arith.constant 0.797884583 : f32
    %588 = vector.broadcast %cst_246 : f32 to vector<16x64xf32>
    %589 = arith.mulf %588, %587 : vector<16x64xf32>
    %590 = math.tanh %589 : vector<16x64xf32>
    %cst_247 = arith.constant 1.000000e+00 : f32
    %591 = vector.broadcast %cst_247 : f32 to vector<16x64xf32>
    %592 = arith.addf %591, %590 : vector<16x64xf32>
    %593 = arith.mulf %582, %592 : vector<16x64xf32>
    %c13_248 = arith.constant 13 : index
    %c0_249 = arith.constant 0 : index
    %c0_250 = arith.constant 0 : index
    %594 = vector.load %arg5[%c13_248, %c0_249, %c0_250] : memref<14x64x64xbf16, #tpu.memory_space<vmem>>, vector<1x64x64xbf16>
    %595 = vector.shape_cast %594 : vector<1x64x64xbf16> to vector<64x64xbf16>
    %c19 = arith.constant 19 : index
    %c0_251 = arith.constant 0 : index
    %c0_252 = arith.constant 0 : index
    %596 = vector.load %arg6[%c19, %c0_251, %c0_252] : memref<20x1x64xf32, #tpu.memory_space<vmem>>, vector<1x1x64xf32>
    %597 = vector.shape_cast %596 : vector<1x1x64xf32> to vector<1x64xf32>
    %598 = arith.truncf %593 : vector<16x64xf32> to vector<16x64xbf16>
    %cst_253 = arith.constant dense<0.000000e+00> : vector<16x64xf32>
    %599 = tpu.matmul %598, %595, %cst_253 {dimension_numbers = #tpu.dot_dimension_numbers<[1], [0], [0], [1], [0, 0, 1, 1], [], []>} : vector<16x64xbf16>, vector<64x64xbf16>, vector<16x64xf32> -> vector<16x64xf32>
    %600 = vector.broadcast %597 : vector<1x64xf32> to vector<16x64xf32>
    %601 = arith.addf %599, %600 : vector<16x64xf32>
    %602 = arith.addf %601, %559 : vector<16x64xf32>
    %603 = arith.truncf %602 : vector<16x64xf32> to vector<16x64xbf16>
    %c0_254 = arith.constant 0 : index
    %c0_255 = arith.constant 0 : index
    %604 = vector.load %arg11[%c0_254, %c0_255] : memref<64x32xbf16, #tpu.memory_space<vmem>>, vector<64x32xbf16>
    %cst_256 = arith.constant dense<0.000000e+00> : vector<16x32xf32>
    %605 = tpu.matmul %603, %604, %cst_256 {dimension_numbers = #tpu.dot_dimension_numbers<[1], [0], [0], [1], [0, 0, 1, 1], [], []>} : vector<16x64xbf16>, vector<64x32xbf16>, vector<16x32xf32> -> vector<16x32xf32>
    %c0_257 = arith.constant 0 : index
    %c0_258 = arith.constant 0 : index
    %606 = vector.load %arg12[%c0_257, %c0_258] : memref<1x32xf32, #tpu.memory_space<vmem>>, vector<1x32xf32>
    %607 = vector.broadcast %606 : vector<1x32xf32> to vector<16x32xf32>
    %608 = arith.addf %605, %607 : vector<16x32xf32>
    %cst_259 = arith.constant 5.000000e-01 : f32
    %609 = vector.broadcast %cst_259 : f32 to vector<16x64xf32>
    %610 = arith.mulf %609, %602 : vector<16x64xf32>
    %cst_260 = arith.constant 4.471500e-02 : f32
    %611 = vector.broadcast %cst_260 : f32 to vector<16x64xf32>
    %612 = arith.mulf %611, %602 : vector<16x64xf32>
    %613 = arith.mulf %612, %602 : vector<16x64xf32>
    %614 = arith.mulf %613, %602 : vector<16x64xf32>
    %615 = arith.addf %602, %614 : vector<16x64xf32>
    %cst_261 = arith.constant 0.797884583 : f32
    %616 = vector.broadcast %cst_261 : f32 to vector<16x64xf32>
    %617 = arith.mulf %616, %615 : vector<16x64xf32>
    %618 = math.tanh %617 : vector<16x64xf32>
    %cst_262 = arith.constant 1.000000e+00 : f32
    %619 = vector.broadcast %cst_262 : f32 to vector<16x64xf32>
    %620 = arith.addf %619, %618 : vector<16x64xf32>
    %621 = arith.mulf %610, %620 : vector<16x64xf32>
    %c0_263 = arith.constant 0 : index
    %c0_264 = arith.constant 0 : index
    %622 = vector.load %arg7[%c0_263, %c0_264] : memref<64x32xbf16, #tpu.memory_space<vmem>>, vector<64x32xbf16>
    %c0_265 = arith.constant 0 : index
    %c0_266 = arith.constant 0 : index
    %623 = vector.load %arg8[%c0_265, %c0_266] : memref<1x32xf32, #tpu.memory_space<vmem>>, vector<1x32xf32>
    %624 = arith.truncf %621 : vector<16x64xf32> to vector<16x64xbf16>
    %cst_267 = arith.constant dense<0.000000e+00> : vector<16x32xf32>
    %625 = tpu.matmul %624, %622, %cst_267 {dimension_numbers = #tpu.dot_dimension_numbers<[1], [0], [0], [1], [0, 0, 1, 1], [], []>} : vector<16x64xbf16>, vector<64x32xbf16>, vector<16x32xf32> -> vector<16x32xf32>
    %626 = vector.broadcast %623 : vector<1x32xf32> to vector<16x32xf32>
    %627 = arith.addf %625, %626 : vector<16x32xf32>
    %cst_268 = arith.constant 5.000000e-01 : f32
    %628 = vector.broadcast %cst_268 : f32 to vector<16x32xf32>
    %629 = arith.mulf %628, %627 : vector<16x32xf32>
    %cst_269 = arith.constant 4.471500e-02 : f32
    %630 = vector.broadcast %cst_269 : f32 to vector<16x32xf32>
    %631 = arith.mulf %630, %627 : vector<16x32xf32>
    %632 = arith.mulf %631, %627 : vector<16x32xf32>
    %633 = arith.mulf %632, %627 : vector<16x32xf32>
    %634 = arith.addf %627, %633 : vector<16x32xf32>
    %cst_270 = arith.constant 0.797884583 : f32
    %635 = vector.broadcast %cst_270 : f32 to vector<16x32xf32>
    %636 = arith.mulf %635, %634 : vector<16x32xf32>
    %637 = math.tanh %636 : vector<16x32xf32>
    %cst_271 = arith.constant 1.000000e+00 : f32
    %638 = vector.broadcast %cst_271 : f32 to vector<16x32xf32>
    %639 = arith.addf %638, %637 : vector<16x32xf32>
    %640 = arith.mulf %629, %639 : vector<16x32xf32>
    %c0_272 = arith.constant 0 : index
    %c0_273 = arith.constant 0 : index
    %641 = vector.load %arg9[%c0_272, %c0_273] : memref<32x32xbf16, #tpu.memory_space<vmem>>, vector<32x32xbf16>
    %c0_274 = arith.constant 0 : index
    %c0_275 = arith.constant 0 : index
    %642 = vector.load %arg10[%c0_274, %c0_275] : memref<1x32xf32, #tpu.memory_space<vmem>>, vector<1x32xf32>
    %643 = arith.truncf %640 : vector<16x32xf32> to vector<16x32xbf16>
    %cst_276 = arith.constant dense<0.000000e+00> : vector<16x32xf32>
    %644 = tpu.matmul %643, %641, %cst_276 {dimension_numbers = #tpu.dot_dimension_numbers<[1], [0], [0], [1], [0, 0, 1, 1], [], []>} : vector<16x32xbf16>, vector<32x32xbf16>, vector<16x32xf32> -> vector<16x32xf32>
    %645 = vector.broadcast %642 : vector<1x32xf32> to vector<16x32xf32>
    %646 = arith.addf %644, %645 : vector<16x32xf32>
    %647 = arith.addf %646, %608 : vector<16x32xf32>
    %cst_277 = arith.constant dense<0.000000e+00> : vector<16xf32>
    %648 = vector.multi_reduction <add>, %647, %cst_277 [1] : vector<16x32xf32> to vector<16xf32>
    %649 = vector.shape_cast %648 : vector<16xf32> to vector<16x1xf32>
    %cst_278 = arith.constant 3.200000e+01 : f32
    %650 = vector.broadcast %cst_278 : f32 to vector<16x1xf32>
    %651 = arith.divf %649, %650 : vector<16x1xf32>
    %652 = vector.broadcast %651 : vector<16x1xf32> to vector<16x32xf32>
    %653 = arith.subf %647, %652 : vector<16x32xf32>
    %654 = arith.truncf %653 : vector<16x32xf32> to vector<16x32xbf16>
    %c0_279 = arith.constant 0 : index
    %c0_280 = arith.constant 0 : index
    %655 = vector.load %arg13[%c0_279, %c0_280] : memref<32x4xbf16, #tpu.memory_space<vmem>>, vector<32x4xbf16>
    %cst_281 = arith.constant dense<0.000000e+00> : vector<16x4xf32>
    %656 = tpu.matmul %654, %655, %cst_281 {dimension_numbers = #tpu.dot_dimension_numbers<[1], [0], [0], [1], [0, 0, 1, 1], [], []>} : vector<16x32xbf16>, vector<32x4xbf16>, vector<16x4xf32> -> vector<16x4xf32>
    %c0_282 = arith.constant 0 : index
    %c0_283 = arith.constant 0 : index
    %657 = vector.load %arg14[%c0_282, %c0_283] : memref<1x4xf32, #tpu.memory_space<vmem>>, vector<1x4xf32>
    %658 = vector.broadcast %657 : vector<1x4xf32> to vector<16x4xf32>
    %659 = arith.addf %656, %658 : vector<16x4xf32>
    %c0_284 = arith.constant 0 : index
    %c0_285 = arith.constant 0 : index
    %660 = vector.load %arg15[%c0_284, %c0_285] : memref<16x4xf32, #tpu.memory_space<vmem>>, vector<16x4xf32>
    tpu.vector_store %arg15[%c0_284, %c0_285], %659 {strides = array<i32>} : memref<16x4xf32, #tpu.memory_space<vmem>>, vector<16x4xf32>,
    return
  }
  func.func @transform_0(%arg0: i32) -> (i32, i32) {
    %c0_i32 = arith.constant 0 : i32
    %c0_i32_0 = arith.constant 0 : i32
    %c0_i32_1 = arith.constant 0 : i32
    return %c0_i32, %c0_i32_0 : i32, i32
  }
  func.func @transform_1(%arg0: i32) -> (i32, i32) {
    %c0_i32 = arith.constant 0 : i32
    %c0_i32_0 = arith.constant 0 : i32
    %c0_i32_1 = arith.constant 0 : i32
    return %c0_i32, %c0_i32_0 : i32, i32
  }
  func.func @transform_2(%arg0: i32) -> (i32, i32) {
    %c0_i32 = arith.constant 0 : i32
    %c0_i32_0 = arith.constant 0 : i32
    %c0_i32_1 = arith.constant 0 : i32
    return %c0_i32, %c0_i32_0 : i32, i32
  }
  func.func @transform_3(%arg0: i32) -> (i32, i32, i32) {
    %c0_i32 = arith.constant 0 : i32
    %c0_i32_0 = arith.constant 0 : i32
    %c0_i32_1 = arith.constant 0 : i32
    %c0_i32_2 = arith.constant 0 : i32
    return %c0_i32, %c0_i32_0, %c0_i32_1 : i32, i32, i32
  }
  func.func @transform_4(%arg0: i32) -> (i32, i32, i32) {
    %c0_i32 = arith.constant 0 : i32
    %c0_i32_0 = arith.constant 0 : i32
    %c0_i32_1 = arith.constant 0 : i32
    %c0_i32_2 = arith.constant 0 : i32
    return %c0_i32, %c0_i32_0, %c0_i32_1 : i32, i32, i32
  }
  func.func @transform_5(%arg0: i32) -> (i32, i32, i32) {
    %c0_i32 = arith.constant 0 : i32
    %c0_i32_0 = arith.constant 0 : i32
    %c0_i32_1 = arith.constant 0 : i32
    %c0_i32_2 = arith.constant 0 : i32
    return %c0_i32, %c0_i32_0, %c0_i32_1 : i32, i32, i32
  }
  func.func @transform_6(%arg0: i32) -> (i32, i32) {
    %c0_i32 = arith.constant 0 : i32
    %c0_i32_0 = arith.constant 0 : i32
    %c0_i32_1 = arith.constant 0 : i32
    return %c0_i32, %c0_i32_0 : i32, i32
  }
  func.func @transform_7(%arg0: i32) -> (i32, i32) {
    %c0_i32 = arith.constant 0 : i32
    %c0_i32_0 = arith.constant 0 : i32
    %c0_i32_1 = arith.constant 0 : i32
    return %c0_i32, %c0_i32_0 : i32, i32
  }
  func.func @transform_8(%arg0: i32) -> (i32, i32) {
    %c0_i32 = arith.constant 0 : i32
    %c0_i32_0 = arith.constant 0 : i32
    %c0_i32_1 = arith.constant 0 : i32
    return %c0_i32, %c0_i32_0 : i32, i32
  }
  func.func @transform_9(%arg0: i32) -> (i32, i32) {
    %c0_i32 = arith.constant 0 : i32
    %c0_i32_0 = arith.constant 0 : i32
    %c0_i32_1 = arith.constant 0 : i32
    return %c0_i32, %c0_i32_0 : i32, i32
  }
  func.func @transform_10(%arg0: i32) -> (i32, i32) {
    %c0_i32 = arith.constant 0 : i32
    %c0_i32_0 = arith.constant 0 : i32
    %c0_i32_1 = arith.constant 0 : i32
    return %c0_i32, %c0_i32_0 : i32, i32
  }
  func.func @transform_11(%arg0: i32) -> (i32, i32) {
    %c0_i32 = arith.constant 0 : i32
    %c0_i32_0 = arith.constant 0 : i32
    %c0_i32_1 = arith.constant 0 : i32
    return %c0_i32, %c0_i32_0 : i32, i32
  }
  func.func @transform_12(%arg0: i32) -> (i32, i32) {
    %c0_i32 = arith.constant 0 : i32
    %c0_i32_0 = arith.constant 0 : i32
    %c0_i32_1 = arith.constant 0 : i32
    return %c0_i32, %c0_i32_0 : i32, i32
  }
  func.func @transform_13(%arg0: i32) -> (i32, i32) {
    %c0_i32 = arith.constant 0 : i32
    %c0_i32_0 = arith.constant 0 : i32
    %c0_i32_1 = arith.constant 0 : i32
    return %c0_i32, %c0_i32_0 : i32, i32
  }
  func.func @transform_14(%arg0: i32) -> (i32, i32) {
    %c0_i32 = arith.constant 0 : i32
    %c0_i32_0 = arith.constant 0 : i32
    %c0_i32_1 = arith.constant 0 : i32
    return %c0_i32, %c0_i32_0 : i32, i32
  }
}

</mosaic_0001>

<bundles_post_ra>
// kernel: predictor_encoder_pallas.1
= control target key start
LH: loop header
LB: loop body
LE: loop exit
PB: predicated region body
PF: predicated region fallthrough
CT: control target
= control target key end

     0   :  { %vm62_vm0 = vcmask 31744   ;;  %v4206_v2 = vmov 0.0   ;;  %vm89_vm3 = vcmask 1041408   ;;  %vm4207_vm4 = vmmov 0   ;;  %s4209_s24 = smov 64   ;;  %s5286_s0 = inlined_call_operand.vmem [shape: f32[16,4], index: 0, kind: input, shape index: {}]   ;;  %s5287_s1 = inlined_call_operand.vmem [shape: bf16[4,64], index: 1, kind: input, shape index: {}]   ;;  %s5288_s3 = inlined_call_operand.vmem [shape: bf16[6,192,64], index: 3, kind: input, shape index: {}]   ;;  %s5289_s2 = inlined_call_operand.vmem [shape: f32[1,64], index: 2, kind: input, shape index: {}]   ;;  %s5290_s5 = inlined_call_operand.vmem [shape: f32[20,1,64], index: 5, kind: input, shape index: {}]   ;;  %s5291_s4 = inlined_call_operand.vmem [shape: bf16[14,64,64], index: 4, kind: input, shape index: {}]   ;;  %s5292_s10 = inlined_call_operand.vmem [shape: bf16[64,32], index: 10, kind: input, shape index: {}]   ;;  %s5293_s6 = inlined_call_operand.vmem [shape: bf16[64,32], index: 6, kind: input, shape index: {}]   ;;  %s5294_s8 = inlined_call_operand.vmem [shape: bf16[32,32], index: 8, kind: input, shape index: {}]   ;;  %s5295_s7 = inlined_call_operand.vmem [shape: f32[1,32], index: 7, kind: input, shape index: {}]   ;;  %s5296_s11 = inlined_call_operand.vmem [shape: f32[1,32], index: 11, kind: input, shape index: {}]   ;;  %s5297_s9 = inlined_call_operand.vmem [shape: f32[1,32], index: 9, kind: input, shape index: {}]   ;;  %s5298_s12 = inlined_call_operand.vmem [shape: bf16[32,4], index: 12, kind: input, shape index: {}]   ;;  %s5299_s13 = inlined_call_operand.vmem [shape: f32[1,4], index: 13, kind: input, shape index: {}]   ;;  %s5300_s14 = inlined_call_operand.vmem [shape: f32[16,4], index: 14, kind: output, shape index: {}]  }
   0x1   :  { %v48_v0 = vld [vmem:[%s5286_s0] sm:$0xff]  ;;  %v49_v1 = vld [vmem:[%s5286_s0 + $0x8] sm:$0xff]  ;;  %3730 = vmatprep.subr.bf16.mxu0 %v4206_v2  ;;  %3732 = vmatprep.mubr.msk.bf16.mxu0 %vm4207_vm4, %v4206_v2  ;;  %v4208_v14 = vmov 0   ;;  %v3978_v15 = vld [vmem:[%s5288_s3 + $0x38] sm:$0xff]   ;;  %v50_v45 = vlaneseq  ;;  %vm242_vm8 = vcmask 1046528   ;;  %vm229_vm9 = vcmask 1040384  }
   0x2   :  { %vm58_vm1 = vcmp.ne.f32.partialorder %v48_v0, %v48_v0  ;;  %vm59_vm2 = vcmp.ne.f32.partialorder %v49_v1, %v49_v1  ;;  %v78_v7 = vld [vmem:[%s5287_s1] sm:$0x3]  ;;  %347 = vmatprep.subr.bf16.mxu1 %v4208_v14  ;;  %v3979_v16 = vld [vmem:[%s5288_s3 + $0x30] sm:$0xff]   ;;  %v3980_v17 = vld [vmem:[%s5288_s3 + $0x28] sm:$0xff]   ;;  %vm261_vm10 = vcmask 523264   ;;  %vm644_vm13 = vcmask 1045504  }
   0x3   :  { %v60_v3 = vsel %vm58_vm1, 1.0, %v4206_v2  ;;  %v61_v4 = vsel %vm59_vm2, 1.0, %v4206_v2  ;;  %v91_v8 = vsel %vm89_vm3, %v78_v7, 0  ;;  %348 = vmatpush1.bf16.msra.mxu1 %v3978_v15  ;;  %v3981_v18 = vld [vmem:[%s5288_s3 + $0x20] sm:$0xff]   ;;  %v3982_v19 = vld [vmem:[%s5288_s3 + $0x18] sm:$0xff]   ;;  %v3983_v20 = vld [vmem:[%s5288_s3 + $0x10] sm:$0xff]  }
   0x4   :  { %v63_v5 = vsel %vm62_vm0, %v60_v3, -inf  ;;  %v66_v6 = vsel %vm62_vm0, %v61_v4, -inf  ;;  %3731 = vmatpush3.bf16.msra.mxu0 %v91_v8  ;;  %349 = vmatprep.subr.bf16.mxu1 %v4208_v14  ;;  %v3984_v21 = vld [vmem:[%s5288_s3 + $0x8] sm:$0xff]   ;;  %v3985_v22 = vld [vmem:[%s5288_s3] sm:$0xff]   ;;  %v3986_v23 = vld [vmem:[%s5288_s3 + $0x58] sm:$0xff]   ;;  %v4373_v50 = vshrl.u32 %v50_v45, 7 }
   0x5   :  { %64 = vmax.xlane.f32.xlu0 %v63_v5  ;;  %542 = vmatprep.subr.bf16.mxu0 %v4208_v14  ;;  %v3987_v24 = vld [vmem:[%s5288_s3 + $0x50] sm:$0xff]   ;;  %v3988_v25 = vld [vmem:[%s5288_s3 + $0x48] sm:$0xff]   ;;  %v3209_v26 = vld [vmem:[%s5289_s2] ss:$0 sm:$0xff]  ;;  %vm1033_vm1 = vcmask 1043456  }
   0x6   :  { %v3989_v46 = vld [vmem:[%s5288_s3 + $0x40] sm:$0xff]   ;;  %v4376_v53 = vadd.s32 1, %v4373_v50  ;;  %v4390_v5 = vadd.s32 4294967295, %v4373_v50 }
   0x7   :  { %350 = vmatpush1.bf16.msra.mxu1 %v3979_v16  ;;  %v3990_v16 = vld [vmem:[%s5288_s3 + $0x98] sm:$0xff]  }
   0x8   :  { %351 = vmatprep.subr.bf16.mxu1 %v4208_v14  ;;  %vm164_vm7 = vcmp.lt.s32.totalorder %v4376_v53, 8  ;;  %vm154_vm11 = vcmp.ge.s32.totalorder %v4390_v5, 0  ;;  %v4004_v5 = vld [vmem:[%s5288_s3 + $0xe8] sm:$0xff]  }
   0x9   :  { %67 = vmax.xlane.f32.xlu0 %v66_v6 }
   0xb   :  { %352 = vmatpush1.bf16.msra.mxu1 %v3980_v17  ;;  %v3991_v17 = vld [vmem:[%s5288_s3 + $0x90] sm:$0xff]  }
   0xc   :  { %353 = vmatprep.subr.bf16.mxu1 %v4208_v14 }
   0xf   :  { %354 = vmatpush1.bf16.msra.mxu1 %v3981_v18  ;;  %v3992_v18 = vld [vmem:[%s5288_s3 + $0x88] sm:$0xff]  }
  0x10   :  { %355 = vmatprep.subr.bf16.mxu1 %v4208_v14 }
  0x13   :  { %356 = vmatpush1.bf16.msra.mxu1 %v3982_v19  ;;  %v3993_v19 = vld [vmem:[%s5288_s3 + $0x80] sm:$0xff]  }
  0x14   :  { %357 = vmatprep.subr.bf16.mxu1 %v4208_v14 }
  0x17   :  { %358 = vmatpush1.bf16.msra.mxu1 %v3983_v20  ;;  %v3994_v20 = vld [vmem:[%s5288_s3 + $0x78] sm:$0xff]  }
  0x18   :  { %359 = vmatprep.subr.bf16.mxu1 %v4208_v14 }
  0x1b   :  { %360 = vmatpush1.bf16.msra.mxu1 %v3984_v21  ;;  %v3995_v21 = vld [vmem:[%s5288_s3 + $0x70] sm:$0xff]  }
  0x1c   :  { %361 = vmatprep.subr.bf16.mxu1 %v4208_v14 }
  0x1f   :  { %362 = vmatpush1.bf16.msra.mxu1 %v3985_v22  ;;  %v3996_v22 = vld [vmem:[%s5288_s3 + $0x68] sm:$0xff]  }
  0x20   :  { %371 = vmatprep.subr.bf16.mxu1 %v4208_v14 }
  0x23   :  { %372 = vmatpush2.bf16.msra.mxu1 %v3986_v23  ;;  %v3997_v23 = vld [vmem:[%s5288_s3 + $0x60] sm:$0xff]  }
  0x24   :  { %373 = vmatprep.subr.bf16.mxu1 %v4208_v14 }
  0x27   :  { %374 = vmatpush2.bf16.msra.mxu1 %v3987_v24  ;;  %v3998_v24 = vld [vmem:[%s5288_s3 + $0xb8] sm:$0xff]  }
  0x28   :  { %375 = vmatprep.subr.bf16.mxu1 %v4208_v14 }
  0x2b   :  { %376 = vmatpush2.bf16.msra.mxu1 %v3988_v25  ;;  %v3999_v25 = vld [vmem:[%s5288_s3 + $0xb0] sm:$0xff]  }
  0x2c   :  { %377 = vmatprep.subr.bf16.mxu1 %v4208_v14 }
  0x2f   :  { %378 = vmatpush2.bf16.msra.mxu1 %v3989_v46  ;;  %v4001_v46 = vld [vmem:[%s5288_s3 + $0xa0] sm:$0xff]  }
  0x30   :  { %748 = vmatprep.subr.bf16.mxu1 %v4208_v14 }
  0x8e   :  { %v65_v9 = vpop.xlane.xlu0 %64 }
  0x8f   :  { %vm69_vm5 = vcmp.lt.f32.partialorder %v65_v9, 0.5 }
  0x90   :  { %v75_v11 = vsel %vm69_vm5, %v48_v0, 0.0 }
  0x92   :  { %v68_v10 = vpop.xlane.xlu0 %67 }
  0x93   :  { %vm70_vm6 = vcmp.lt.f32.partialorder %v68_v10, 0.5 }
  0x94   :  { %v76_v12 = vsel %vm70_vm6, %v49_v1, 0.0 }
  0x95   :  { %v77_v13 = vpack.c.bf16 %v76_v12, %v75_v11 }
  0x97   :  { %3733 = vmatmul.mubr.msk.bf16.vlgmr.msra.gmra.mxu0 %vm62_vm0, %v77_v13 }
  0x98   :  { %543 = vmatpush1.bf16.msra.mxu0 %v3990_v16  ;;  %v4003_v16 = vld [vmem:[%s5288_s3 + $0xf0] sm:$0xff]  }
  0x99   :  { %544 = vmatprep.subr.bf16.mxu0 %v4208_v14 }
  0x9c   :  { %545 = vmatpush1.bf16.msra.mxu0 %v3991_v17  ;;  %v4005_v17 = vld [vmem:[%s5288_s3 + $0xe0] sm:$0xff]  }
  0x9d   :  { %546 = vmatprep.subr.bf16.mxu0 %v4208_v14 }
  0xa0   :  { %547 = vmatpush1.bf16.msra.mxu0 %v3992_v18  ;;  %v4006_v18 = vld [vmem:[%s5288_s3 + $0xd8] sm:$0xff]  }
  0xa1   :  { %548 = vmatprep.subr.bf16.mxu0 %v4208_v14 }
  0xa4   :  { %549 = vmatpush1.bf16.msra.mxu0 %v3993_v19  ;;  %v4007_v19 = vld [vmem:[%s5288_s3 + $0xd0] sm:$0xff]  }
  0xa5   :  { %550 = vmatprep.subr.bf16.mxu0 %v4208_v14 }
  0xa8   :  { %551 = vmatpush1.bf16.msra.mxu0 %v3994_v20  ;;  %v4008_v20 = vld [vmem:[%s5288_s3 + $0xc8] sm:$0xff]  }
  0xa9   :  { %552 = vmatprep.subr.bf16.mxu0 %v4208_v14 }
  0xac   :  { %553 = vmatpush1.bf16.msra.mxu0 %v3995_v21  ;;  %v4009_v21 = vld [vmem:[%s5288_s3 + $0xc0] sm:$0xff]  }
  0xad   :  { %554 = vmatprep.subr.bf16.mxu0 %v4208_v14 }
  0xb0   :  { %555 = vmatpush1.bf16.msra.mxu0 %v3996_v22  ;;  %v4010_v22 = vld [vmem:[%s5288_s3 + $0x118] sm:$0xff]  }
  0xb1   :  { %556 = vmatprep.subr.bf16.mxu0 %v4208_v14 }
  0xb4   :  { %557 = vmatpush1.bf16.msra.mxu0 %v3997_v23  ;;  %v4011_v23 = vld [vmem:[%s5288_s3 + $0x110] sm:$0xff]  }
  0xb5   :  { %566 = vmatprep.subr.bf16.mxu0 %v4208_v14 }
  0xb8   :  { %567 = vmatpush2.bf16.msra.mxu0 %v3998_v24  ;;  %v4012_v24 = vld [vmem:[%s5288_s3 + $0x108] sm:$0xff]  }
  0xb9   :  { %568 = vmatprep.subr.bf16.mxu0 %v4208_v14 }
  0xbc   :  { %569 = vmatpush2.bf16.msra.mxu0 %v3999_v25  ;;  %v3250_v25 = vld [vmem:[%s5290_s5 + $0x1] ss:$0 sm:$0xff] }
  0xbd   :  { %570 = vmatprep.subr.bf16.mxu0 %v4208_v14 }
 0x157   :  { %v127_v27 = vpop.f32.mrf.mxu0 }
 0x158   :  { %v128_v28 = vadd.f32 %v3209_v26, %v127_v27  ;;  %v3211_v27 = vld [vmem:[%s5290_s5] ss:$0 sm:$0xff] }
 0x159   :  { %v3734_v29 = vpop.f32.mrf.mxu0 }
 0x15a   :  { %v4355_v30 = vsel %vm69_vm5, %v128_v28, 0.0 }
 0x15b   :  { %v186_v31 = vmul.f32 0.044715, %v4355_v30  ;;  %v130_v32 = vpop.f32.mrf.mxu0  ;;  %v184_v49 = vmul.f32 0.5, %v4355_v30 }
 0x15c   :  { %v131_v33 = vadd.f32 %v3209_v26, %v130_v32  ;;  %v4000_v26 = vld [vmem:[%s5288_s3 + $0xa8] sm:$0xff]  }
 0x15d   :  { %v188_v34 = vmul.f32 %v186_v31, %v4355_v30  ;;  %v3735_v35 = vpop.f32.mrf.mxu0  ;;  %571 = vmatpush2.bf16.msra.mxu0 %v4000_v26 }
 0x15e   :  { %v4360_v36 = vsel %vm70_vm6, %v131_v33, 0.0  ;;  %572 = vmatprep.subr.bf16.mxu0 %v4208_v14 }
 0x15f   :  { %v190_v37 = vmul.f32 %v188_v34, %v4355_v30  ;;  %v187_v38 = vmul.f32 0.044715, %v4360_v36  ;;  %v185_v54 = vmul.f32 0.5, %v4360_v36 }
 0x161   :  { %v192_v39 = vadd.f32 %v190_v37, %v4355_v30  ;;  %v189_v40 = vmul.f32 %v187_v38, %v4360_v36  ;;  %573 = vmatpush2.bf16.msra.mxu0 %v4001_v46 }
 0x162   :  { %943 = vmatprep.subr.bf16.mxu0 %v4208_v14 }
 0x163   :  { %v191_v41 = vmul.f32 %v189_v40, %v4360_v36  ;;  %v194_v42 = vmul.f32 0.7978846, %v192_v39 }
 0x165   :  { %v193_v43 = vadd.f32 %v191_v41, %v4360_v36  ;;  %4118 = vtanh.f32 %v194_v42 }
 0x167   :  { %v195_v44 = vmul.f32 0.7978846, %v193_v43 }
 0x169   :  { %4120 = vtanh.f32 %v195_v44 }
 0x172   :  { %v4119_v47 = vpop.eup %4118 }
 0x173   :  { %v198_v48 = vadd.f32 1.0, %v4119_v47 }
 0x175   :  { %v200_v52 = vmul.f32 %v198_v48, %v184_v49 }
 0x176   :  { %v4121_v51 = vpop.eup %4120 }
 0x177   :  { %v199_v55 = vadd.f32 1.0, %v4121_v51  ;;  %v243_v57 = vrot.slane %v200_v52, 1  ;;  %v230_v61 = vrot.slane %v200_v52, 7 }
 0x179   :  { %v201_v56 = vmul.f32 %v199_v55, %v185_v54  ;;  %v235_v6 = vsel %vm229_vm9, 0.0, %v230_v61 }
 0x17a   :  { %v240_v10 = vsel %vm154_vm11, %v235_v6, 0.0 }
 0x17b   :  { %v3948_v58 = vpack.i.bf16 %v201_v56, %v200_v52  ;;  %v231_v59 = vrot.slane %v201_v56, 7  ;;  %v244_v60 = vrot.slane %v201_v56, 1 }
 0x17d   :  { %3949 = vrot.lane.b32.xlu1 %v3948_v58, %s4209_s24  ;;  %v245_v62 = vsel %vm242_vm8, %v243_v57, %v244_v60  ;;  %v248_v63 = vsel %vm242_vm8, %v244_v60, 0.0  ;;  %v232_v0 = vsel %vm229_vm9, %v230_v61, %v231_v59 }
 0x17e   :  { %v253_v1 = vsel %vm164_vm7, %v245_v62, 0.0  ;;  %v254_v3 = vsel %vm164_vm7, %v248_v63, 0.0  ;;  %v241_v11 = vsel %vm154_vm11, %v232_v0, 0.0 }
 0x17f   :  { %v265_v4 = vpack.c.bf16 %v254_v3, %v253_v1 }
 0x181   :  { %3224 = vmatprep.mubr.msk.bf16.mxu1 %vm261_vm10, %v265_v4 }
 0x1ef   :  { %v3950_v7 = vpop.permute.xlu1 %3949 }
 0x1f0   :  { %v3952_v8 = vunpack.i.h.bf16 %v3950_v7  ;;  %v3951_v9 = vunpack.i.l.bf16 %v3950_v7 }
 0x1f2   :  { %v262_v12 = vsel %vm261_vm10, %v240_v10, %v3951_v9  ;;  %v263_v13 = vsel %vm261_vm10, %v241_v11, %v3952_v8 }
 0x1f3   :  { %v264_v15 = vpack.c.bf16 %v263_v13, %v262_v12 }
 0x1f5   :  { %380 = vmatmul.mubr.bf16.vlgmr.msra.gmra.mxu1 %v264_v15  ;;  %v4002_v15 = vld [vmem:[%s5288_s3 + $0xf8] sm:$0xff]  }
 0x1f6   :  { %749 = vmatpush1.bf16.msra.mxu1 %v4002_v15  ;;  %v4014_v15 = vld [vmem:[%s5288_s3 + $0x158] sm:$0xff]  }
 0x1f7   :  { %750 = vmatprep.subr.bf16.mxu1 %v4208_v14 }
 0x1fa   :  { %751 = vmatpush1.bf16.msra.mxu1 %v4003_v16  ;;  %v4015_v16 = vld [vmem:[%s5288_s3 + $0x150] sm:$0xff]  }
 0x1fb   :  { %752 = vmatprep.subr.bf16.mxu1 %v4208_v14 }
 0x1fe   :  { %753 = vmatpush1.bf16.msra.mxu1 %v4004_v5  ;;  %v4016_v5 = vld [vmem:[%s5288_s3 + $0x148] sm:$0xff]  }
 0x1ff   :  { %754 = vmatprep.subr.bf16.mxu1 %v4208_v14 }
 0x202   :  { %755 = vmatpush1.bf16.msra.mxu1 %v4005_v17  ;;  %v4017_v17 = vld [vmem:[%s5288_s3 + $0x140] sm:$0xff]  }
 0x203   :  { %756 = vmatprep.subr.bf16.mxu1 %v4208_v14 }
 0x206   :  { %757 = vmatpush1.bf16.msra.mxu1 %v4006_v18  ;;  %v4018_v18 = vld [vmem:[%s5288_s3 + $0x138] sm:$0xff]  }
 0x207   :  { %758 = vmatprep.subr.bf16.mxu1 %v4208_v14 }
 0x20a   :  { %759 = vmatpush1.bf16.msra.mxu1 %v4007_v19  ;;  %v4019_v19 = vld [vmem:[%s5288_s3 + $0x130] sm:$0xff]  }
 0x20b   :  { %760 = vmatprep.subr.bf16.mxu1 %v4208_v14 }
 0x20e   :  { %761 = vmatpush1.bf16.msra.mxu1 %v4008_v20  ;;  %v4020_v20 = vld [vmem:[%s5288_s3 + $0x128] sm:$0xff]  }
 0x20f   :  { %762 = vmatprep.subr.bf16.mxu1 %v4208_v14 }
 0x212   :  { %763 = vmatpush1.bf16.msra.mxu1 %v4009_v21  ;;  %v4021_v21 = vld [vmem:[%s5288_s3 + $0x120] sm:$0xff]  }
 0x213   :  { %772 = vmatprep.subr.bf16.mxu1 %v4208_v14 }
 0x216   :  { %773 = vmatpush2.bf16.msra.mxu1 %v4010_v22  ;;  %v4022_v22 = vld [vmem:[%s5288_s3 + $0x178] sm:$0xff]  }
 0x217   :  { %774 = vmatprep.subr.bf16.mxu1 %v4208_v14 }
 0x21a   :  { %775 = vmatpush2.bf16.msra.mxu1 %v4011_v23  ;;  %v4023_v23 = vld [vmem:[%s5288_s3 + $0x170] sm:$0xff]  }
 0x21b   :  { %776 = vmatprep.subr.bf16.mxu1 %v4208_v14 }
 0x21e   :  { %777 = vmatpush2.bf16.msra.mxu1 %v4012_v24  ;;  %v4024_v24 = vld [vmem:[%s5288_s3 + $0x168] sm:$0xff]  }
 0x21f   :  { %778 = vmatprep.subr.bf16.mxu1 %v4208_v14 }
 0x2b5   :  { %v381_v28 = vpop.f32.mrf.mxu1 }
 0x2b6   :  { %v382_v29 = vadd.f32 %v3211_v27, %v381_v28 }
 0x2b7   :  { %v383_v31 = vpop.f32.mrf.mxu1 }
 0x2b8   :  { %v390_v32 = vmul.f32 0.044715, %v382_v29  ;;  %v388_v49 = vmul.f32 0.5, %v382_v29 }
 0x2b9   :  { %v384_v33 = vpop.f32.mrf.mxu1 }
 0x2ba   :  { %v392_v34 = vmul.f32 %v390_v32, %v382_v29  ;;  %v385_v35 = vadd.f32 %v3211_v27, %v384_v33 }
 0x2bb   :  { %v386_v37 = vpop.f32.mrf.mxu1 }
 0x2bc   :  { %v394_v38 = vmul.f32 %v392_v34, %v382_v29  ;;  %v391_v39 = vmul.f32 0.044715, %v385_v35  ;;  %v389_v54 = vmul.f32 0.5, %v385_v35 }
 0x2be   :  { %v396_v40 = vadd.f32 %v394_v38, %v382_v29  ;;  %v393_v41 = vmul.f32 %v391_v39, %v385_v35 }
 0x2c0   :  { %v398_v42 = vmul.f32 0.7978846, %v396_v40  ;;  %v395_v43 = vmul.f32 %v393_v41, %v385_v35 }
 0x2c2   :  { %v397_v44 = vadd.f32 %v395_v43, %v385_v35  ;;  %4122 = vtanh.f32 %v398_v42 }
 0x2c4   :  { %v399_v45 = vmul.f32 0.7978846, %v397_v44 }
 0x2c6   :  { %4124 = vtanh.f32 %v399_v45 }
 0x2cf   :  { %v4123_v47 = vpop.eup %4122 }
 0x2d0   :  { %v402_v48 = vadd.f32 1.0, %v4123_v47 }
 0x2d2   :  { %v404_v52 = vmul.f32 %v402_v48, %v388_v49 }
 0x2d3   :  { %v4125_v51 = vpop.eup %4124 }
 0x2d4   :  { %v403_v55 = vadd.f32 1.0, %v4125_v51  ;;  %v443_v57 = vrot.slane %v404_v52, 1  ;;  %v435_v61 = vrot.slane %v404_v52, 7  ;;  %v4534_v51 = vadd.s32 2, %v4373_v50 }
 0x2d6   :  { %v405_v56 = vmul.f32 %v403_v55, %v389_v54  ;;  %v440_v6 = vsel %vm229_vm9, 0.0, %v435_v61  ;;  %vm172_vm12 = vcmp.lt.s32.totalorder %v4534_v51, 8 }
 0x2d7   :  { %v441_v10 = vsel %vm154_vm11, %v440_v6, 0.0 }
 0x2d8   :  { %v436_v58 = vrot.slane %v405_v56, 7  ;;  %v3953_v59 = vpack.i.bf16 %v405_v56, %v404_v52  ;;  %v444_v60 = vrot.slane %v405_v56, 1 }
 0x2da   :  { %3954 = vrot.lane.b32.xlu1 %v3953_v59, %s4209_s24  ;;  %v445_v62 = vsel %vm242_vm8, %v443_v57, %v444_v60  ;;  %v448_v63 = vsel %vm242_vm8, %v444_v60, 0.0  ;;  %v437_v0 = vsel %vm229_vm9, %v435_v61, %v436_v58 }
 0x2db   :  { %v449_v1 = vsel %vm164_vm7, %v445_v62, 0.0  ;;  %v450_v3 = vsel %vm164_vm7, %v448_v63, 0.0  ;;  %v442_v11 = vsel %vm154_vm11, %v437_v0, 0.0 }
 0x2dc   :  { %v460_v4 = vpack.c.bf16 %v450_v3, %v449_v1 }
 0x2de   :  { %3263 = vmatprep.mubr.msk.bf16.mxu0 %vm261_vm10, %v460_v4  ;;  %v4548_v4 = vadd.s32 4294967294, %v4373_v50 }
 0x2e0   :  { %vm146_vm14 = vcmp.ge.s32.totalorder %v4548_v4, 0  ;;  %v4028_v4 = vld [vmem:[%s5288_s3 + $0x1a8] sm:$0xff]  }
 0x34c   :  { %v3955_v7 = vpop.permute.xlu1 %3954 }
 0x34d   :  { %v3957_v8 = vunpack.i.h.bf16 %v3955_v7  ;;  %v3956_v9 = vunpack.i.l.bf16 %v3955_v7 }
 0x34f   :  { %v457_v12 = vsel %vm261_vm10, %v441_v10, %v3956_v9  ;;  %v458_v13 = vsel %vm261_vm10, %v442_v11, %v3957_v8 }
 0x350   :  { %v459_v53 = vpack.c.bf16 %v458_v13, %v457_v12 }
 0x352   :  { %575 = vmatmul.mubr.bf16.vlgmr.msra.gmra.mxu0 %v459_v53 }
 0x353   :  { %944 = vmatpush1.bf16.msra.mxu0 %v4014_v15  ;;  %v4027_v15 = vld [vmem:[%s5288_s3 + $0x1b0] sm:$0xff]  }
 0x354   :  { %945 = vmatprep.subr.bf16.mxu0 %v4208_v14 }
 0x357   :  { %946 = vmatpush1.bf16.msra.mxu0 %v4015_v16  ;;  %v4029_v16 = vld [vmem:[%s5288_s3 + $0x1a0] sm:$0xff]  }
 0x358   :  { %947 = vmatprep.subr.bf16.mxu0 %v4208_v14 }
 0x35b   :  { %948 = vmatpush1.bf16.msra.mxu0 %v4016_v5  ;;  %v4030_v5 = vld [vmem:[%s5288_s3 + $0x198] sm:$0xff]  }
 0x35c   :  { %949 = vmatprep.subr.bf16.mxu0 %v4208_v14 }
 0x35f   :  { %950 = vmatpush1.bf16.msra.mxu0 %v4017_v17  ;;  %v4031_v17 = vld [vmem:[%s5288_s3 + $0x190] sm:$0xff]  }
 0x360   :  { %951 = vmatprep.subr.bf16.mxu0 %v4208_v14 }
 0x363   :  { %952 = vmatpush1.bf16.msra.mxu0 %v4018_v18  ;;  %v4032_v18 = vld [vmem:[%s5288_s3 + $0x188] sm:$0xff]  }
 0x364   :  { %953 = vmatprep.subr.bf16.mxu0 %v4208_v14 }
 0x367   :  { %954 = vmatpush1.bf16.msra.mxu0 %v4019_v19  ;;  %v4033_v19 = vld [vmem:[%s5288_s3 + $0x180] sm:$0xff]  }
 0x368   :  { %955 = vmatprep.subr.bf16.mxu0 %v4208_v14 }
 0x36b   :  { %956 = vmatpush1.bf16.msra.mxu0 %v4020_v20  ;;  %v4034_v20 = vld [vmem:[%s5288_s3 + $0x1d8] sm:$0xff]  }
 0x36c   :  { %957 = vmatprep.subr.bf16.mxu0 %v4208_v14 }
 0x36f   :  { %958 = vmatpush1.bf16.msra.mxu0 %v4021_v21  ;;  %v4035_v21 = vld [vmem:[%s5288_s3 + $0x1d0] sm:$0xff]  }
 0x370   :  { %967 = vmatprep.subr.bf16.mxu0 %v4208_v14 }
 0x373   :  { %968 = vmatpush2.bf16.msra.mxu0 %v4022_v22  ;;  %v4036_v22 = vld [vmem:[%s5288_s3 + $0x1c8] sm:$0xff]  }
 0x374   :  { %969 = vmatprep.subr.bf16.mxu0 %v4208_v14 }
 0x377   :  { %970 = vmatpush2.bf16.msra.mxu0 %v4023_v23  ;;  %v3328_v23 = vld [vmem:[%s5290_s5 + $0x3] ss:$0 sm:$0xff] }
 0x378   :  { %971 = vmatprep.subr.bf16.mxu0 %v4208_v14 }
 0x37b   :  { %972 = vmatpush2.bf16.msra.mxu0 %v4024_v24 }
 0x37c   :  { %973 = vmatprep.subr.bf16.mxu0 %v4208_v14 }
 0x412   :  { %v576_v26 = vpop.f32.mrf.mxu0 }
 0x413   :  { %v577_v27 = vadd.f32 %v3250_v25, %v576_v26 }
 0x414   :  { %v578_v28 = vpop.f32.mrf.mxu0 }
 0x415   :  { %v4515_v29 = vadd.f32 %v577_v27, %v4355_v30 }
 0x416   :  { %v579_v31 = vpop.f32.mrf.mxu0 }
 0x417   :  { %v587_v32 = vmul.f32 0.044715, %v4515_v29  ;;  %v580_v33 = vadd.f32 %v3250_v25, %v579_v31  ;;  %v585_v47 = vmul.f32 0.5, %v4515_v29  ;;  %v3289_v25 = vld [vmem:[%s5290_s5 + $0x2] ss:$0 sm:$0xff] }
 0x418   :  { %v581_v34 = vpop.f32.mrf.mxu0 }
 0x419   :  { %v4519_v35 = vadd.f32 %v580_v33, %v4360_v36  ;;  %v589_v37 = vmul.f32 %v587_v32, %v4515_v29  ;;  %v4013_v36 = vld [vmem:[%s5288_s3 + $0x100] sm:$0xff]  }
 0x41a   :  { %779 = vmatpush2.bf16.msra.mxu1 %v4013_v36  ;;  %v4025_v36 = vld [vmem:[%s5288_s3 + $0x160] sm:$0xff]  }
 0x41b   :  { %v588_v38 = vmul.f32 0.044715, %v4519_v35  ;;  %v591_v39 = vmul.f32 %v589_v37, %v4515_v29  ;;  %1145 = vmatprep.subr.bf16.mxu1 %v4208_v14  ;;  %v586_v52 = vmul.f32 0.5, %v4519_v35  ;;  %974 = vmatpush2.bf16.msra.mxu0 %v4025_v36 }
 0x41c   :  { %1336 = vmatprep.subr.bf16.mxu0 %v4208_v14 }
 0x41d   :  { %v590_v40 = vmul.f32 %v588_v38, %v4519_v35  ;;  %v593_v41 = vadd.f32 %v591_v39, %v4515_v29 }
 0x41f   :  { %v592_v30 = vmul.f32 %v590_v40, %v4519_v35  ;;  %v595_v42 = vmul.f32 0.7978846, %v593_v41 }
 0x421   :  { %v594_v43 = vadd.f32 %v592_v30, %v4519_v35  ;;  %4126 = vtanh.f32 %v595_v42 }
 0x423   :  { %v596_v44 = vmul.f32 0.7978846, %v594_v43 }
 0x425   :  { %4128 = vtanh.f32 %v596_v44 }
 0x42e   :  { %v4127_v45 = vpop.eup %4126 }
 0x42f   :  { %v599_v46 = vadd.f32 1.0, %v4127_v45 }
 0x431   :  { %v601_v49 = vmul.f32 %v599_v46, %v585_v47 }
 0x432   :  { %v4129_v48 = vpop.eup %4128 }
 0x433   :  { %v600_v54 = vadd.f32 1.0, %v4129_v48  ;;  %v645_v56 = vrot.slane %v601_v49, 2  ;;  %v632_v60 = vrot.slane %v601_v49, 6 }
 0x435   :  { %v602_v55 = vmul.f32 %v600_v54, %v586_v52  ;;  %v637_v6 = vsel %vm89_vm3, 0.0, %v632_v60 }
 0x436   :  { %v642_v10 = vsel %vm146_vm14, %v637_v6, 0.0 }
 0x437   :  { %v633_v57 = vrot.slane %v602_v55, 6  ;;  %v3958_v58 = vpack.i.bf16 %v602_v55, %v601_v49  ;;  %v646_v59 = vrot.slane %v602_v55, 2 }
 0x439   :  { %3959 = vrot.lane.b32.xlu0 %v3958_v58, %s4209_s24  ;;  %v647_v61 = vsel %vm644_vm13, %v645_v56, %v646_v59  ;;  %v650_v62 = vsel %vm644_vm13, %v646_v59, 0.0  ;;  %v634_v63 = vsel %vm89_vm3, %v632_v60, %v633_v57 }
 0x43a   :  { %v655_v0 = vsel %vm172_vm12, %v647_v61, 0.0  ;;  %v656_v1 = vsel %vm172_vm12, %v650_v62, 0.0  ;;  %v643_v11 = vsel %vm146_vm14, %v634_v63, 0.0 }
 0x43b   :  { %v666_v3 = vpack.c.bf16 %v656_v1, %v655_v0 }
 0x43d   :  { %3302 = vmatprep.mubr.msk.bf16.mxu1 %vm261_vm10, %v666_v3 }
 0x4ab   :  { %v3960_v7 = vpop.permute.xlu0 %3959 }
 0x4ac   :  { %v3962_v8 = vunpack.i.h.bf16 %v3960_v7  ;;  %v3961_v9 = vunpack.i.l.bf16 %v3960_v7 }
 0x4ae   :  { %v663_v12 = vsel %vm261_vm10, %v642_v10, %v3961_v9  ;;  %v664_v13 = vsel %vm261_vm10, %v643_v11, %v3962_v8 }
 0x4af   :  { %v665_v53 = vpack.c.bf16 %v664_v13, %v663_v12 }
 0x4b1   :  { %781 = vmatmul.mubr.bf16.vlgmr.msra.gmra.mxu1 %v665_v53  ;;  %v4026_v53 = vld [vmem:[%s5288_s3 + $0x1b8] sm:$0xff]  }
 0x4b2   :  { %1146 = vmatpush1.bf16.msra.mxu1 %v4026_v53  ;;  %v4042_v53 = vld [vmem:[%s5288_s3 + $0x1f8] sm:$0xff]  }
 0x4b3   :  { %1147 = vmatprep.subr.bf16.mxu1 %v4208_v14 }
 0x4b6   :  { %1148 = vmatpush1.bf16.msra.mxu1 %v4027_v15  ;;  %v4043_v15 = vld [vmem:[%s5288_s3 + $0x1f0] sm:$0xff]  }
 0x4b7   :  { %1149 = vmatprep.subr.bf16.mxu1 %v4208_v14 }
 0x4ba   :  { %1150 = vmatpush1.bf16.msra.mxu1 %v4028_v4  ;;  %v4044_v4 = vld [vmem:[%s5288_s3 + $0x1e8] sm:$0xff]  }
 0x4bb   :  { %1151 = vmatprep.subr.bf16.mxu1 %v4208_v14 }
 0x4be   :  { %1152 = vmatpush1.bf16.msra.mxu1 %v4029_v16  ;;  %v4045_v16 = vld [vmem:[%s5288_s3 + $0x1e0] sm:$0xff]  }
 0x4bf   :  { %1153 = vmatprep.subr.bf16.mxu1 %v4208_v14 }
 0x4c2   :  { %1154 = vmatpush1.bf16.msra.mxu1 %v4030_v5  ;;  %v4046_v5 = vld [vmem:[%s5288_s3 + $0x238] sm:$0xff]  }
 0x4c3   :  { %1155 = vmatprep.subr.bf16.mxu1 %v4208_v14 }
 0x4c6   :  { %1156 = vmatpush1.bf16.msra.mxu1 %v4031_v17  ;;  %v4047_v17 = vld [vmem:[%s5288_s3 + $0x230] sm:$0xff]  }
 0x4c7   :  { %1157 = vmatprep.subr.bf16.mxu1 %v4208_v14 }
 0x4ca   :  { %1158 = vmatpush1.bf16.msra.mxu1 %v4032_v18  ;;  %v4048_v18 = vld [vmem:[%s5288_s3 + $0x228] sm:$0xff]  }
 0x4cb   :  { %1159 = vmatprep.subr.bf16.mxu1 %v4208_v14 }
 0x4ce   :  { %1160 = vmatpush1.bf16.msra.mxu1 %v4033_v19  ;;  %v3367_v19 = vld [vmem:[%s5290_s5 + $0x4] ss:$0 sm:$0xff] }
 0x4cf   :  { %1169 = vmatprep.subr.bf16.mxu1 %v4208_v14 }
 0x4d2   :  { %1170 = vmatpush2.bf16.msra.mxu1 %v4034_v20 }
 0x4d3   :  { %1171 = vmatprep.subr.bf16.mxu1 %v4208_v14 }
 0x4d6   :  { %1172 = vmatpush2.bf16.msra.mxu1 %v4035_v21 }
 0x4d7   :  { %1173 = vmatprep.subr.bf16.mxu1 %v4208_v14 }
 0x4da   :  { %1174 = vmatpush2.bf16.msra.mxu1 %v4036_v22 }
 0x4db   :  { %1175 = vmatprep.subr.bf16.mxu1 %v4208_v14 }
 0x571   :  { %v782_v26 = vpop.f32.mrf.mxu1 }
 0x572   :  { %v783_v27 = vadd.f32 %v3289_v25, %v782_v26 }
 0x573   :  { %v784_v28 = vpop.f32.mrf.mxu1 }
 0x574   :  { %v791_v31 = vmul.f32 0.044715, %v783_v27  ;;  %v789_v47 = vmul.f32 0.5, %v783_v27 }
 0x575   :  { %v785_v32 = vpop.f32.mrf.mxu1 }
 0x576   :  { %v793_v33 = vmul.f32 %v791_v31, %v783_v27  ;;  %v786_v34 = vadd.f32 %v3289_v25, %v785_v32 }
 0x577   :  { %v787_v37 = vpop.f32.mrf.mxu1 }
 0x578   :  { %v795_v38 = vmul.f32 %v793_v33, %v783_v27  ;;  %v792_v39 = vmul.f32 0.044715, %v786_v34  ;;  %v790_v52 = vmul.f32 0.5, %v786_v34 }
 0x57a   :  { %v797_v40 = vadd.f32 %v795_v38, %v783_v27  ;;  %v794_v41 = vmul.f32 %v792_v39, %v786_v34 }
 0x57c   :  { %v799_v30 = vmul.f32 0.7978846, %v797_v40  ;;  %v796_v42 = vmul.f32 %v794_v41, %v786_v34 }
 0x57e   :  { %v798_v43 = vadd.f32 %v796_v42, %v786_v34  ;;  %4130 = vtanh.f32 %v799_v30 }
 0x580   :  { %v800_v44 = vmul.f32 0.7978846, %v798_v43 }
 0x582   :  { %4132 = vtanh.f32 %v800_v44 }
 0x58b   :  { %v4131_v45 = vpop.eup %4130 }
 0x58c   :  { %v803_v46 = vadd.f32 1.0, %v4131_v45 }
 0x58e   :  { %v805_v49 = vmul.f32 %v803_v46, %v789_v47 }
 0x58f   :  { %v4133_v48 = vpop.eup %4132 }
 0x590   :  { %v804_v54 = vadd.f32 1.0, %v4133_v48  ;;  %v844_v56 = vrot.slane %v805_v49, 2  ;;  %v836_v60 = vrot.slane %v805_v49, 6 }
 0x592   :  { %v806_v55 = vmul.f32 %v804_v54, %v790_v52  ;;  %v841_v6 = vsel %vm89_vm3, 0.0, %v836_v60  ;;  %v4693_v52 = vadd.s32 4, %v4373_v50 }
 0x593   :  { %v842_v10 = vsel %vm146_vm14, %v841_v6, 0.0 }
 0x594   :  { %v837_v57 = vrot.slane %v806_v55, 6  ;;  %v3963_v58 = vpack.i.bf16 %v806_v55, %v805_v49  ;;  %v845_v59 = vrot.slane %v806_v55, 2  ;;  %vm180_vm15 = vcmp.lt.s32.totalorder %v4693_v52, 8 }
 0x596   :  { %3964 = vrot.lane.b32.xlu1 %v3963_v58, %s4209_s24  ;;  %v846_v61 = vsel %vm644_vm13, %v844_v56, %v845_v59  ;;  %v849_v62 = vsel %vm644_vm13, %v845_v59, 0.0  ;;  %v838_v63 = vsel %vm89_vm3, %v836_v60, %v837_v57  ;;  %vm3076_vm3 = vcmask 261120  }
 0x597   :  { %v850_v0 = vsel %vm172_vm12, %v846_v61, 0.0  ;;  %v851_v1 = vsel %vm172_vm12, %v849_v62, 0.0  ;;  %v843_v11 = vsel %vm146_vm14, %v838_v63, 0.0  ;;  %v4705_v63 = vadd.s32 4294967292, %v4373_v50  ;;  %v4038_v50 = vld [vmem:[%s5288_s3 + $0x218] sm:$0xff]  }
 0x598   :  { %v861_v3 = vpack.c.bf16 %v851_v1, %v850_v0 }
 0x599   :  { %vm138_vm2 = vcmp.ge.s32.totalorder %v4705_v63, 0  ;;  %v4052_v63 = vld [vmem:[%s5291_s4 + $0x8] sm:$0xff]  }
 0x59a   :  { %3341 = vmatprep.mubr.msk.bf16.mxu0 %vm261_vm10, %v861_v3 }
 0x608   :  { %v3965_v7 = vpop.permute.xlu1 %3964 }
 0x609   :  { %v3967_v8 = vunpack.i.h.bf16 %v3965_v7  ;;  %v3966_v9 = vunpack.i.l.bf16 %v3965_v7 }
 0x60b   :  { %v858_v12 = vsel %vm261_vm10, %v842_v10, %v3966_v9  ;;  %v859_v13 = vsel %vm261_vm10, %v843_v11, %v3967_v8 }
 0x60c   :  { %v860_v51 = vpack.c.bf16 %v859_v13, %v858_v12  ;;  %v4039_v12 = vld [vmem:[%s5288_s3 + $0x210] sm:$0xff]   ;;  %v4040_v13 = vld [vmem:[%s5288_s3 + $0x208] sm:$0xff]  }
 0x60e   :  { %976 = vmatmul.mubr.bf16.vlgmr.msra.gmra.mxu0 %v860_v51  ;;  %v4041_v51 = vld [vmem:[%s5288_s3 + $0x200] sm:$0xff]  }
 0x60f   :  { %1337 = vmatpush1.bf16.msra.mxu0 %v4038_v50 }
 0x610   :  { %1338 = vmatprep.subr.bf16.mxu0 %v4208_v14 }
 0x613   :  { %1339 = vmatpush1.bf16.msra.mxu0 %v4039_v12 }
 0x614   :  { %1340 = vmatprep.subr.bf16.mxu0 %v4208_v14 }
 0x617   :  { %1341 = vmatpush1.bf16.msra.mxu0 %v4040_v13 }
 0x618   :  { %1342 = vmatprep.subr.bf16.mxu0 %v4208_v14 }
 0x61b   :  { %1343 = vmatpush1.bf16.msra.mxu0 %v4041_v51 }
 0x61c   :  { %1344 = vmatprep.subr.bf16.mxu0 %v4208_v14 }
 0x61f   :  { %1345 = vmatpush1.bf16.msra.mxu0 %v4042_v53 }
 0x620   :  { %1346 = vmatprep.subr.bf16.mxu0 %v4208_v14 }
 0x623   :  { %1347 = vmatpush1.bf16.msra.mxu0 %v4043_v15 }
 0x624   :  { %1348 = vmatprep.subr.bf16.mxu0 %v4208_v14 }
 0x627   :  { %1349 = vmatpush1.bf16.msra.mxu0 %v4044_v4 }
 0x628   :  { %1350 = vmatprep.subr.bf16.mxu0 %v4208_v14 }
 0x62b   :  { %1351 = vmatpush1.bf16.msra.mxu0 %v4045_v16 }
 0x62c   :  { %1360 = vmatprep.subr.bf16.mxu0 %v4208_v14 }
 0x62f   :  { %1361 = vmatpush2.bf16.msra.mxu0 %v4046_v5 }
 0x630   :  { %1362 = vmatprep.subr.bf16.mxu0 %v4208_v14 }
 0x633   :  { %1363 = vmatpush2.bf16.msra.mxu0 %v4047_v17 }
 0x634   :  { %1364 = vmatprep.subr.bf16.mxu0 %v4208_v14 }
 0x637   :  { %1365 = vmatpush2.bf16.msra.mxu0 %v4048_v18 }
 0x638   :  { %1366 = vmatprep.subr.bf16.mxu0 %v4208_v14 }
 0x6ce   :  { %v977_v24 = vpop.f32.mrf.mxu0 }
 0x6cf   :  { %v978_v25 = vadd.f32 %v3328_v23, %v977_v24 }
 0x6d0   :  { %v979_v26 = vpop.f32.mrf.mxu0 }
 0x6d1   :  { %v4673_v27 = vadd.f32 %v978_v25, %v4515_v29 }
 0x6d2   :  { %v980_v28 = vpop.f32.mrf.mxu0 }
 0x6d3   :  { %v981_v31 = vadd.f32 %v3328_v23, %v980_v28  ;;  %v988_v32 = vmul.f32 0.044715, %v4673_v27  ;;  %v986_v45 = vmul.f32 0.5, %v4673_v27 }
 0x6d4   :  { %v982_v33 = vpop.f32.mrf.mxu0 }
 0x6d5   :  { %v4677_v34 = vadd.f32 %v981_v31, %v4519_v35  ;;  %v990_v37 = vmul.f32 %v988_v32, %v4673_v27  ;;  %v4037_v35 = vld [vmem:[%s5288_s3 + $0x1c0] sm:$0xff]  }
 0x6d6   :  { %1176 = vmatpush2.bf16.msra.mxu1 %v4037_v35 }
 0x6d7   :  { %v989_v38 = vmul.f32 0.044715, %v4677_v34  ;;  %v992_v39 = vmul.f32 %v990_v37, %v4673_v27  ;;  %3736 = vmatprep.subr.bf16.mxu1 %v4206_v2  ;;  %v987_v47 = vmul.f32 0.5, %v4677_v34 }
 0x6d9   :  { %v991_v40 = vmul.f32 %v989_v38, %v4677_v34  ;;  %v994_v41 = vadd.f32 %v992_v39, %v4673_v27 }
 0x6db   :  { %v993_v29 = vmul.f32 %v991_v40, %v4677_v34  ;;  %v996_v30 = vmul.f32 0.7978846, %v994_v41  ;;  %v4049_v41 = vld [vmem:[%s5288_s3 + $0x220] sm:$0xff]  }
 0x6dc   :  { %1367 = vmatpush2.bf16.msra.mxu0 %v4049_v41 }
 0x6dd   :  { %v995_v42 = vadd.f32 %v993_v29, %v4677_v34  ;;  %4134 = vtanh.f32 %v996_v30  ;;  %3748 = vmatprep.subr.bf16.mxu0 %v4206_v2 }
 0x6df   :  { %v997_v43 = vmul.f32 0.7978846, %v995_v42 }
 0x6e1   :  { %4136 = vtanh.f32 %v997_v43 }
 0x6ea   :  { %v4135_v44 = vpop.eup %4134 }
 0x6eb   :  { %v1000_v36 = vadd.f32 1.0, %v4135_v44 }
 0x6ed   :  { %v1002_v49 = vmul.f32 %v1000_v36, %v986_v45 }
 0x6ee   :  { %v4137_v46 = vpop.eup %4136 }
 0x6ef   :  { %v1001_v48 = vadd.f32 1.0, %v4137_v46  ;;  %v1034_v57 = vrot.slane %v1002_v49, 4 }
 0x6f1   :  { %v1003_v54 = vmul.f32 %v1001_v48, %v987_v47  ;;  %v1039_v0 = vsel %vm1033_vm1, 0.0, %v1034_v57 }
 0x6f2   :  { %v1044_v7 = vsel %vm138_vm2, %v1039_v0, 0.0 }
 0x6f3   :  { %v1035_v55 = vrot.slane %v1003_v54, 4  ;;  %v3968_v56 = vpack.i.bf16 %v1003_v54, %v1002_v49 }
 0x6f5   :  { %3969 = vrot.lane.b32.xlu1 %v3968_v56, %s4209_s24  ;;  %v1036_v58 = vsel %vm1033_vm1, %v1034_v57, %v1035_v55  ;;  %v1047_v59 = vsel %vm1033_vm1, %v1035_v55, 0.0 }
 0x6f6   :  { %v1052_v60 = vsel %vm180_vm15, %v1036_v58, 0.0  ;;  %v1053_v61 = vsel %vm180_vm15, %v1047_v59, 0.0  ;;  %v1045_v8 = vsel %vm138_vm2, %v1036_v58, 0.0 }
 0x6f7   :  { %v1063_v62 = vpack.c.bf16 %v1053_v61, %v1052_v60 }
 0x6f9   :  { %3380 = vmatprep.mubr.msk.bf16.mxu1 %vm261_vm10, %v1063_v62 }
 0x767   :  { %v3970_v1 = vpop.permute.xlu1 %3969 }
 0x768   :  { %v3972_v3 = vunpack.i.h.bf16 %v3970_v1  ;;  %v3971_v6 = vunpack.i.l.bf16 %v3970_v1 }
 0x76a   :  { %v1060_v9 = vsel %vm261_vm10, %v1044_v7, %v3971_v6  ;;  %v1061_v10 = vsel %vm261_vm10, %v1045_v8, %v3972_v3  ;;  %v4050_v6 = vld [vmem:[%s5291_s4 + $0x18] sm:$0xff]   ;;  %v4051_v7 = vld [vmem:[%s5291_s4 + $0x10] sm:$0xff]   ;;  %v4053_v8 = vld [vmem:[%s5291_s4] sm:$0xff]  }
 0x76b   :  { %v1062_v11 = vpack.c.bf16 %v1061_v10, %v1060_v9  ;;  %v3406_v9 = vld [vmem:[%s5290_s5 + $0x5] ss:$0 sm:$0xff] }
 0x76d   :  { %1178 = vmatmul.mubr.bf16.vlgmr.msra.gmra.mxu1 %v1062_v11 }
 0x76e   :  { %3744 = vmatprep.mubr.msk.bf16.mxu1 %vm4207_vm4, %v4206_v2  ;;  %3737 = vmatpush3.bf16.msra.mxu1 %v4050_v6  ;;  %v4059_v6 = vld [vmem:[%s5291_s4 + $0x50] sm:$0xff]  }
 0x76f   :  { %3738 = vmatprep.subr.bf16.mxu1 %v4206_v2 }
 0x772   :  { %3739 = vmatpush3.bf16.msra.mxu1 %v4051_v7  ;;  %v4060_v7 = vld [vmem:[%s5291_s4 + $0x48] sm:$0xff]  }
 0x773   :  { %3740 = vmatprep.subr.bf16.mxu1 %v4206_v2 }
 0x776   :  { %3741 = vmatpush3.bf16.msra.mxu1 %v4052_v63  ;;  %v4061_v63 = vld [vmem:[%s5291_s4 + $0x40] sm:$0xff]  }
 0x777   :  { %3742 = vmatprep.subr.bf16.mxu1 %v4206_v2 }
 0x77a   :  { %3743 = vmatpush3.bf16.msra.mxu1 %v4053_v8  ;;  %v3436_v8 = vld [vmem:[%s5290_s5 + $0x7] ss:$0 sm:$0xff] }
 0x77b   :  { %3760 = vmatprep.subr.bf16.mxu1 %v4206_v2 }
 0x82d   :  { %v1179_v20 = vpop.f32.mrf.mxu1 }
 0x82e   :  { %v1180_v21 = vadd.f32 %v3367_v19, %v1179_v20 }
 0x82f   :  { %v1181_v22 = vpop.f32.mrf.mxu1 }
 0x830   :  { %v1188_v23 = vmul.f32 0.044715, %v1180_v21  ;;  %v1186_v42 = vmul.f32 0.5, %v1180_v21 }
 0x831   :  { %v1182_v24 = vpop.f32.mrf.mxu1 }
 0x832   :  { %v1190_v25 = vmul.f32 %v1188_v23, %v1180_v21  ;;  %v1183_v26 = vadd.f32 %v3367_v19, %v1182_v24 }
 0x833   :  { %v1184_v28 = vpop.f32.mrf.mxu1 }
 0x834   :  { %v1192_v31 = vmul.f32 %v1190_v25, %v1180_v21  ;;  %v1189_v32 = vmul.f32 0.044715, %v1183_v26  ;;  %v1187_v35 = vmul.f32 0.5, %v1183_v26 }
 0x836   :  { %v1191_v33 = vmul.f32 %v1189_v32, %v1183_v26  ;;  %v1194_v37 = vadd.f32 %v1192_v31, %v1180_v21 }
 0x838   :  { %v1193_v38 = vmul.f32 %v1191_v33, %v1183_v26  ;;  %v1196_v39 = vmul.f32 0.7978846, %v1194_v37  ;;  %v4054_v37 = vld [vmem:[%s5291_s4 + $0x38] sm:$0xff]  }
 0x83a   :  { %v1195_v40 = vadd.f32 %v1193_v38, %v1183_v26  ;;  %4138 = vtanh.f32 %v1196_v39  ;;  %v4055_v38 = vld [vmem:[%s5291_s4 + $0x30] sm:$0xff]   ;;  %v4056_v39 = vld [vmem:[%s5291_s4 + $0x28] sm:$0xff]  }
 0x83c   :  { %v1197_v14 = vmul.f32 0.7978846, %v1195_v40  ;;  %v4057_v40 = vld [vmem:[%s5291_s4 + $0x20] sm:$0xff]  }
 0x83e   :  { %4140 = vtanh.f32 %v1197_v14  ;;  %v3421_v14 = vld [vmem:[%s5290_s5 + $0x6] ss:$0 sm:$0xff] }
 0x847   :  { %v4139_v29 = vpop.eup %4138 }
 0x848   :  { %v1200_v30 = vadd.f32 1.0, %v4139_v29 }
 0x84a   :  { %v1202_v36 = vmul.f32 %v1200_v30, %v1186_v42 }
 0x84b   :  { %v4141_v43 = vpop.eup %4140 }
 0x84c   :  { %v1201_v44 = vadd.f32 1.0, %v4141_v43  ;;  %v1233_v48 = vrot.slane %v1202_v36, 4 }
 0x84e   :  { %v1203_v45 = vmul.f32 %v1201_v44, %v1187_v35  ;;  %v1238_v58 = vsel %vm1033_vm1, 0.0, %v1233_v48 }
 0x84f   :  { %v1239_v62 = vsel %vm138_vm2, %v1238_v58, 0.0 }
 0x850   :  { %v1234_v46 = vrot.slane %v1203_v45, 4  ;;  %v3973_v47 = vpack.i.bf16 %v1203_v45, %v1202_v36 }
 0x852   :  { %3974 = vrot.lane.b32.xlu1 %v3973_v47, %s4209_s24  ;;  %v1235_v49 = vsel %vm1033_vm1, %v1233_v48, %v1234_v46  ;;  %v1242_v54 = vsel %vm1033_vm1, %v1234_v46, 0.0 }
 0x853   :  { %v1243_v55 = vsel %vm180_vm15, %v1235_v49, 0.0  ;;  %v1244_v56 = vsel %vm180_vm15, %v1242_v54, 0.0  ;;  %v1240_v0 = vsel %vm138_vm2, %v1235_v49, 0.0 }
 0x854   :  { %v1254_v57 = vpack.c.bf16 %v1244_v56, %v1243_v55 }
 0x856   :  { %3419 = vmatprep.mubr.msk.bf16.mxu0 %vm261_vm10, %v1254_v57 }
 0x8c4   :  { %v3975_v59 = vpop.permute.xlu1 %3974 }
 0x8c5   :  { %v3977_v60 = vunpack.i.h.bf16 %v3975_v59  ;;  %v3976_v61 = vunpack.i.l.bf16 %v3975_v59 }
 0x8c7   :  { %v1251_v1 = vsel %vm261_vm10, %v1239_v62, %v3976_v61  ;;  %v1252_v3 = vsel %vm261_vm10, %v1240_v0, %v3977_v60 }
 0x8c8   :  { %v1253_v52 = vpack.c.bf16 %v1252_v3, %v1251_v1 }
 0x8ca   :  { %1369 = vmatmul.mubr.bf16.vlgmr.msra.gmra.mxu0 %v1253_v52  ;;  %v4058_v52 = vld [vmem:[%s5291_s4 + $0x58] sm:$0xff]  }
 0x8cb   :  { %3756 = vmatprep.mubr.msk.bf16.mxu0 %vm4207_vm4, %v4206_v2  ;;  %3749 = vmatpush3.bf16.msra.mxu0 %v4054_v37  ;;  %v4063_v37 = vld [vmem:[%s5291_s4 + $0x70] sm:$0xff]  }
 0x8cc   :  { %3750 = vmatprep.subr.bf16.mxu0 %v4206_v2 }
 0x8cf   :  { %3751 = vmatpush3.bf16.msra.mxu0 %v4055_v38  ;;  %v4064_v38 = vld [vmem:[%s5291_s4 + $0x68] sm:$0xff]  }
 0x8d0   :  { %3752 = vmatprep.subr.bf16.mxu0 %v4206_v2 }
 0x8d3   :  { %3753 = vmatpush3.bf16.msra.mxu0 %v4056_v39  ;;  %v4065_v39 = vld [vmem:[%s5291_s4 + $0x60] sm:$0xff]  }
 0x8d4   :  { %3754 = vmatprep.subr.bf16.mxu0 %v4206_v2 }
 0x8d7   :  { %3755 = vmatpush3.bf16.msra.mxu0 %v4057_v40  ;;  %v3451_v40 = vld [vmem:[%s5290_s5 + $0x8] ss:$0 sm:$0xff] }
 0x8d8   :  { %3772 = vmatprep.subr.bf16.mxu0 %v4206_v2 }
 0x98a   :  { %v1370_v10 = vpop.f32.mrf.mxu0 }
 0x98b   :  { %v1371_v11 = vadd.f32 %v3406_v9, %v1370_v10 }
 0x98c   :  { %v1372_v50 = vpop.f32.mrf.mxu0 }
 0x98d   :  { %v4805_v12 = vadd.f32 %v1371_v11, %v4673_v27 }
 0x98e   :  { %v1373_v13 = vpop.f32.mrf.mxu0 }
 0x98f   :  { %v1381_v51 = vmul.f32 0.044715, %v4805_v12  ;;  %v1374_v53 = vadd.f32 %v3406_v9, %v1373_v13  ;;  %v1379_v25 = vmul.f32 0.5, %v4805_v12 }
 0x990   :  { %v1375_v15 = vpop.f32.mrf.mxu0 }
 0x991   :  { %v1383_v4 = vmul.f32 %v1381_v51, %v4805_v12  ;;  %v4810_v16 = vadd.f32 %v1374_v53, %v4677_v34 }
 0x993   :  { %v1385_v5 = vmul.f32 %v1383_v4, %v4805_v12  ;;  %v1382_v17 = vmul.f32 0.044715, %v4810_v16  ;;  %v1380_v26 = vmul.f32 0.5, %v4810_v16 }
 0x995   :  { %v1384_v18 = vmul.f32 %v1382_v17, %v4810_v16  ;;  %v1387_v19 = vadd.f32 %v1385_v5, %v4805_v12 }
 0x997   :  { %v1386_v27 = vmul.f32 %v1384_v18, %v4810_v16  ;;  %v1389_v20 = vmul.f32 0.7978846, %v1387_v19 }
 0x999   :  { %v1388_v21 = vadd.f32 %v1386_v27, %v4810_v16  ;;  %4142 = vtanh.f32 %v1389_v20 }
 0x99b   :  { %v1390_v22 = vmul.f32 0.7978846, %v1388_v21 }
 0x99d   :  { %4144 = vtanh.f32 %v1390_v22 }
 0x9a6   :  { %v4143_v23 = vpop.eup %4142 }
 0x9a7   :  { %v1393_v24 = vadd.f32 1.0, %v4143_v23 }
 0x9a9   :  { %v1395_v31 = vmul.f32 %v1393_v24, %v1379_v25 }
 0x9aa   :  { %v4145_v34 = vpop.eup %4144 }
 0x9ab   :  { %v1394_v28 = vadd.f32 1.0, %v4145_v34 }
 0x9ad   :  { %v1396_v32 = vmul.f32 %v1394_v28, %v1380_v26 }
 0x9af   :  { %v1407_v33 = vpack.c.bf16 %v1396_v32, %v1395_v31 }
 0x9b1   :  { %3745 = vmatmul.mubr.msk.bf16.vlgmr.msra.gmra.mxu1 %vm261_vm10, %v1407_v33  ;;  %v4062_v33 = vld [vmem:[%s5291_s4 + $0x78] sm:$0xff]  }
 0x9b2   :  { %3768 = vmatprep.mubr.msk.bf16.mxu1 %vm4207_vm4, %v4206_v2  ;;  %3761 = vmatpush3.bf16.msra.mxu1 %v4058_v52  ;;  %v4067_v52 = vld [vmem:[%s5291_s4 + $0x90] sm:$0xff]  }
 0x9b3   :  { %3762 = vmatprep.subr.bf16.mxu1 %v4206_v2 }
 0x9b6   :  { %3763 = vmatpush3.bf16.msra.mxu1 %v4059_v6  ;;  %v4068_v6 = vld [vmem:[%s5291_s4 + $0x88] sm:$0xff]  }
 0x9b7   :  { %3764 = vmatprep.subr.bf16.mxu1 %v4206_v2 }
 0x9ba   :  { %3765 = vmatpush3.bf16.msra.mxu1 %v4060_v7  ;;  %v4069_v7 = vld [vmem:[%s5291_s4 + $0x80] sm:$0xff]  }
 0x9bb   :  { %3766 = vmatprep.subr.bf16.mxu1 %v4206_v2 }
 0x9be   :  { %3767 = vmatpush3.bf16.msra.mxu1 %v4061_v63  ;;  %v3466_v63 = vld [vmem:[%s5290_s5 + $0x9] ss:$0 sm:$0xff] }
 0x9bf   :  { %3784 = vmatprep.subr.bf16.mxu1 %v4206_v2 }
 0xa71   :  { %v1475_v41 = vpop.f32.mrf.mxu1 }
 0xa72   :  { %v1476_v29 = vadd.f32 %v3421_v14, %v1475_v41 }
 0xa73   :  { %v3746_v30 = vpop.f32.mrf.mxu1 }
 0xa74   :  { %v1484_v42 = vmul.f32 0.044715, %v1476_v29  ;;  %v1482_v60 = vmul.f32 0.5, %v1476_v29 }
 0xa75   :  { %v1478_v43 = vpop.f32.mrf.mxu1 }
 0xa76   :  { %v1486_v35 = vmul.f32 %v1484_v42, %v1476_v29  ;;  %v1479_v44 = vadd.f32 %v3421_v14, %v1478_v43 }
 0xa77   :  { %v3747_v36 = vpop.f32.mrf.mxu1 }
 0xa78   :  { %v1488_v45 = vmul.f32 %v1486_v35, %v1476_v29  ;;  %v1485_v46 = vmul.f32 0.044715, %v1479_v44  ;;  %v1483_v61 = vmul.f32 0.5, %v1479_v44 }
 0xa7a   :  { %v1490_v47 = vadd.f32 %v1488_v45, %v1476_v29  ;;  %v1487_v48 = vmul.f32 %v1485_v46, %v1479_v44 }
 0xa7c   :  { %v1492_v49 = vmul.f32 0.7978846, %v1490_v47  ;;  %v1489_v54 = vmul.f32 %v1487_v48, %v1479_v44 }
 0xa7e   :  { %4146 = vtanh.f32 %v1492_v49  ;;  %v1491_v55 = vadd.f32 %v1489_v54, %v1479_v44 }
 0xa80   :  { %v1493_v56 = vmul.f32 0.7978846, %v1491_v55 }
 0xa82   :  { %4148 = vtanh.f32 %v1493_v56 }
 0xa8b   :  { %v4147_v57 = vpop.eup %4146 }
 0xa8c   :  { %v1496_v58 = vadd.f32 1.0, %v4147_v57 }
 0xa8e   :  { %v1498_v0 = vmul.f32 %v1496_v58, %v1482_v60 }
 0xa8f   :  { %v4149_v59 = vpop.eup %4148 }
 0xa90   :  { %v1497_v62 = vadd.f32 1.0, %v4149_v59 }
 0xa92   :  { %v1499_v1 = vmul.f32 %v1497_v62, %v1483_v61 }
 0xa94   :  { %v1511_v3 = vpack.c.bf16 %v1499_v1, %v1498_v0 }
 0xa96   :  { %3757 = vmatmul.mubr.msk.bf16.vlgmr.msra.gmra.mxu0 %vm261_vm10, %v1511_v3  ;;  %v4066_v3 = vld [vmem:[%s5291_s4 + $0x98] sm:$0xff]  }
 0xa97   :  { %3780 = vmatprep.mubr.msk.bf16.mxu0 %vm4207_vm4, %v4206_v2  ;;  %3773 = vmatpush3.bf16.msra.mxu0 %v4062_v33  ;;  %v4071_v33 = vld [vmem:[%s5291_s4 + $0xb0] sm:$0xff]  }
 0xa98   :  { %3774 = vmatprep.subr.bf16.mxu0 %v4206_v2 }
 0xa9b   :  { %3775 = vmatpush3.bf16.msra.mxu0 %v4063_v37  ;;  %v4072_v37 = vld [vmem:[%s5291_s4 + $0xa8] sm:$0xff]  }
 0xa9c   :  { %3776 = vmatprep.subr.bf16.mxu0 %v4206_v2 }
 0xa9f   :  { %3777 = vmatpush3.bf16.msra.mxu0 %v4064_v38  ;;  %v4073_v38 = vld [vmem:[%s5291_s4 + $0xa0] sm:$0xff]  }
 0xaa0   :  { %3778 = vmatprep.subr.bf16.mxu0 %v4206_v2 }
 0xaa3   :  { %3779 = vmatpush3.bf16.msra.mxu0 %v4065_v39  ;;  %v3481_v39 = vld [vmem:[%s5290_s5 + $0xa] ss:$0 sm:$0xff] }
 0xaa4   :  { %3796 = vmatprep.subr.bf16.mxu0 %v4206_v2 }
 0xb56   :  { %v1579_v9 = vpop.f32.mrf.mxu0 }
 0xb57   :  { %v1580_v10 = vadd.f32 %v3436_v8, %v1579_v9 }
 0xb58   :  { %v3758_v11 = vpop.f32.mrf.mxu0 }
 0xb59   :  { %v4865_v50 = vadd.f32 %v1580_v10, %v4805_v12 }
 0xb5a   :  { %v1582_v13 = vpop.f32.mrf.mxu0 }
 0xb5b   :  { %v1590_v51 = vmul.f32 0.044715, %v4865_v50  ;;  %v1583_v53 = vadd.f32 %v3436_v8, %v1582_v13  ;;  %v1588_v34 = vmul.f32 0.5, %v4865_v50 }
 0xb5c   :  { %v3759_v15 = vpop.f32.mrf.mxu0 }
 0xb5d   :  { %v1592_v4 = vmul.f32 %v1590_v51, %v4865_v50  ;;  %v4870_v5 = vadd.f32 %v1583_v53, %v4810_v16 }
 0xb5f   :  { %v1594_v17 = vmul.f32 %v1592_v4, %v4865_v50  ;;  %v1591_v18 = vmul.f32 0.044715, %v4870_v5  ;;  %v1589_v25 = vmul.f32 0.5, %v4870_v5 }
 0xb61   :  { %v1593_v19 = vmul.f32 %v1591_v18, %v4870_v5  ;;  %v1596_v27 = vadd.f32 %v1594_v17, %v4865_v50 }
 0xb63   :  { %v1595_v12 = vmul.f32 %v1593_v19, %v4870_v5  ;;  %v1598_v20 = vmul.f32 0.7978846, %v1596_v27 }
 0xb65   :  { %v1597_v21 = vadd.f32 %v1595_v12, %v4870_v5  ;;  %4150 = vtanh.f32 %v1598_v20 }
 0xb67   :  { %v1599_v22 = vmul.f32 0.7978846, %v1597_v21 }
 0xb69   :  { %4152 = vtanh.f32 %v1599_v22 }
 0xb72   :  { %v4151_v23 = vpop.eup %4150 }
 0xb73   :  { %v1602_v24 = vadd.f32 1.0, %v4151_v23 }
 0xb75   :  { %v1604_v28 = vmul.f32 %v1602_v24, %v1588_v34 }
 0xb76   :  { %v4153_v16 = vpop.eup %4152 }
 0xb77   :  { %v1603_v26 = vadd.f32 1.0, %v4153_v16 }
 0xb79   :  { %v1605_v31 = vmul.f32 %v1603_v26, %v1589_v25 }
 0xb7b   :  { %v1617_v32 = vpack.c.bf16 %v1605_v31, %v1604_v28 }
 0xb7d   :  { %3769 = vmatmul.mubr.msk.bf16.vlgmr.msra.gmra.mxu1 %vm261_vm10, %v1617_v32  ;;  %v4070_v32 = vld [vmem:[%s5291_s4 + $0xb8] sm:$0xff]  }
 0xb7e   :  { %3792 = vmatprep.mubr.msk.bf16.mxu1 %vm4207_vm4, %v4206_v2  ;;  %3785 = vmatpush3.bf16.msra.mxu1 %v4066_v3  ;;  %v4075_v3 = vld [vmem:[%s5291_s4 + $0xd0] sm:$0xff]  }
 0xb7f   :  { %3786 = vmatprep.subr.bf16.mxu1 %v4206_v2 }
 0xb82   :  { %3787 = vmatpush3.bf16.msra.mxu1 %v4067_v52  ;;  %v4076_v52 = vld [vmem:[%s5291_s4 + $0xc8] sm:$0xff]  }
 0xb83   :  { %3788 = vmatprep.subr.bf16.mxu1 %v4206_v2 }
 0xb86   :  { %3789 = vmatpush3.bf16.msra.mxu1 %v4068_v6  ;;  %v4077_v6 = vld [vmem:[%s5291_s4 + $0xc0] sm:$0xff]  }
 0xb87   :  { %3790 = vmatprep.subr.bf16.mxu1 %v4206_v2 }
 0xb8a   :  { %3791 = vmatpush3.bf16.msra.mxu1 %v4069_v7  ;;  %v3496_v7 = vld [vmem:[%s5290_s5 + $0xb] ss:$0 sm:$0xff] }
 0xb8b   :  { %3808 = vmatprep.subr.bf16.mxu1 %v4206_v2 }
 0xc3d   :  { %v1685_v14 = vpop.f32.mrf.mxu1 }
 0xc3e   :  { %v1686_v41 = vadd.f32 %v3451_v40, %v1685_v14 }
 0xc3f   :  { %v3770_v29 = vpop.f32.mrf.mxu1 }
 0xc40   :  { %v1694_v30 = vmul.f32 0.044715, %v1686_v41  ;;  %v1692_v59 = vmul.f32 0.5, %v1686_v41 }
 0xc41   :  { %v1688_v42 = vpop.f32.mrf.mxu1 }
 0xc42   :  { %v1696_v43 = vmul.f32 %v1694_v30, %v1686_v41  ;;  %v1689_v35 = vadd.f32 %v3451_v40, %v1688_v42 }
 0xc43   :  { %v3771_v44 = vpop.f32.mrf.mxu1 }
 0xc44   :  { %v1698_v36 = vmul.f32 %v1696_v43, %v1686_v41  ;;  %v1695_v45 = vmul.f32 0.044715, %v1689_v35  ;;  %v1693_v60 = vmul.f32 0.5, %v1689_v35 }
 0xc46   :  { %v1700_v46 = vadd.f32 %v1698_v36, %v1686_v41  ;;  %v1697_v47 = vmul.f32 %v1695_v45, %v1689_v35 }
 0xc48   :  { %v1702_v48 = vmul.f32 0.7978846, %v1700_v46  ;;  %v1699_v49 = vmul.f32 %v1697_v47, %v1689_v35 }
 0xc4a   :  { %4154 = vtanh.f32 %v1702_v48  ;;  %v1701_v54 = vadd.f32 %v1699_v49, %v1689_v35 }
 0xc4c   :  { %v1703_v55 = vmul.f32 0.7978846, %v1701_v54 }
 0xc4e   :  { %4156 = vtanh.f32 %v1703_v55 }
 0xc57   :  { %v4155_v56 = vpop.eup %4154 }
 0xc58   :  { %v1706_v57 = vadd.f32 1.0, %v4155_v56 }
 0xc5a   :  { %v1708_v62 = vmul.f32 %v1706_v57, %v1692_v59 }
 0xc5b   :  { %v4157_v58 = vpop.eup %4156 }
 0xc5c   :  { %v1707_v61 = vadd.f32 1.0, %v4157_v58 }
 0xc5e   :  { %v1709_v0 = vmul.f32 %v1707_v61, %v1693_v60 }
 0xc60   :  { %v1721_v1 = vpack.c.bf16 %v1709_v0, %v1708_v62 }
 0xc62   :  { %3781 = vmatmul.mubr.msk.bf16.vlgmr.msra.gmra.mxu0 %vm261_vm10, %v1721_v1  ;;  %v4074_v1 = vld [vmem:[%s5291_s4 + $0xd8] sm:$0xff]  }
 0xc63   :  { %3804 = vmatprep.mubr.msk.bf16.mxu0 %vm4207_vm4, %v4206_v2  ;;  %3797 = vmatpush3.bf16.msra.mxu0 %v4070_v32  ;;  %v4079_v32 = vld [vmem:[%s5291_s4 + $0xf0] sm:$0xff]  }
 0xc64   :  { %3798 = vmatprep.subr.bf16.mxu0 %v4206_v2 }
 0xc67   :  { %3799 = vmatpush3.bf16.msra.mxu0 %v4071_v33  ;;  %v4080_v33 = vld [vmem:[%s5291_s4 + $0xe8] sm:$0xff]  }
 0xc68   :  { %3800 = vmatprep.subr.bf16.mxu0 %v4206_v2 }
 0xc6b   :  { %3801 = vmatpush3.bf16.msra.mxu0 %v4072_v37  ;;  %v4081_v37 = vld [vmem:[%s5291_s4 + $0xe0] sm:$0xff]  }
 0xc6c   :  { %3802 = vmatprep.subr.bf16.mxu0 %v4206_v2 }
 0xc6f   :  { %3803 = vmatpush3.bf16.msra.mxu0 %v4073_v38  ;;  %v3511_v38 = vld [vmem:[%s5290_s5 + $0xc] ss:$0 sm:$0xff] }
 0xc70   :  { %3820 = vmatprep.subr.bf16.mxu0 %v4206_v2 }
 0xd22   :  { %v1789_v8 = vpop.f32.mrf.mxu0 }
 0xd23   :  { %v1790_v9 = vadd.f32 %v3466_v63, %v1789_v8 }
 0xd24   :  { %v3782_v10 = vpop.f32.mrf.mxu0 }
 0xd25   :  { %v4925_v11 = vadd.f32 %v1790_v9, %v4865_v50 }
 0xd26   :  { %v1792_v13 = vpop.f32.mrf.mxu0 }
 0xd27   :  { %v1800_v51 = vmul.f32 0.044715, %v4925_v11  ;;  %v1793_v53 = vadd.f32 %v3466_v63, %v1792_v13  ;;  %v1798_v16 = vmul.f32 0.5, %v4925_v11 }
 0xd28   :  { %v3783_v15 = vpop.f32.mrf.mxu0 }
 0xd29   :  { %v1802_v4 = vmul.f32 %v1800_v51, %v4925_v11  ;;  %v4930_v17 = vadd.f32 %v1793_v53, %v4870_v5 }
 0xd2b   :  { %v1804_v18 = vmul.f32 %v1802_v4, %v4925_v11  ;;  %v1801_v19 = vmul.f32 0.044715, %v4930_v17  ;;  %v1799_v34 = vmul.f32 0.5, %v4930_v17 }
 0xd2d   :  { %v1803_v27 = vmul.f32 %v1801_v19, %v4930_v17  ;;  %v1806_v12 = vadd.f32 %v1804_v18, %v4925_v11 }
 0xd2f   :  { %v1805_v50 = vmul.f32 %v1803_v27, %v4930_v17  ;;  %v1808_v20 = vmul.f32 0.7978846, %v1806_v12 }
 0xd31   :  { %v1807_v21 = vadd.f32 %v1805_v50, %v4930_v17  ;;  %4158 = vtanh.f32 %v1808_v20 }
 0xd33   :  { %v1809_v22 = vmul.f32 0.7978846, %v1807_v21 }
 0xd35   :  { %4160 = vtanh.f32 %v1809_v22 }
 0xd3e   :  { %v4159_v23 = vpop.eup %4158 }
 0xd3f   :  { %v1812_v24 = vadd.f32 1.0, %v4159_v23 }
 0xd41   :  { %v1814_v26 = vmul.f32 %v1812_v24, %v1798_v16 }
 0xd42   :  { %v4161_v5 = vpop.eup %4160 }
 0xd43   :  { %v1813_v25 = vadd.f32 1.0, %v4161_v5 }
 0xd45   :  { %v1815_v28 = vmul.f32 %v1813_v25, %v1799_v34 }
 0xd47   :  { %v1827_v31 = vpack.c.bf16 %v1815_v28, %v1814_v26 }
 0xd49   :  { %3793 = vmatmul.mubr.msk.bf16.vlgmr.msra.gmra.mxu1 %vm261_vm10, %v1827_v31  ;;  %v4078_v31 = vld [vmem:[%s5291_s4 + $0xf8] sm:$0xff]  }
 0xd4a   :  { %3816 = vmatprep.mubr.msk.bf16.mxu1 %vm4207_vm4, %v4206_v2  ;;  %3809 = vmatpush3.bf16.msra.mxu1 %v4074_v1  ;;  %v4083_v1 = vld [vmem:[%s5291_s4 + $0x110] sm:$0xff]  }
 0xd4b   :  { %3810 = vmatprep.subr.bf16.mxu1 %v4206_v2 }
 0xd4e   :  { %3811 = vmatpush3.bf16.msra.mxu1 %v4075_v3  ;;  %v4084_v3 = vld [vmem:[%s5291_s4 + $0x108] sm:$0xff]  }
 0xd4f   :  { %3812 = vmatprep.subr.bf16.mxu1 %v4206_v2 }
 0xd52   :  { %3813 = vmatpush3.bf16.msra.mxu1 %v4076_v52  ;;  %v4085_v52 = vld [vmem:[%s5291_s4 + $0x100] sm:$0xff]  }
 0xd53   :  { %3814 = vmatprep.subr.bf16.mxu1 %v4206_v2 }
 0xd56   :  { %3815 = vmatpush3.bf16.msra.mxu1 %v4077_v6  ;;  %v3526_v6 = vld [vmem:[%s5290_s5 + $0xd] ss:$0 sm:$0xff] }
 0xd57   :  { %3832 = vmatprep.subr.bf16.mxu1 %v4206_v2 }
 0xe09   :  { %v1895_v40 = vpop.f32.mrf.mxu1 }
 0xe0a   :  { %v1896_v14 = vadd.f32 %v3481_v39, %v1895_v40 }
 0xe0b   :  { %v3794_v41 = vpop.f32.mrf.mxu1 }
 0xe0c   :  { %v1904_v29 = vmul.f32 0.044715, %v1896_v14  ;;  %v1902_v58 = vmul.f32 0.5, %v1896_v14 }
 0xe0d   :  { %v1898_v30 = vpop.f32.mrf.mxu1 }
 0xe0e   :  { %v1906_v42 = vmul.f32 %v1904_v29, %v1896_v14  ;;  %v1899_v43 = vadd.f32 %v3481_v39, %v1898_v30 }
 0xe0f   :  { %v3795_v35 = vpop.f32.mrf.mxu1 }
 0xe10   :  { %v1908_v44 = vmul.f32 %v1906_v42, %v1896_v14  ;;  %v1905_v36 = vmul.f32 0.044715, %v1899_v43  ;;  %v1903_v59 = vmul.f32 0.5, %v1899_v43 }
 0xe12   :  { %v1910_v45 = vadd.f32 %v1908_v44, %v1896_v14  ;;  %v1907_v46 = vmul.f32 %v1905_v36, %v1899_v43 }
 0xe14   :  { %v1912_v47 = vmul.f32 0.7978846, %v1910_v45  ;;  %v1909_v48 = vmul.f32 %v1907_v46, %v1899_v43 }
 0xe16   :  { %4162 = vtanh.f32 %v1912_v47  ;;  %v1911_v49 = vadd.f32 %v1909_v48, %v1899_v43 }
 0xe18   :  { %v1913_v54 = vmul.f32 0.7978846, %v1911_v49 }
 0xe1a   :  { %4164 = vtanh.f32 %v1913_v54 }
 0xe23   :  { %v4163_v55 = vpop.eup %4162 }
 0xe24   :  { %v1916_v56 = vadd.f32 1.0, %v4163_v55 }
 0xe26   :  { %v1918_v61 = vmul.f32 %v1916_v56, %v1902_v58 }
 0xe27   :  { %v4165_v57 = vpop.eup %4164 }
 0xe28   :  { %v1917_v60 = vadd.f32 1.0, %v4165_v57 }
 0xe2a   :  { %v1919_v62 = vmul.f32 %v1917_v60, %v1903_v59 }
 0xe2c   :  { %v1931_v0 = vpack.c.bf16 %v1919_v62, %v1918_v61 }
 0xe2e   :  { %3805 = vmatmul.mubr.msk.bf16.vlgmr.msra.gmra.mxu0 %vm261_vm10, %v1931_v0  ;;  %v4082_v0 = vld [vmem:[%s5291_s4 + $0x118] sm:$0xff]  }
 0xe2f   :  { %3828 = vmatprep.mubr.msk.bf16.mxu0 %vm4207_vm4, %v4206_v2  ;;  %3821 = vmatpush3.bf16.msra.mxu0 %v4078_v31  ;;  %v4087_v31 = vld [vmem:[%s5291_s4 + $0x130] sm:$0xff]  }
 0xe30   :  { %3822 = vmatprep.subr.bf16.mxu0 %v4206_v2 }
 0xe33   :  { %3823 = vmatpush3.bf16.msra.mxu0 %v4079_v32  ;;  %v4088_v32 = vld [vmem:[%s5291_s4 + $0x128] sm:$0xff]  }
 0xe34   :  { %3824 = vmatprep.subr.bf16.mxu0 %v4206_v2 }
 0xe37   :  { %3825 = vmatpush3.bf16.msra.mxu0 %v4080_v33  ;;  %v4089_v33 = vld [vmem:[%s5291_s4 + $0x120] sm:$0xff]  }
 0xe38   :  { %3826 = vmatprep.subr.bf16.mxu0 %v4206_v2 }
 0xe3b   :  { %3827 = vmatpush3.bf16.msra.mxu0 %v4081_v37  ;;  %v3541_v37 = vld [vmem:[%s5290_s5 + $0xe] ss:$0 sm:$0xff] }
 0xe3c   :  { %3844 = vmatprep.subr.bf16.mxu0 %v4206_v2 }
 0xeee   :  { %v1999_v63 = vpop.f32.mrf.mxu0 }
 0xeef   :  { %v2000_v8 = vadd.f32 %v3496_v7, %v1999_v63 }
 0xef0   :  { %v3806_v9 = vpop.f32.mrf.mxu0 }
 0xef1   :  { %v4985_v10 = vadd.f32 %v2000_v8, %v4925_v11 }
 0xef2   :  { %v2002_v13 = vpop.f32.mrf.mxu0 }
 0xef3   :  { %v2010_v51 = vmul.f32 0.044715, %v4985_v10  ;;  %v2003_v53 = vadd.f32 %v3496_v7, %v2002_v13  ;;  %v2008_v5 = vmul.f32 0.5, %v4985_v10 }
 0xef4   :  { %v3807_v15 = vpop.f32.mrf.mxu0 }
 0xef5   :  { %v2012_v4 = vmul.f32 %v2010_v51, %v4985_v10  ;;  %v4990_v18 = vadd.f32 %v2003_v53, %v4930_v17 }
 0xef7   :  { %v2014_v19 = vmul.f32 %v2012_v4, %v4985_v10  ;;  %v2011_v27 = vmul.f32 0.044715, %v4990_v18  ;;  %v2009_v16 = vmul.f32 0.5, %v4990_v18 }
 0xef9   :  { %v2013_v12 = vmul.f32 %v2011_v27, %v4990_v18  ;;  %v2016_v50 = vadd.f32 %v2014_v19, %v4985_v10 }
 0xefb   :  { %v2015_v11 = vmul.f32 %v2013_v12, %v4990_v18  ;;  %v2018_v20 = vmul.f32 0.7978846, %v2016_v50 }
 0xefd   :  { %v2017_v21 = vadd.f32 %v2015_v11, %v4990_v18  ;;  %4166 = vtanh.f32 %v2018_v20 }
 0xeff   :  { %v2019_v22 = vmul.f32 0.7978846, %v2017_v21 }
 0xf01   :  { %4168 = vtanh.f32 %v2019_v22 }
 0xf0a   :  { %v4167_v23 = vpop.eup %4166 }
 0xf0b   :  { %v2022_v24 = vadd.f32 1.0, %v4167_v23 }
 0xf0d   :  { %v2024_v25 = vmul.f32 %v2022_v24, %v2008_v5 }
 0xf0e   :  { %v4169_v17 = vpop.eup %4168 }
 0xf0f   :  { %v2023_v34 = vadd.f32 1.0, %v4169_v17 }
 0xf11   :  { %v2025_v26 = vmul.f32 %v2023_v34, %v2009_v16 }
 0xf13   :  { %v2037_v28 = vpack.c.bf16 %v2025_v26, %v2024_v25 }
 0xf15   :  { %3817 = vmatmul.mubr.msk.bf16.vlgmr.msra.gmra.mxu1 %vm261_vm10, %v2037_v28  ;;  %v4086_v28 = vld [vmem:[%s5291_s4 + $0x138] sm:$0xff]  }
 0xf16   :  { %3840 = vmatprep.mubr.msk.bf16.mxu1 %vm4207_vm4, %v4206_v2  ;;  %3833 = vmatpush3.bf16.msra.mxu1 %v4082_v0  ;;  %v4091_v0 = vld [vmem:[%s5291_s4 + $0x150] sm:$0xff]  }
 0xf17   :  { %3834 = vmatprep.subr.bf16.mxu1 %v4206_v2 }
 0xf1a   :  { %3835 = vmatpush3.bf16.msra.mxu1 %v4083_v1  ;;  %v4092_v1 = vld [vmem:[%s5291_s4 + $0x148] sm:$0xff]  }
 0xf1b   :  { %3836 = vmatprep.subr.bf16.mxu1 %v4206_v2 }
 0xf1e   :  { %3837 = vmatpush3.bf16.msra.mxu1 %v4084_v3  ;;  %v4093_v3 = vld [vmem:[%s5291_s4 + $0x140] sm:$0xff]  }
 0xf1f   :  { %3838 = vmatprep.subr.bf16.mxu1 %v4206_v2 }
 0xf22   :  { %3839 = vmatpush3.bf16.msra.mxu1 %v4085_v52  ;;  %v3556_v52 = vld [vmem:[%s5290_s5 + $0xf] ss:$0 sm:$0xff] }
 0xf23   :  { %3856 = vmatprep.subr.bf16.mxu1 %v4206_v2 }
 0xfd5   :  { %v2105_v39 = vpop.f32.mrf.mxu1 }
 0xfd6   :  { %v2106_v40 = vadd.f32 %v3511_v38, %v2105_v39 }
 0xfd7   :  { %v3818_v14 = vpop.f32.mrf.mxu1 }
 0xfd8   :  { %v2114_v41 = vmul.f32 0.044715, %v2106_v40  ;;  %v2112_v57 = vmul.f32 0.5, %v2106_v40 }
 0xfd9   :  { %v2108_v29 = vpop.f32.mrf.mxu1 }
 0xfda   :  { %v2116_v30 = vmul.f32 %v2114_v41, %v2106_v40  ;;  %v2109_v42 = vadd.f32 %v3511_v38, %v2108_v29 }
 0xfdb   :  { %v3819_v43 = vpop.f32.mrf.mxu1 }
 0xfdc   :  { %v2118_v35 = vmul.f32 %v2116_v30, %v2106_v40  ;;  %v2115_v44 = vmul.f32 0.044715, %v2109_v42  ;;  %v2113_v58 = vmul.f32 0.5, %v2109_v42 }
 0xfde   :  { %v2120_v36 = vadd.f32 %v2118_v35, %v2106_v40  ;;  %v2117_v45 = vmul.f32 %v2115_v44, %v2109_v42 }
 0xfe0   :  { %v2122_v46 = vmul.f32 0.7978846, %v2120_v36  ;;  %v2119_v47 = vmul.f32 %v2117_v45, %v2109_v42 }
 0xfe2   :  { %4170 = vtanh.f32 %v2122_v46  ;;  %v2121_v48 = vadd.f32 %v2119_v47, %v2109_v42 }
 0xfe4   :  { %v2123_v49 = vmul.f32 0.7978846, %v2121_v48 }
 0xfe6   :  { %4172 = vtanh.f32 %v2123_v49 }
 0xfef   :  { %v4171_v54 = vpop.eup %4170 }
 0xff0   :  { %v2126_v55 = vadd.f32 1.0, %v4171_v54 }
 0xff2   :  { %v2128_v60 = vmul.f32 %v2126_v55, %v2112_v57 }
 0xff3   :  { %v4173_v56 = vpop.eup %4172 }
 0xff4   :  { %v2127_v59 = vadd.f32 1.0, %v4173_v56 }
 0xff6   :  { %v2129_v61 = vmul.f32 %v2127_v59, %v2113_v58 }
 0xff8   :  { %v2141_v62 = vpack.c.bf16 %v2129_v61, %v2128_v60 }
 0xffa   :  { %3829 = vmatmul.mubr.msk.bf16.vlgmr.msra.gmra.mxu0 %vm261_vm10, %v2141_v62  ;;  %v4090_v62 = vld [vmem:[%s5291_s4 + $0x158] sm:$0xff]  }
 0xffb   :  { %3852 = vmatprep.mubr.msk.bf16.mxu0 %vm4207_vm4, %v4206_v2  ;;  %3845 = vmatpush3.bf16.msra.mxu0 %v4086_v28  ;;  %v4095_v28 = vld [vmem:[%s5291_s4 + $0x170] sm:$0xff]  }
 0xffc   :  { %3846 = vmatprep.subr.bf16.mxu0 %v4206_v2 }
 0xfff   :  { %3847 = vmatpush3.bf16.msra.mxu0 %v4087_v31  ;;  %v4096_v31 = vld [vmem:[%s5291_s4 + $0x168] sm:$0xff]  }
0x1000   :  { %3848 = vmatprep.subr.bf16.mxu0 %v4206_v2 }
0x1003   :  { %3849 = vmatpush3.bf16.msra.mxu0 %v4088_v32  ;;  %v4097_v32 = vld [vmem:[%s5291_s4 + $0x160] sm:$0xff]  }
0x1004   :  { %3850 = vmatprep.subr.bf16.mxu0 %v4206_v2 }
0x1007   :  { %3851 = vmatpush3.bf16.msra.mxu0 %v4089_v33  ;;  %v3571_v33 = vld [vmem:[%s5290_s5 + $0x10] ss:$0 sm:$0xff] }
0x1008   :  { %3868 = vmatprep.subr.bf16.mxu0 %v4206_v2 }
0x10ba   :  { %v2209_v7 = vpop.f32.mrf.mxu0 }
0x10bb   :  { %v2210_v63 = vadd.f32 %v3526_v6, %v2209_v7 }
0x10bc   :  { %v3830_v8 = vpop.f32.mrf.mxu0 }
0x10bd   :  { %v5045_v9 = vadd.f32 %v2210_v63, %v4985_v10 }
0x10be   :  { %v2212_v13 = vpop.f32.mrf.mxu0 }
0x10bf   :  { %v2220_v51 = vmul.f32 0.044715, %v5045_v9  ;;  %v2213_v53 = vadd.f32 %v3526_v6, %v2212_v13  ;;  %v2218_v17 = vmul.f32 0.5, %v5045_v9 }
0x10c0   :  { %v3831_v15 = vpop.f32.mrf.mxu0 }
0x10c1   :  { %v2222_v4 = vmul.f32 %v2220_v51, %v5045_v9  ;;  %v5050_v19 = vadd.f32 %v2213_v53, %v4990_v18 }
0x10c3   :  { %v2224_v27 = vmul.f32 %v2222_v4, %v5045_v9  ;;  %v2221_v12 = vmul.f32 0.044715, %v5050_v19  ;;  %v2219_v5 = vmul.f32 0.5, %v5050_v19 }
0x10c5   :  { %v2223_v50 = vmul.f32 %v2221_v12, %v5050_v19  ;;  %v2226_v11 = vadd.f32 %v2224_v27, %v5045_v9 }
0x10c7   :  { %v2225_v10 = vmul.f32 %v2223_v50, %v5050_v19  ;;  %v2228_v20 = vmul.f32 0.7978846, %v2226_v11 }
0x10c9   :  { %v2227_v21 = vadd.f32 %v2225_v10, %v5050_v19  ;;  %4174 = vtanh.f32 %v2228_v20 }
0x10cb   :  { %v2229_v22 = vmul.f32 0.7978846, %v2227_v21 }
0x10cd   :  { %4176 = vtanh.f32 %v2229_v22 }
0x10d6   :  { %v4175_v23 = vpop.eup %4174 }
0x10d7   :  { %v2232_v24 = vadd.f32 1.0, %v4175_v23 }
0x10d9   :  { %v2234_v34 = vmul.f32 %v2232_v24, %v2218_v17 }
0x10da   :  { %v4177_v18 = vpop.eup %4176 }
0x10db   :  { %v2233_v16 = vadd.f32 1.0, %v4177_v18 }
0x10dd   :  { %v2235_v25 = vmul.f32 %v2233_v16, %v2219_v5 }
0x10df   :  { %v2247_v26 = vpack.c.bf16 %v2235_v25, %v2234_v34 }
0x10e1   :  { %3841 = vmatmul.mubr.msk.bf16.vlgmr.msra.gmra.mxu1 %vm261_vm10, %v2247_v26  ;;  %v4094_v26 = vld [vmem:[%s5291_s4 + $0x178] sm:$0xff]  }
0x10e2   :  { %3864 = vmatprep.mubr.msk.bf16.mxu1 %vm4207_vm4, %v4206_v2  ;;  %3857 = vmatpush3.bf16.msra.mxu1 %v4090_v62  ;;  %v4099_v62 = vld [vmem:[%s5291_s4 + $0x190] sm:$0xff]  }
0x10e3   :  { %3858 = vmatprep.subr.bf16.mxu1 %v4206_v2 }
0x10e6   :  { %3859 = vmatpush3.bf16.msra.mxu1 %v4091_v0  ;;  %v4100_v0 = vld [vmem:[%s5291_s4 + $0x188] sm:$0xff]  }
0x10e7   :  { %3860 = vmatprep.subr.bf16.mxu1 %v4206_v2 }
0x10ea   :  { %3861 = vmatpush3.bf16.msra.mxu1 %v4092_v1  ;;  %v4101_v1 = vld [vmem:[%s5291_s4 + $0x180] sm:$0xff]  }
0x10eb   :  { %3862 = vmatprep.subr.bf16.mxu1 %v4206_v2 }
0x10ee   :  { %3863 = vmatpush3.bf16.msra.mxu1 %v4093_v3  ;;  %v3586_v3 = vld [vmem:[%s5290_s5 + $0x11] ss:$0 sm:$0xff] }
0x10ef   :  { %3880 = vmatprep.subr.bf16.mxu1 %v4206_v2 }
0x11a1   :  { %v2315_v38 = vpop.f32.mrf.mxu1 }
0x11a2   :  { %v2316_v39 = vadd.f32 %v3541_v37, %v2315_v38 }
0x11a3   :  { %v3842_v40 = vpop.f32.mrf.mxu1 }
0x11a4   :  { %v2324_v14 = vmul.f32 0.044715, %v2316_v39  ;;  %v2322_v56 = vmul.f32 0.5, %v2316_v39 }
0x11a5   :  { %v2318_v41 = vpop.f32.mrf.mxu1 }
0x11a6   :  { %v2326_v29 = vmul.f32 %v2324_v14, %v2316_v39  ;;  %v2319_v30 = vadd.f32 %v3541_v37, %v2318_v41 }
0x11a7   :  { %v3843_v42 = vpop.f32.mrf.mxu1 }
0x11a8   :  { %v2328_v43 = vmul.f32 %v2326_v29, %v2316_v39  ;;  %v2325_v35 = vmul.f32 0.044715, %v2319_v30  ;;  %v2323_v57 = vmul.f32 0.5, %v2319_v30 }
0x11aa   :  { %v2330_v44 = vadd.f32 %v2328_v43, %v2316_v39  ;;  %v2327_v36 = vmul.f32 %v2325_v35, %v2319_v30 }
0x11ac   :  { %v2332_v45 = vmul.f32 0.7978846, %v2330_v44  ;;  %v2329_v46 = vmul.f32 %v2327_v36, %v2319_v30 }
0x11ae   :  { %4178 = vtanh.f32 %v2332_v45  ;;  %v2331_v47 = vadd.f32 %v2329_v46, %v2319_v30 }
0x11b0   :  { %v2333_v48 = vmul.f32 0.7978846, %v2331_v47 }
0x11b2   :  { %4180 = vtanh.f32 %v2333_v48 }
0x11bb   :  { %v4179_v49 = vpop.eup %4178 }
0x11bc   :  { %v2336_v54 = vadd.f32 1.0, %v4179_v49 }
0x11be   :  { %v2338_v59 = vmul.f32 %v2336_v54, %v2322_v56 }
0x11bf   :  { %v4181_v55 = vpop.eup %4180 }
0x11c0   :  { %v2337_v58 = vadd.f32 1.0, %v4181_v55 }
0x11c2   :  { %v2339_v60 = vmul.f32 %v2337_v58, %v2323_v57 }
0x11c4   :  { %v2351_v61 = vpack.c.bf16 %v2339_v60, %v2338_v59 }
0x11c6   :  { %3853 = vmatmul.mubr.msk.bf16.vlgmr.msra.gmra.mxu0 %vm261_vm10, %v2351_v61  ;;  %v4098_v61 = vld [vmem:[%s5291_s4 + $0x198] sm:$0xff]  }
0x11c7   :  { %3876 = vmatprep.mubr.msk.bf16.mxu0 %vm4207_vm4, %v4206_v2  ;;  %3869 = vmatpush3.bf16.msra.mxu0 %v4094_v26  ;;  %v4103_v26 = vld [vmem:[%s5291_s4 + $0x1b0] sm:$0xff]  }
0x11c8   :  { %3870 = vmatprep.subr.bf16.mxu0 %v4206_v2 }
0x11cb   :  { %3871 = vmatpush3.bf16.msra.mxu0 %v4095_v28  ;;  %v4104_v28 = vld [vmem:[%s5291_s4 + $0x1a8] sm:$0xff]  }
0x11cc   :  { %3872 = vmatprep.subr.bf16.mxu0 %v4206_v2 }
0x11cf   :  { %3873 = vmatpush3.bf16.msra.mxu0 %v4096_v31  ;;  %v4105_v31 = vld [vmem:[%s5291_s4 + $0x1a0] sm:$0xff]  }
0x11d0   :  { %3874 = vmatprep.subr.bf16.mxu0 %v4206_v2 }
0x11d3   :  { %3875 = vmatpush3.bf16.msra.mxu0 %v4097_v32  ;;  %v4106_v32 = vld [vmem:[%s5292_s10 + $0x18] sm:$0xff]  }
0x11d4   :  { %3892 = vmatprep.subr.bf16.mxu0 %v4206_v2 }
0x1286   :  { %v2419_v6 = vpop.f32.mrf.mxu0 }
0x1287   :  { %v2420_v7 = vadd.f32 %v3556_v52, %v2419_v6 }
0x1288   :  { %v3854_v63 = vpop.f32.mrf.mxu0 }
0x1289   :  { %v5105_v8 = vadd.f32 %v2420_v7, %v5045_v9 }
0x128a   :  { %v2422_v13 = vpop.f32.mrf.mxu0 }
0x128b   :  { %v2430_v51 = vmul.f32 0.044715, %v5105_v8  ;;  %v2423_v53 = vadd.f32 %v3556_v52, %v2422_v13  ;;  %v2428_v18 = vmul.f32 0.5, %v5105_v8 }
0x128c   :  { %v3855_v15 = vpop.f32.mrf.mxu0 }
0x128d   :  { %v2432_v4 = vmul.f32 %v2430_v51, %v5105_v8  ;;  %v5110_v27 = vadd.f32 %v2423_v53, %v5050_v19 }
0x128f   :  { %v2434_v12 = vmul.f32 %v2432_v4, %v5105_v8  ;;  %v2431_v50 = vmul.f32 0.044715, %v5110_v27  ;;  %v2429_v17 = vmul.f32 0.5, %v5110_v27 }
0x1291   :  { %v2433_v11 = vmul.f32 %v2431_v50, %v5110_v27  ;;  %v2436_v10 = vadd.f32 %v2434_v12, %v5105_v8 }
0x1293   :  { %v2435_v9 = vmul.f32 %v2433_v11, %v5110_v27  ;;  %v2438_v20 = vmul.f32 0.7978846, %v2436_v10 }
0x1295   :  { %v2437_v21 = vadd.f32 %v2435_v9, %v5110_v27  ;;  %4182 = vtanh.f32 %v2438_v20 }
0x1297   :  { %v2439_v22 = vmul.f32 0.7978846, %v2437_v21 }
0x1299   :  { %4184 = vtanh.f32 %v2439_v22 }
0x12a2   :  { %v4183_v23 = vpop.eup %4182 }
0x12a3   :  { %v2442_v24 = vadd.f32 1.0, %v4183_v23 }
0x12a5   :  { %v2444_v16 = vmul.f32 %v2442_v24, %v2428_v18 }
0x12a6   :  { %v4185_v19 = vpop.eup %4184 }
0x12a7   :  { %v2443_v5 = vadd.f32 1.0, %v4185_v19 }
0x12a9   :  { %v2445_v34 = vmul.f32 %v2443_v5, %v2429_v17 }
0x12ab   :  { %v2457_v25 = vpack.c.bf16 %v2445_v34, %v2444_v16 }
0x12ad   :  { %3865 = vmatmul.mubr.msk.bf16.vlgmr.msra.gmra.mxu1 %vm261_vm10, %v2457_v25  ;;  %v4102_v25 = vld [vmem:[%s5291_s4 + $0x1b8] sm:$0xff]  }
0x12ae   :  { %3888 = vmatprep.mubr.msk.bf16.mxu1 %vm4207_vm4, %v4206_v2  ;;  %3881 = vmatpush3.bf16.msra.mxu1 %v4098_v61  ;;  %v4107_v61 = vld [vmem:[%s5292_s10 + $0x10] sm:$0xff]  }
0x12af   :  { %3882 = vmatprep.subr.bf16.mxu1 %v4206_v2 }
0x12b2   :  { %3883 = vmatpush3.bf16.msra.mxu1 %v4099_v62  ;;  %v4108_v62 = vld [vmem:[%s5292_s10 + $0x8] sm:$0xff]  }
0x12b3   :  { %3884 = vmatprep.subr.bf16.mxu1 %v4206_v2 }
0x12b6   :  { %3885 = vmatpush3.bf16.msra.mxu1 %v4100_v0  ;;  %v4109_v0 = vld [vmem:[%s5292_s10] sm:$0xff]  }
0x12b7   :  { %3886 = vmatprep.subr.bf16.mxu1 %v4206_v2 }
0x12ba   :  { %3887 = vmatpush3.bf16.msra.mxu1 %v4101_v1  ;;  %v4110_v1 = vld [vmem:[%s5293_s6 + $0x18] sm:$0xff]  }
0x12bb   :  { %3904 = vmatprep.subr.bf16.mxu1 %v4206_v2 }
0x136d   :  { %v2525_v37 = vpop.f32.mrf.mxu1 }
0x136e   :  { %v2526_v38 = vadd.f32 %v3571_v33, %v2525_v37 }
0x136f   :  { %v3866_v39 = vpop.f32.mrf.mxu1 }
0x1370   :  { %v2534_v40 = vmul.f32 0.044715, %v2526_v38  ;;  %v2532_v55 = vmul.f32 0.5, %v2526_v38 }
0x1371   :  { %v2528_v14 = vpop.f32.mrf.mxu1 }
0x1372   :  { %v2536_v41 = vmul.f32 %v2534_v40, %v2526_v38  ;;  %v2529_v29 = vadd.f32 %v3571_v33, %v2528_v14  ;;  %v3601_v33 = vld [vmem:[%s5290_s5 + $0x12] ss:$0 sm:$0xff] }
0x1373   :  { %v3867_v30 = vpop.f32.mrf.mxu1 }
0x1374   :  { %v2538_v42 = vmul.f32 %v2536_v41, %v2526_v38  ;;  %v2535_v43 = vmul.f32 0.044715, %v2529_v29  ;;  %v2533_v56 = vmul.f32 0.5, %v2529_v29 }
0x1376   :  { %v2540_v35 = vadd.f32 %v2538_v42, %v2526_v38  ;;  %v2537_v44 = vmul.f32 %v2535_v43, %v2529_v29 }
0x1378   :  { %v2542_v36 = vmul.f32 0.7978846, %v2540_v35  ;;  %v2539_v45 = vmul.f32 %v2537_v44, %v2529_v29 }
0x137a   :  { %4186 = vtanh.f32 %v2542_v36  ;;  %v2541_v46 = vadd.f32 %v2539_v45, %v2529_v29 }
0x137c   :  { %v2543_v47 = vmul.f32 0.7978846, %v2541_v46 }
0x137e   :  { %4188 = vtanh.f32 %v2543_v47 }
0x1387   :  { %v4187_v48 = vpop.eup %4186 }
0x1388   :  { %v2546_v49 = vadd.f32 1.0, %v4187_v48 }
0x138a   :  { %v2548_v58 = vmul.f32 %v2546_v49, %v2532_v55 }
0x138b   :  { %v4189_v54 = vpop.eup %4188 }
0x138c   :  { %v2547_v57 = vadd.f32 1.0, %v4189_v54 }
0x138e   :  { %v2549_v59 = vmul.f32 %v2547_v57, %v2533_v56 }
0x1390   :  { %v2561_v60 = vpack.c.bf16 %v2549_v59, %v2548_v58 }
0x1392   :  { %3877 = vmatmul.mubr.msk.bf16.vlgmr.msra.gmra.mxu0 %vm261_vm10, %v2561_v60 }
0x1393   :  { %3900 = vmatprep.mubr.msk.bf16.mxu0 %vm4207_vm4, %v4206_v2  ;;  %3893 = vmatpush3.bf16.msra.mxu0 %v4102_v25 }
0x1394   :  { %3894 = vmatprep.subr.bf16.mxu0 %v4206_v2 }
0x1397   :  { %3895 = vmatpush3.bf16.msra.mxu0 %v4103_v26 }
0x1398   :  { %3896 = vmatprep.subr.bf16.mxu0 %v4206_v2 }
0x139b   :  { %3897 = vmatpush3.bf16.msra.mxu0 %v4104_v28 }
0x139c   :  { %3898 = vmatprep.subr.bf16.mxu0 %v4206_v2 }
0x139f   :  { %3899 = vmatpush3.bf16.msra.mxu0 %v4105_v31 }
0x13a0   :  { %3916 = vmatprep.subr.bf16.mxu0 %v4206_v2 }
0x1452   :  { %v2629_v52 = vpop.f32.mrf.mxu0 }
0x1453   :  { %v2630_v6 = vadd.f32 %v3586_v3, %v2629_v52  ;;  %v4112_v52 = vld [vmem:[%s5293_s6 + $0x8] sm:$0xff]  }
0x1454   :  { %v3878_v7 = vpop.f32.mrf.mxu0 }
0x1455   :  { %v5165_v63 = vadd.f32 %v2630_v6, %v5105_v8  ;;  %v4113_v6 = vld [vmem:[%s5293_s6] sm:$0xff]   ;;  %v3616_v7 = vld [vmem:[%s5290_s5 + $0x13] ss:$0 sm:$0xff] }
0x1456   :  { %v2632_v13 = vpop.f32.mrf.mxu0 }
0x1457   :  { %v2640_v51 = vmul.f32 0.044715, %v5165_v63  ;;  %v2633_v53 = vadd.f32 %v3586_v3, %v2632_v13  ;;  %v2638_v19 = vmul.f32 0.5, %v5165_v63  ;;  %v4111_v3 = vld [vmem:[%s5293_s6 + $0x10] sm:$0xff]  }
0x1458   :  { %v3879_v15 = vpop.f32.mrf.mxu0 }
0x1459   :  { %v2642_v4 = vmul.f32 %v2640_v51, %v5165_v63  ;;  %v5170_v12 = vadd.f32 %v2633_v53, %v5110_v27 }
0x145b   :  { %v2644_v50 = vmul.f32 %v2642_v4, %v5165_v63  ;;  %v2641_v11 = vmul.f32 0.044715, %v5170_v12  ;;  %v2639_v18 = vmul.f32 0.5, %v5170_v12 }
0x145d   :  { %v2643_v10 = vmul.f32 %v2641_v11, %v5170_v12  ;;  %v2646_v9 = vadd.f32 %v2644_v50, %v5165_v63 }
0x145f   :  { %v2645_v8 = vmul.f32 %v2643_v10, %v5170_v12  ;;  %v2648_v20 = vmul.f32 0.7978846, %v2646_v9 }
0x1461   :  { %v2647_v21 = vadd.f32 %v2645_v8, %v5170_v12  ;;  %4190 = vtanh.f32 %v2648_v20 }
0x1463   :  { %v2649_v22 = vmul.f32 0.7978846, %v2647_v21 }
0x1465   :  { %4192 = vtanh.f32 %v2649_v22 }
0x146e   :  { %v4191_v23 = vpop.eup %4190 }
0x146f   :  { %v2652_v24 = vadd.f32 1.0, %v4191_v23 }
0x1471   :  { %v2654_v5 = vmul.f32 %v2652_v24, %v2638_v19 }
0x1472   :  { %v4193_v27 = vpop.eup %4192 }
0x1473   :  { %v2653_v17 = vadd.f32 1.0, %v4193_v27 }
0x1475   :  { %v2655_v16 = vmul.f32 %v2653_v17, %v2639_v18 }
0x1477   :  { %v2667_v34 = vpack.c.bf16 %v2655_v16, %v2654_v5 }
0x1479   :  { %3889 = vmatmul.mubr.msk.bf16.vlgmr.msra.gmra.mxu1 %vm261_vm10, %v2667_v34 }
0x147a   :  { %3912 = vmatprep.mubr.msk.bf16.mxu1 %vm4207_vm4, %v4206_v2  ;;  %3905 = vmatpush3.bf16.msra.mxu1 %v4106_v32  ;;  %v4114_v32 = vld [vmem:[%s5294_s8 + $0x8] sm:$0xff]  }
0x147b   :  { %3906 = vmatprep.subr.bf16.mxu1 %v4206_v2 }
0x147e   :  { %3907 = vmatpush3.bf16.msra.mxu1 %v4107_v61 }
0x147f   :  { %3908 = vmatprep.subr.bf16.mxu1 %v4206_v2 }
0x1482   :  { %3909 = vmatpush3.bf16.msra.mxu1 %v4108_v62 }
0x1483   :  { %3910 = vmatprep.subr.bf16.mxu1 %v4206_v2 }
0x1486   :  { %3911 = vmatpush3.bf16.msra.mxu1 %v4109_v0 }
0x1487   :  { %3928 = vmatprep.subr.bf16.mxu1 %v4206_v2 }
0x1539   :  { %v2735_v37 = vpop.f32.mrf.mxu1 }
0x153a   :  { %v2736_v38 = vadd.f32 %v3601_v33, %v2735_v37 }
0x153b   :  { %v3890_v39 = vpop.f32.mrf.mxu1 }
0x153c   :  { %v2744_v40 = vmul.f32 0.044715, %v2736_v38  ;;  %v2742_v55 = vmul.f32 0.5, %v2736_v38 }
0x153d   :  { %v2738_v14 = vpop.f32.mrf.mxu1 }
0x153e   :  { %v2746_v41 = vmul.f32 %v2744_v40, %v2736_v38  ;;  %v2739_v29 = vadd.f32 %v3601_v33, %v2738_v14  ;;  %v4115_v33 = vld [vmem:[%s5294_s8] sm:$0xff]  }
0x153f   :  { %v3891_v30 = vpop.f32.mrf.mxu1  ;;  %v3628_v14 = vld [vmem:[%s5295_s7] ss:$0 sm:$0xff] }
0x1540   :  { %v2748_v42 = vmul.f32 %v2746_v41, %v2736_v38  ;;  %v2745_v43 = vmul.f32 0.044715, %v2739_v29  ;;  %v2743_v56 = vmul.f32 0.5, %v2739_v29 }
0x1542   :  { %v2750_v35 = vadd.f32 %v2748_v42, %v2736_v38  ;;  %v2747_v44 = vmul.f32 %v2745_v43, %v2739_v29 }
0x1544   :  { %v2752_v36 = vmul.f32 0.7978846, %v2750_v35  ;;  %v2749_v45 = vmul.f32 %v2747_v44, %v2739_v29 }
0x1546   :  { %4194 = vtanh.f32 %v2752_v36  ;;  %v2751_v46 = vadd.f32 %v2749_v45, %v2739_v29 }
0x1548   :  { %v2753_v47 = vmul.f32 0.7978846, %v2751_v46 }
0x154a   :  { %4196 = vtanh.f32 %v2753_v47 }
0x1553   :  { %v4195_v48 = vpop.eup %4194 }
0x1554   :  { %v2756_v49 = vadd.f32 1.0, %v4195_v48 }
0x1556   :  { %v2758_v58 = vmul.f32 %v2756_v49, %v2742_v55 }
0x1557   :  { %v4197_v54 = vpop.eup %4196 }
0x1558   :  { %v2757_v57 = vadd.f32 1.0, %v4197_v54 }
0x155a   :  { %v2759_v59 = vmul.f32 %v2757_v57, %v2743_v56 }
0x155c   :  { %v2771_v60 = vpack.c.bf16 %v2759_v59, %v2758_v58 }
0x155e   :  { %3901 = vmatmul.mubr.msk.bf16.vlgmr.msra.gmra.mxu0 %vm261_vm10, %v2771_v60 }
0x155f   :  { %3924 = vmatprep.mubr.msk.bf16.mxu0 %vm4207_vm4, %v4206_v2  ;;  %3917 = vmatpush3.bf16.msra.mxu0 %v4110_v1 }
0x1560   :  { %3918 = vmatprep.subr.bf16.mxu0 %v4206_v2 }
0x1563   :  { %3919 = vmatpush3.bf16.msra.mxu0 %v4111_v3 }
0x1564   :  { %3920 = vmatprep.subr.bf16.mxu0 %v4206_v2 }
0x1567   :  { %3921 = vmatpush3.bf16.msra.mxu0 %v4112_v52  ;;  %v3622_v52 = vld [vmem:[%s5296_s11] ss:$0 sm:$0xff] }
0x1568   :  { %3922 = vmatprep.subr.bf16.mxu0 %v4206_v2 }
0x156b   :  { %3923 = vmatpush3.bf16.msra.mxu0 %v4113_v6  ;;  %v3634_v6 = vld [vmem:[%s5297_s9] ss:$0 sm:$0xff] }
0x156c   :  { %3936 = vmatprep.subr.bf16.mxu0 %v4206_v2 }
0x161e   :  { %v2839_v13 = vpop.f32.mrf.mxu0 }
0x161f   :  { %v2840_v51 = vadd.f32 %v3616_v7, %v2839_v13 }
0x1620   :  { %v3902_v53 = vpop.f32.mrf.mxu0 }
0x1621   :  { %v2846_v15 = vadd.f32 %v2840_v51, %v5165_v63 }
0x1622   :  { %v2842_v4 = vpop.f32.mrf.mxu0 }
0x1623   :  { %v2934_v50 = vmul.f32 0.044715, %v2846_v15  ;;  %v2843_v11 = vadd.f32 %v3616_v7, %v2842_v4 }
0x1624   :  { %v3903_v10 = vpop.f32.mrf.mxu0 }
0x1625   :  { %v2936_v9 = vmul.f32 %v2934_v50, %v2846_v15  ;;  %v2847_v8 = vadd.f32 %v2843_v11, %v5170_v12  ;;  %v2932_v12 = vmul.f32 0.5, %v2846_v15 }
0x1627   :  { %v2938_v20 = vmul.f32 %v2936_v9, %v2846_v15  ;;  %v2935_v21 = vmul.f32 0.044715, %v2847_v8  ;;  %v2848_v22 = vpack.c.bf16 %v2847_v8, %v2846_v15  ;;  %v2933_v34 = vmul.f32 0.5, %v2847_v8 }
0x1629   :  { %v2937_v23 = vmul.f32 %v2935_v21, %v2847_v8  ;;  %3913 = vmatmul.mubr.msk.bf16.vlgmr.msra.gmra.mxu1 %vm261_vm10, %v2848_v22  ;;  %v2940_v24 = vadd.f32 %v2938_v20, %v2846_v15  ;;  %v4116_v21 = vld [vmem:[%s5298_s12 + $0x8] sm:$0xff]   ;;  %v4117_v22 = vld [vmem:[%s5298_s12] sm:$0xff]  }
0x162a   :  { %3932 = vmatprep.mubr.msk.bf16.mxu1 %vm4207_vm4, %v4206_v2  ;;  %3929 = vmatpush3.bf16.msra.mxu1 %v4114_v32 }
0x162b   :  { %v2939_v27 = vmul.f32 %v2937_v23, %v2847_v8  ;;  %v2942_v19 = vmul.f32 0.7978846, %v2940_v24  ;;  %3930 = vmatprep.subr.bf16.mxu1 %v4206_v2 }
0x162d   :  { %v2941_v63 = vadd.f32 %v2939_v27, %v2847_v8  ;;  %4198 = vtanh.f32 %v2942_v19 }
0x162e   :  { %3931 = vmatpush3.bf16.msra.mxu1 %v4115_v33 }
0x162f   :  { %v2943_v18 = vmul.f32 0.7978846, %v2941_v63 }
0x1631   :  { %4200 = vtanh.f32 %v2943_v18 }
0x163a   :  { %v4199_v17 = vpop.eup %4198 }
0x163b   :  { %v2946_v5 = vadd.f32 1.0, %v4199_v17 }
0x163d   :  { %v2948_v26 = vmul.f32 %v2946_v5, %v2932_v12  ;;  %v3638_v5 = vld [vmem:[%s5299_s13] ss:$0 sm:$0xff] }
0x163e   :  { %v4201_v16 = vpop.eup %4200 }
0x163f   :  { %v2947_v25 = vadd.f32 1.0, %v4201_v16 }
0x1641   :  { %v2949_v28 = vmul.f32 %v2947_v25, %v2933_v34 }
0x1643   :  { %v2959_v31 = vpack.c.bf16 %v2949_v28, %v2948_v26 }
0x1645   :  { %3925 = vmatmul.mubr.msk.bf16.vlgmr.msra.gmra.mxu0 %vm261_vm10, %v2959_v31 }
0x1646   :  { %3940 = vmatprep.mubr.msk.bf16.mxu0 %vm4207_vm4, %v4206_v2  ;;  %3937 = vmatpush3.bf16.msra.mxu0 %v4116_v21 }
0x1647   :  { %3938 = vmatprep.subr.bf16.mxu0 %v4206_v2 }
0x164a   :  { %3939 = vmatpush3.bf16.msra.mxu0 %v4117_v22 }
0x16e9   :  { %v2925_v37 = vpop.f32.mrf.mxu1 }
0x16ea   :  { %v2926_v13 = vadd.f32 %v3622_v52, %v2925_v37 }
0x16eb   :  { %v3914_v38 = vpop.f32.mrf.mxu1 }
0x16ed   :  { %v2928_v39 = vpop.f32.mrf.mxu1 }
0x16ee   :  { %v2929_v50 = vadd.f32 %v3622_v52, %v2928_v39 }
0x16ef   :  { %v3915_v40 = vpop.f32.mrf.mxu1 }
0x1705   :  { %v3027_v41 = vpop.f32.mrf.mxu0 }
0x1706   :  { %v3028_v29 = vadd.f32 %v3628_v14, %v3027_v41 }
0x1707   :  { %v3926_v30 = vpop.f32.mrf.mxu0 }
0x1708   :  { %v3036_v42 = vmul.f32 0.044715, %v3028_v29  ;;  %v3034_v60 = vmul.f32 0.5, %v3028_v29 }
0x1709   :  { %v3030_v43 = vpop.f32.mrf.mxu0 }
0x170a   :  { %v3038_v35 = vmul.f32 %v3036_v42, %v3028_v29  ;;  %v3031_v44 = vadd.f32 %v3628_v14, %v3030_v43 }
0x170b   :  { %v3927_v36 = vpop.f32.mrf.mxu0 }
0x170c   :  { %v3040_v45 = vmul.f32 %v3038_v35, %v3028_v29  ;;  %v3037_v46 = vmul.f32 0.044715, %v3031_v44  ;;  %v3035_v61 = vmul.f32 0.5, %v3031_v44 }
0x170e   :  { %v3042_v47 = vadd.f32 %v3040_v45, %v3028_v29  ;;  %v3039_v48 = vmul.f32 %v3037_v46, %v3031_v44 }
0x1710   :  { %v3044_v49 = vmul.f32 0.7978846, %v3042_v47  ;;  %v3041_v54 = vmul.f32 %v3039_v48, %v3031_v44 }
0x1712   :  { %4202 = vtanh.f32 %v3044_v49  ;;  %v3043_v55 = vadd.f32 %v3041_v54, %v3031_v44 }
0x1714   :  { %v3045_v56 = vmul.f32 0.7978846, %v3043_v55 }
0x1716   :  { %4204 = vtanh.f32 %v3045_v56 }
0x171f   :  { %v4203_v57 = vpop.eup %4202 }
0x1720   :  { %v3048_v58 = vadd.f32 1.0, %v4203_v57 }
0x1722   :  { %v3050_v0 = vmul.f32 %v3048_v58, %v3034_v60 }
0x1723   :  { %v4205_v59 = vpop.eup %4204 }
0x1724   :  { %v3049_v62 = vadd.f32 1.0, %v4205_v59 }
0x1726   :  { %v3051_v1 = vmul.f32 %v3049_v62, %v3035_v61 }
0x1728   :  { %v3057_v3 = vpack.c.bf16 %v3051_v1, %v3050_v0 }
0x172a   :  { %3933 = vmatmul.mubr.msk.bf16.vlgmr.msra.gmra.mxu1 %vm3076_vm3, %v3057_v3 }
0x17ea   :  { %v3114_v7 = vpop.f32.mrf.mxu1 }
0x17eb   :  { %v3115_v51 = vadd.f32 %v3634_v6, %v3114_v7 }
0x17ec   :  { %v3934_v53 = vpop.f32.mrf.mxu1 }
0x17ed   :  { %v3121_v15 = vadd.f32 %v3115_v51, %v2926_v13 }
0x17ee   :  { %v3117_v4 = vpop.f32.mrf.mxu1 }
0x17ef   :  { %v3118_v11 = vadd.f32 %v3634_v6, %v3117_v4  ;;  %v3123_v10 = vsel %vm3076_vm3, %v3121_v15, 0.0 }
0x17f0   :  { %3124 = vadd.xlane.f32.xlu1 %v3123_v10  ;;  %v3935_v9 = vpop.f32.mrf.mxu1 }
0x17f1   :  { %v3122_v8 = vadd.f32 %v3118_v11, %v2929_v50 }
0x17f3   :  { %v3126_v20 = vsel %vm3076_vm3, %v3122_v8, 0.0 }
0x17f4   :  { %3127 = vadd.xlane.f32.xlu0 %v3126_v20 }
0x1879   :  { %v3125_v23 = vpop.xlane.xlu1 %3124 }
0x187a   :  { %v3130_v24 = vmul.f32 0.03125, %v3125_v23 }
0x187c   :  { %v3132_v63 = vsub.f32 %v3121_v15, %v3130_v24 }
0x187d   :  { %v3128_v27 = vpop.xlane.xlu0 %3127 }
0x187e   :  { %v3131_v19 = vmul.f32 0.03125, %v3128_v27 }
0x1880   :  { %v3133_v18 = vsub.f32 %v3122_v8, %v3131_v19 }
0x1882   :  { %v3134_v17 = vpack.c.bf16 %v3133_v18, %v3132_v63 }
0x1884   :  { %3941 = vmatmul.mubr.msk.bf16.vlgmr.msra.gmra.mxu0 %vm3076_vm3, %v3134_v17 }
0x1944   :  { %v3195_v16 = vpop.f32.mrf.mxu0 }
0x1945   :  { %v3196_v2 = vadd.f32 %v3638_v5, %v3195_v16 }
0x1946   :  { %v3942_v12 = vpop.f32.mrf.mxu0 }
0x1947   :  { %3202 = vst.msk [vmem:[%s5300_s14] sm:$0xff] %vm62_vm0, %v3196_v2 }
0x1948   :  { %v3198_v34 = vpop.f32.mrf.mxu0 }
0x1949   :  { %v3199_v25 = vadd.f32 %v3638_v5, %v3198_v34 }
0x194a   :  { %v3943_v26 = vpop.f32.mrf.mxu0 }
0x194b   :  { %3203 = vst.msk [vmem:[%s5300_s14 + $0x8] sm:$0xff] %vm62_vm0, %v3199_v25 }

</bundles_post_ra>
